<compile_context>
chip_gen: v7x
topology: tpu7x:2x2x1
jax: 0.10.0
libtpu: 0.0.40
codegen_flags: <defaults>
</compile_context>

<pallas_src>
import functools

import jax
import jax.numpy as jnp
import numpy as np
from jax.experimental import pallas as pl
from jax.experimental.pallas import tpu as pltpu


# ----------------------------------------------------------------------------
# Pallas kernel: one grid step == one time CHUNK of Tc steps; both directions
# advance together. Forward walks chunk c forwards in time, backward walks
# chunk (nblk-1-c) backwards in time, so across the sequential grid the
# backward recurrence sees absolute time T-1, T-2, ..., 0.
# ----------------------------------------------------------------------------
def _bilstm_kernel(len_ref, xf_ref, xb_ref,
                   wih_f_ref, whh_f_ref, b_f_ref,
                   wih_b_ref, whh_b_ref, b_b_ref,
                   of_ref, ob_ref, hf_ref, hb_ref,
                   cfs, cbs, *, Tc):
    c = pl.program_id(0)
    nblk = pl.num_programs(0)
    B, H = hf_ref.shape
    D = xf_ref.shape[-1]

    @pl.when(c == 0)
    def _init():
        # hf_ref / hb_ref are VMEM-resident output blocks (constant index_map)
        # and double as the hidden-state carry across grid steps.
        hf_ref[...] = jnp.zeros_like(hf_ref)
        hb_ref[...] = jnp.zeros_like(hb_ref)
        cfs[...] = jnp.zeros_like(cfs)
        cbs[...] = jnp.zeros_like(cbs)

    lengths = len_ref[...]                                    # (B, 1) int32

    # Bulk input projection for the whole chunk: one wide MXU matmul per
    # direction (bias b = b_ih + b_hh folded in here).
    xg_f = (jnp.dot(xf_ref[...].reshape(B * Tc, D), wih_f_ref[...],
                    preferred_element_type=jnp.float32)
            .reshape(B, Tc, 4 * H) + b_f_ref[...])            # (B, Tc, 4H)
    xg_b = (jnp.dot(xb_ref[...].reshape(B * Tc, D), wih_b_ref[...],
                    preferred_element_type=jnp.float32)
            .reshape(B, Tc, 4 * H) + b_b_ref[...])            # (B, Tc, 4H)

    whh_f = whh_f_ref[...]
    whh_b = whh_b_ref[...]

    def cell(pre, c_prev):
        # One wide sigmoid over the whole (B, 4H) gate block (EUP), tanh only
        # on the g column block.  Gate order: i, f, g, o (PyTorch LSTM).
        sg = jax.nn.sigmoid(pre)
        i = sg[:, 0 * H:1 * H]
        f = sg[:, 1 * H:2 * H]
        o = sg[:, 3 * H:4 * H]
        g = jnp.tanh(pre[:, 2 * H:3 * H])
        c_new = f * c_prev + i * g
        h_new = o * jnp.tanh(c_new)
        return h_new, c_new

    hf, cf = hf_ref[...], cfs[...]
    hb, cb = hb_ref[...], cbs[...]

    # Tc is a small static constant, so a Python loop is a full unroll
    # (equivalent to lax.fori_loop(..., unroll=True) but with static slice
    # indices, which lower more robustly).
    for tt in range(Tc):
        # ---- forward direction: chunk c, time ascending ---------------------
        t_f = c * Tc + tt
        m_f = t_f < lengths                                   # (B, 1) bool
        pre_f = xg_f[:, tt, :] + jnp.dot(hf, whh_f,
                                         preferred_element_type=jnp.float32)
        hf_new, cf_new = cell(pre_f, cf)
        of_ref[:, tt, :] = jnp.where(m_f, hf_new, 0.0)
        hf = jnp.where(m_f, hf_new, hf)
        cf = jnp.where(m_f, cf_new, cf)

        # ---- backward direction: chunk (nblk-1-c), time descending ----------
        tb = Tc - 1 - tt
        t_b = (nblk - 1 - c) * Tc + tb
        m_b = t_b < lengths
        pre_b = xg_b[:, tb, :] + jnp.dot(hb, whh_b,
                                         preferred_element_type=jnp.float32)
        hb_new, cb_new = cell(pre_b, cb)
        ob_ref[:, tb, :] = jnp.where(m_b, hb_new, 0.0)
        hb = jnp.where(m_b, hb_new, hb)
        cb = jnp.where(m_b, cb_new, cb)

    # write carries back (hf_ref/hb_ref are also the final-hidden outputs)
    hf_ref[...] = hf
    cfs[...] = cf
    hb_ref[...] = hb
    cbs[...] = cb


def _bilstm_pallas(x, len2d, params, Tc):
    """x: (B, T_pad, D) batch-first (T_pad % Tc == 0), len2d: (B, 1) int32."""
    B, T_pad, D = x.shape
    H = params["whh_f"].shape[0]
    nblk = T_pad // Tc
    if nblk > 1:
        assert Tc % 8 == 0, "time chunk must be sublane-aligned when tiling T"

    const = lambda c: (0, 0)
    fwd_t = lambda c: (0, c, 0)                 # forward reads/writes chunk c
    bwd_t = lambda c: (0, nblk - 1 - c, 0)      # backward: reversed chunk order

    grid_spec = pltpu.PrefetchScalarGridSpec(
        num_scalar_prefetch=0,
        grid=(nblk,),
        in_specs=[
            pl.BlockSpec((B, 1), const),            # lengths (int32)
            pl.BlockSpec((B, Tc, D), fwd_t),        # input, forward chunk view
            pl.BlockSpec((B, Tc, D), bwd_t),        # same input, reversed chunk view
            pl.BlockSpec((D, 4 * H), const),        # W_ih fwd (pre-transposed)
            pl.BlockSpec((H, 4 * H), const),        # W_hh fwd
            pl.BlockSpec((1, 4 * H), const),        # b fwd (= b_ih + b_hh)
            pl.BlockSpec((D, 4 * H), const),        # W_ih bwd
            pl.BlockSpec((H, 4 * H), const),        # W_hh bwd
            pl.BlockSpec((1, 4 * H), const),        # b bwd
        ],
        out_specs=[
            pl.BlockSpec((B, Tc, H), fwd_t),        # forward per-step outputs
            pl.BlockSpec((B, Tc, H), bwd_t),        # backward per-step outputs
            pl.BlockSpec((B, H), const),            # final forward hidden (carry)
            pl.BlockSpec((B, H), const),            # final backward hidden (carry)
        ],
        scratch_shapes=[pltpu.VMEM((B, H), jnp.float32)] * 2,   # cell states
    )

    out_shapes = (
        jax.ShapeDtypeStruct((B, T_pad, H), jnp.float32),
        jax.ShapeDtypeStruct((B, T_pad, H), jnp.float32),
        jax.ShapeDtypeStruct((B, H), jnp.float32),
        jax.ShapeDtypeStruct((B, H), jnp.float32),
    )

    return pl.pallas_call(
        functools.partial(_bilstm_kernel, Tc=Tc),
        out_shape=out_shapes,
        grid_spec=grid_spec,
        compiler_params=pltpu.CompilerParams(dimension_semantics=("arbitrary",)),
    )(len2d, x, x,
      params["wih_f"], params["whh_f"], params["b_f"],
      params["wih_b"], params["whh_b"], params["b_b"])


# ----------------------------------------------------------------------------
# Wrapper: batch-first in, batch-first out.  No transposes, no reversal passes;
# only a pad-to-chunk (no-op here), slice, and the final channel concat.
# ----------------------------------------------------------------------------
@functools.partial(jax.jit, static_argnames=("time_chunk",))
def rnn_encoder_forward(inputs, lengths, params, *, time_chunk=8):
    """inputs: (B, T, D) batch-first, lengths: (B,) int32 (lengths >= 1).
    Returns (outputs (B, T, 2H), hidden (B, 2H)) like the PyTorch RNNEncoder.
    """
    B, T, D = inputs.shape
    inputs = inputs.astype(jnp.float32)
    lengths = lengths.astype(jnp.int32)

    Tc = min(time_chunk, T) if T % min(time_chunk, T) == 0 else time_chunk
    T_pad = -(-T // Tc) * Tc
    x = inputs if T_pad == T else jnp.pad(inputs, ((0, 0), (0, T_pad - T), (0, 0)))
    len2d = lengths[:, None]                                  # (B, 1)

    of, ob, hf, hb = _bilstm_pallas(x, len2d, params, Tc)

    outputs = jnp.concatenate([of[:, :T], ob[:, :T]], axis=-1)  # (B, T, 2H)
    hidden = jnp.concatenate([hf, hb], axis=-1)                 # (B, 2H)
    return outputs, hidden


# ----------------------------------------------------------------------------
# Deterministic parameter init (PyTorch LSTM default: U(-1/sqrt(H), 1/sqrt(H)))
# Weights stored pre-transposed for x @ W layout; gate order i, f, g, o.
# ----------------------------------------------------------------------------
def init_params(key, D, H):
    bound = 1.0 / np.sqrt(H)
    ks = jax.random.split(key, 12)
    u = lambda k, s: jax.random.uniform(k, s, jnp.float32, -bound, bound)
    return {
        "wih_f": u(ks[0], (D, 4 * H)),
        "whh_f": u(ks[1], (H, 4 * H)),
        "b_f": u(ks[2], (1, 4 * H)) + u(ks[3], (1, 4 * H)),   # b_ih + b_hh
        "wih_b": u(ks[4], (D, 4 * H)),
        "whh_b": u(ks[5], (H, 4 * H)),
        "b_b": u(ks[6], (1, 4 * H)) + u(ks[7], (1, 4 * H)),
    }


# ----------------------------------------------------------------------------
# Pure-JAX reference (lax.scan, explicit per-sequence reversal) for checking.
# ----------------------------------------------------------------------------
def _reverse_by_length(x, lengths, T):
    """x: (B, T, C); y[b, t] = x[b, L_b-1-t] for t < L_b, else 0."""
    t_idx = jnp.arange(T)[None, :]
    rev_idx = jnp.clip(lengths[:, None] - 1 - t_idx, 0, T - 1)
    valid = t_idx < lengths[:, None]
    xr = jnp.take_along_axis(x, rev_idx[..., None], axis=1)
    return jnp.where(valid[..., None], xr, 0.0)


def _lstm_scan_ref(x_tm, lengths, wih, whh, b):
    T, B, D = x_tm.shape
    H = whh.shape[0]

    def step(carry, inp):
        h, c = carry
        x_t, t = inp
        gates = x_t @ wih + h @ whh + b
        i = jax.nn.sigmoid(gates[:, :H])
        f = jax.nn.sigmoid(gates[:, H:2 * H])
        g = jnp.tanh(gates[:, 2 * H:3 * H])
        o = jax.nn.sigmoid(gates[:, 3 * H:])
        c_new = f * c + i * g
        h_new = o * jnp.tanh(c_new)
        m = (t < lengths)[:, None]
        return (jnp.where(m, h_new, h), jnp.where(m, c_new, c)), jnp.where(m, h_new, 0.0)

    init = (jnp.zeros((B, H), jnp.float32), jnp.zeros((B, H), jnp.float32))
    (hT, _), outs = jax.lax.scan(step, init, (x_tm, jnp.arange(T)))
    return outs, hT


def rnn_encoder_reference(inputs, lengths, params):
    B, T, D = inputs.shape
    inputs = inputs.astype(jnp.float32)
    lengths = lengths.astype(jnp.int32)
    x_rev = _reverse_by_length(inputs, lengths, T)
    of, hf = _lstm_scan_ref(jnp.transpose(inputs, (1, 0, 2)), lengths,
                            params["wih_f"], params["whh_f"], params["b_f"][0])
    obr, hb = _lstm_scan_ref(jnp.transpose(x_rev, (1, 0, 2)), lengths,
                             params["wih_b"], params["whh_b"], params["b_b"][0])
    of = jnp.transpose(of, (1, 0, 2))
    ob = _reverse_by_length(jnp.transpose(obr, (1, 0, 2)), lengths, T)
    return jnp.concatenate([of, ob], axis=-1), jnp.concatenate([hf, hb], axis=-1)


if __name__ == "__main__":
    B, T, D, H = 2, 8, 16, 32

    key = jax.random.PRNGKey(0)
    k_x, k_p = jax.random.split(key)
    inputs = jax.random.normal(k_x, (B, T, D), jnp.float32)      # (B, T, D)
    lengths = jnp.array([8, 5], jnp.int32)                       # max == T
    params = init_params(k_p, D, H)

    outputs, hidden = rnn_encoder_forward(inputs, lengths, params)
    outputs, hidden = jax.block_until_ready((outputs, hidden))

    ref_out, ref_hid = rnn_encoder_reference(inputs, lengths, params)
    np.testing.assert_allclose(np.asarray(outputs), np.asarray(ref_out),
                               rtol=1e-3, atol=1e-3)
    np.testing.assert_allclose(np.asarray(hidden), np.asarray(ref_hid),
                               rtol=1e-3, atol=1e-3)

    assert outputs.shape == (B, T, 2 * H)
    assert hidden.shape == (B, 2 * H)
    print("KERNEL_OK")
</pallas_src>

<mosaic_0001>
module attributes {stable_mosaic.version = 11 : i64} {
  func.func @_bilstm_kernel(%arg0: i32, %arg1: memref<2x1xi32, #tpu.memory_space<vmem>>, %arg2: memref<2x8x16xf32, #tpu.memory_space<vmem>>, %arg3: memref<2x8x16xf32, #tpu.memory_space<vmem>>, %arg4: memref<16x128xf32, #tpu.memory_space<vmem>>, %arg5: memref<32x128xf32, #tpu.memory_space<vmem>>, %arg6: memref<1x128xf32, #tpu.memory_space<vmem>>, %arg7: memref<16x128xf32, #tpu.memory_space<vmem>>, %arg8: memref<32x128xf32, #tpu.memory_space<vmem>>, %arg9: memref<1x128xf32, #tpu.memory_space<vmem>>, %arg10: memref<2x8x32xf32, #tpu.memory_space<vmem>>, %arg11: memref<2x8x32xf32, #tpu.memory_space<vmem>>, %arg12: memref<2x32xf32, #tpu.memory_space<vmem>>, %arg13: memref<2x32xf32, #tpu.memory_space<vmem>>, %arg14: memref<2x32xf32, #tpu.memory_space<vmem>>, %arg15: memref<2x32xf32, #tpu.memory_space<vmem>>) attributes {dimension_semantics = [#tpu.dimension_semantics<arbitrary>], iteration_bounds = array<i64: 1>, scalar_prefetch = 0 : i64, scratch_operands = 2 : i64, tpu.core_type = #tpu.core_type<tc>, window_params = [{pipeline_mode = #tpu.pipeline_mode<synchronous>, transform_indices = @transform_0, window_bounds = array<i64: 2, 1>}, {transform_indices = @transform_1, window_bounds = array<i64: 2, 8, 16>}, {transform_indices = @transform_2, window_bounds = array<i64: 2, 8, 16>}, {pipeline_mode = #tpu.pipeline_mode<synchronous>, transform_indices = @transform_3, window_bounds = array<i64: 16, 128>}, {pipeline_mode = #tpu.pipeline_mode<synchronous>, transform_indices = @transform_4, window_bounds = array<i64: 32, 128>}, {pipeline_mode = #tpu.pipeline_mode<synchronous>, transform_indices = @transform_5, window_bounds = array<i64: 1, 128>}, {pipeline_mode = #tpu.pipeline_mode<synchronous>, transform_indices = @transform_6, window_bounds = array<i64: 16, 128>}, {pipeline_mode = #tpu.pipeline_mode<synchronous>, transform_indices = @transform_7, window_bounds = array<i64: 32, 128>}, {pipeline_mode = #tpu.pipeline_mode<synchronous>, transform_indices = @transform_8, window_bounds = array<i64: 1, 128>}, {transform_indices = @transform_9, window_bounds = array<i64: 2, 8, 32>}, {transform_indices = @transform_10, window_bounds = array<i64: 2, 8, 32>}, {pipeline_mode = #tpu.pipeline_mode<synchronous>, transform_indices = @transform_11, window_bounds = array<i64: 2, 32>}, {pipeline_mode = #tpu.pipeline_mode<synchronous>, transform_indices = @transform_12, window_bounds = array<i64: 2, 32>}]} {
    %c0_i32 = arith.constant 0 : i32
    %0 = arith.cmpi eq, %arg0, %c0_i32 : i32
    %1 = arith.extui %0 : i1 to i32
    %c0_i32_0 = arith.constant 0 : i32
    %2 = arith.cmpi ne, %1, %c0_i32_0 : i32
    scf.if %2 {
      %cst_158 = arith.constant 0.000000e+00 : f32
      %616 = vector.broadcast %cst_158 : f32 to vector<2x32xf32>
      %c0_159 = arith.constant 0 : index
      %c0_160 = arith.constant 0 : index
      %617 = vector.load %arg12[%c0_159, %c0_160] : memref<2x32xf32, #tpu.memory_space<vmem>>, vector<2x32xf32>
      tpu.vector_store %arg12[%c0_159, %c0_160], %616 {strides = array<i32>} : memref<2x32xf32, #tpu.memory_space<vmem>>, vector<2x32xf32>,
      %cst_161 = arith.constant 0.000000e+00 : f32
      %618 = vector.broadcast %cst_161 : f32 to vector<2x32xf32>
      %c0_162 = arith.constant 0 : index
      %c0_163 = arith.constant 0 : index
      %619 = vector.load %arg13[%c0_162, %c0_163] : memref<2x32xf32, #tpu.memory_space<vmem>>, vector<2x32xf32>
      tpu.vector_store %arg13[%c0_162, %c0_163], %618 {strides = array<i32>} : memref<2x32xf32, #tpu.memory_space<vmem>>, vector<2x32xf32>,
      %cst_164 = arith.constant 0.000000e+00 : f32
      %620 = vector.broadcast %cst_164 : f32 to vector<2x32xf32>
      %c0_165 = arith.constant 0 : index
      %c0_166 = arith.constant 0 : index
      %621 = vector.load %arg14[%c0_165, %c0_166] : memref<2x32xf32, #tpu.memory_space<vmem>>, vector<2x32xf32>
      tpu.vector_store %arg14[%c0_165, %c0_166], %620 {strides = array<i32>} : memref<2x32xf32, #tpu.memory_space<vmem>>, vector<2x32xf32>,
      %cst_167 = arith.constant 0.000000e+00 : f32
      %622 = vector.broadcast %cst_167 : f32 to vector<2x32xf32>
      %c0_168 = arith.constant 0 : index
      %c0_169 = arith.constant 0 : index
      %623 = vector.load %arg15[%c0_168, %c0_169] : memref<2x32xf32, #tpu.memory_space<vmem>>, vector<2x32xf32>
      tpu.vector_store %arg15[%c0_168, %c0_169], %622 {strides = array<i32>} : memref<2x32xf32, #tpu.memory_space<vmem>>, vector<2x32xf32>,
    } else {
    }
    %c0 = arith.constant 0 : index
    %c0_1 = arith.constant 0 : index
    %3 = vector.load %arg1[%c0, %c0_1] : memref<2x1xi32, #tpu.memory_space<vmem>>, vector<2x1xi32>
    %c0_2 = arith.constant 0 : index
    %c0_3 = arith.constant 0 : index
    %c0_4 = arith.constant 0 : index
    %4 = vector.load %arg2[%c0_2, %c0_3, %c0_4] : memref<2x8x16xf32, #tpu.memory_space<vmem>>, vector<2x8x16xf32>
    %5 = vector.shape_cast %4 : vector<2x8x16xf32> to vector<16x16xf32>
    %c0_5 = arith.constant 0 : index
    %c0_6 = arith.constant 0 : index
    %6 = vector.load %arg4[%c0_5, %c0_6] : memref<16x128xf32, #tpu.memory_space<vmem>>, vector<16x128xf32>
    %cst = arith.constant dense<0.000000e+00> : vector<16x128xf32>
    %7 = tpu.matmul %5, %6, %cst {dimension_numbers = #tpu.dot_dimension_numbers<[1], [0], [0], [1], [0, 0, 1, 1], [], []>} : vector<16x16xf32>, vector<16x128xf32>, vector<16x128xf32> -> vector<16x128xf32>
    %8 = vector.shape_cast %7 : vector<16x128xf32> to vector<2x8x128xf32>
    %c0_7 = arith.constant 0 : index
    %c0_8 = arith.constant 0 : index
    %9 = vector.load %arg6[%c0_7, %c0_8] : memref<1x128xf32, #tpu.memory_space<vmem>>, vector<1x128xf32>
    %10 = vector.shape_cast %9 : vector<1x128xf32> to vector<1x1x128xf32>
    %11 = vector.broadcast %10 : vector<1x1x128xf32> to vector<2x8x128xf32>
    %12 = arith.addf %8, %11 : vector<2x8x128xf32>
    %c0_9 = arith.constant 0 : index
    %c0_10 = arith.constant 0 : index
    %c0_11 = arith.constant 0 : index
    %13 = vector.load %arg3[%c0_9, %c0_10, %c0_11] : memref<2x8x16xf32, #tpu.memory_space<vmem>>, vector<2x8x16xf32>
    %14 = vector.shape_cast %13 : vector<2x8x16xf32> to vector<16x16xf32>
    %c0_12 = arith.constant 0 : index
    %c0_13 = arith.constant 0 : index
    %15 = vector.load %arg7[%c0_12, %c0_13] : memref<16x128xf32, #tpu.memory_space<vmem>>, vector<16x128xf32>
    %cst_14 = arith.constant dense<0.000000e+00> : vector<16x128xf32>
    %16 = tpu.matmul %14, %15, %cst_14 {dimension_numbers = #tpu.dot_dimension_numbers<[1], [0], [0], [1], [0, 0, 1, 1], [], []>} : vector<16x16xf32>, vector<16x128xf32>, vector<16x128xf32> -> vector<16x128xf32>
    %17 = vector.shape_cast %16 : vector<16x128xf32> to vector<2x8x128xf32>
    %c0_15 = arith.constant 0 : index
    %c0_16 = arith.constant 0 : index
    %18 = vector.load %arg9[%c0_15, %c0_16] : memref<1x128xf32, #tpu.memory_space<vmem>>, vector<1x128xf32>
    %19 = vector.shape_cast %18 : vector<1x128xf32> to vector<1x1x128xf32>
    %20 = vector.broadcast %19 : vector<1x1x128xf32> to vector<2x8x128xf32>
    %21 = arith.addf %17, %20 : vector<2x8x128xf32>
    %c0_17 = arith.constant 0 : index
    %c0_18 = arith.constant 0 : index
    %22 = vector.load %arg5[%c0_17, %c0_18] : memref<32x128xf32, #tpu.memory_space<vmem>>, vector<32x128xf32>
    %c0_19 = arith.constant 0 : index
    %c0_20 = arith.constant 0 : index
    %23 = vector.load %arg8[%c0_19, %c0_20] : memref<32x128xf32, #tpu.memory_space<vmem>>, vector<32x128xf32>
    %c0_21 = arith.constant 0 : index
    %c0_22 = arith.constant 0 : index
    %24 = vector.load %arg12[%c0_21, %c0_22] : memref<2x32xf32, #tpu.memory_space<vmem>>, vector<2x32xf32>
    %c0_23 = arith.constant 0 : index
    %c0_24 = arith.constant 0 : index
    %25 = vector.load %arg14[%c0_23, %c0_24] : memref<2x32xf32, #tpu.memory_space<vmem>>, vector<2x32xf32>
    %c0_25 = arith.constant 0 : index
    %c0_26 = arith.constant 0 : index
    %26 = vector.load %arg13[%c0_25, %c0_26] : memref<2x32xf32, #tpu.memory_space<vmem>>, vector<2x32xf32>
    %c0_27 = arith.constant 0 : index
    %c0_28 = arith.constant 0 : index
    %27 = vector.load %arg15[%c0_27, %c0_28] : memref<2x32xf32, #tpu.memory_space<vmem>>, vector<2x32xf32>
    %c8_i32 = arith.constant 8 : i32
    %28 = arith.muli %arg0, %c8_i32 : i32
    %c0_i32_29 = arith.constant 0 : i32
    %29 = arith.addi %28, %c0_i32_29 : i32
    %30 = vector.broadcast %29 : i32 to vector<2x1xi32>
    %31 = arith.cmpi slt, %30, %3 : vector<2x1xi32>
    %32 = vector.extract_strided_slice %12 {offsets = [0, 0, 0], sizes = [2, 1, 128], strides = [1, 1, 1]} : vector<2x8x128xf32> to vector<2x1x128xf32>
    %33 = vector.shape_cast %32 : vector<2x1x128xf32> to vector<2x128xf32>
    %cst_30 = arith.constant dense<0.000000e+00> : vector<2x128xf32>
    %34 = tpu.matmul %24, %22, %cst_30 {dimension_numbers = #tpu.dot_dimension_numbers<[1], [0], [0], [1], [0, 0, 1, 1], [], []>} : vector<2x32xf32>, vector<32x128xf32>, vector<2x128xf32> -> vector<2x128xf32>
    %35 = arith.addf %33, %34 : vector<2x128xf32>
    %36 = arith.negf %35 : vector<2x128xf32>
    %37 = math.exp %36 : vector<2x128xf32>
    %cst_31 = arith.constant 1.000000e+00 : f32
    %38 = vector.broadcast %cst_31 : f32 to vector<2x128xf32>
    %39 = arith.addf %38, %37 : vector<2x128xf32>
    %40 = arith.divf %38, %39 : vector<2x128xf32>
    %41 = vector.extract_strided_slice %40 {offsets = [0, 0], sizes = [2, 32], strides = [1, 1]} : vector<2x128xf32> to vector<2x32xf32>
    %42 = vector.extract_strided_slice %40 {offsets = [0, 32], sizes = [2, 32], strides = [1, 1]} : vector<2x128xf32> to vector<2x32xf32>
    %43 = vector.extract_strided_slice %40 {offsets = [0, 96], sizes = [2, 32], strides = [1, 1]} : vector<2x128xf32> to vector<2x32xf32>
    %44 = vector.extract_strided_slice %35 {offsets = [0, 64], sizes = [2, 32], strides = [1, 1]} : vector<2x128xf32> to vector<2x32xf32>
    %45 = math.tanh %44 : vector<2x32xf32>
    %46 = arith.mulf %42, %25 : vector<2x32xf32>
    %47 = arith.mulf %41, %45 : vector<2x32xf32>
    %48 = arith.addf %46, %47 : vector<2x32xf32>
    %49 = math.tanh %48 : vector<2x32xf32>
    %50 = arith.mulf %43, %49 : vector<2x32xf32>
    %cst_32 = arith.constant 0.000000e+00 : f32
    %51 = vector.shape_cast %31 : vector<2x1xi1> to vector<2x1xi1>
    %52 = vector.broadcast %51 : vector<2x1xi1> to vector<2x32xi1>
    %53 = vector.broadcast %cst_32 : f32 to vector<2x32xf32>
    %54 = arith.select %52, %50, %53 : vector<2x32xi1>, vector<2x32xf32>
    %c0_33 = arith.constant 0 : index
    %c0_34 = arith.constant 0 : index
    %c0_35 = arith.constant 0 : index
    %55 = vector.load %arg10[%c0_33, %c0_34, %c0_35] : memref<2x8x32xf32, #tpu.memory_space<vmem>>, vector<2x1x32xf32>
    %56 = vector.shape_cast %55 : vector<2x1x32xf32> to vector<2x32xf32>
    %57 = vector.shape_cast %54 : vector<2x32xf32> to vector<2x1x32xf32>
    tpu.vector_store %arg10[%c0_33, %c0_34, %c0_35], %57 {strides = array<i32>} : memref<2x8x32xf32, #tpu.memory_space<vmem>>, vector<2x1x32xf32>,
    %58 = vector.shape_cast %31 : vector<2x1xi1> to vector<2x1xi1>
    %59 = vector.broadcast %58 : vector<2x1xi1> to vector<2x32xi1>
    %60 = arith.select %59, %50, %24 : vector<2x32xi1>, vector<2x32xf32>
    %61 = vector.shape_cast %31 : vector<2x1xi1> to vector<2x1xi1>
    %62 = vector.broadcast %61 : vector<2x1xi1> to vector<2x32xi1>
    %63 = arith.select %62, %48, %25 : vector<2x32xi1>, vector<2x32xf32>
    %c0_i32_36 = arith.constant 0 : i32
    %64 = arith.subi %c0_i32_36, %arg0 : i32
    %c8_i32_37 = arith.constant 8 : i32
    %65 = arith.muli %64, %c8_i32_37 : i32
    %c7_i32 = arith.constant 7 : i32
    %66 = arith.addi %65, %c7_i32 : i32
    %67 = vector.broadcast %66 : i32 to vector<2x1xi32>
    %68 = arith.cmpi slt, %67, %3 : vector<2x1xi32>
    %69 = vector.extract_strided_slice %21 {offsets = [0, 7, 0], sizes = [2, 1, 128], strides = [1, 1, 1]} : vector<2x8x128xf32> to vector<2x1x128xf32>
    %70 = vector.shape_cast %69 : vector<2x1x128xf32> to vector<2x128xf32>
    %cst_38 = arith.constant dense<0.000000e+00> : vector<2x128xf32>
    %71 = tpu.matmul %26, %23, %cst_38 {dimension_numbers = #tpu.dot_dimension_numbers<[1], [0], [0], [1], [0, 0, 1, 1], [], []>} : vector<2x32xf32>, vector<32x128xf32>, vector<2x128xf32> -> vector<2x128xf32>
    %72 = arith.addf %70, %71 : vector<2x128xf32>
    %73 = arith.negf %72 : vector<2x128xf32>
    %74 = math.exp %73 : vector<2x128xf32>
    %cst_39 = arith.constant 1.000000e+00 : f32
    %75 = vector.broadcast %cst_39 : f32 to vector<2x128xf32>
    %76 = arith.addf %75, %74 : vector<2x128xf32>
    %77 = arith.divf %75, %76 : vector<2x128xf32>
    %78 = vector.extract_strided_slice %77 {offsets = [0, 0], sizes = [2, 32], strides = [1, 1]} : vector<2x128xf32> to vector<2x32xf32>
    %79 = vector.extract_strided_slice %77 {offsets = [0, 32], sizes = [2, 32], strides = [1, 1]} : vector<2x128xf32> to vector<2x32xf32>
    %80 = vector.extract_strided_slice %77 {offsets = [0, 96], sizes = [2, 32], strides = [1, 1]} : vector<2x128xf32> to vector<2x32xf32>
    %81 = vector.extract_strided_slice %72 {offsets = [0, 64], sizes = [2, 32], strides = [1, 1]} : vector<2x128xf32> to vector<2x32xf32>
    %82 = math.tanh %81 : vector<2x32xf32>
    %83 = arith.mulf %79, %27 : vector<2x32xf32>
    %84 = arith.mulf %78, %82 : vector<2x32xf32>
    %85 = arith.addf %83, %84 : vector<2x32xf32>
    %86 = math.tanh %85 : vector<2x32xf32>
    %87 = arith.mulf %80, %86 : vector<2x32xf32>
    %cst_40 = arith.constant 0.000000e+00 : f32
    %88 = vector.shape_cast %68 : vector<2x1xi1> to vector<2x1xi1>
    %89 = vector.broadcast %88 : vector<2x1xi1> to vector<2x32xi1>
    %90 = vector.broadcast %cst_40 : f32 to vector<2x32xf32>
    %91 = arith.select %89, %87, %90 : vector<2x32xi1>, vector<2x32xf32>
    %c0_41 = arith.constant 0 : index
    %c7 = arith.constant 7 : index
    %c0_42 = arith.constant 0 : index
    %92 = vector.load %arg11[%c0_41, %c7, %c0_42] : memref<2x8x32xf32, #tpu.memory_space<vmem>>, vector<2x1x32xf32>
    %93 = vector.shape_cast %92 : vector<2x1x32xf32> to vector<2x32xf32>
    %94 = vector.shape_cast %91 : vector<2x32xf32> to vector<2x1x32xf32>
    tpu.vector_store %arg11[%c0_41, %c7, %c0_42], %94 {strides = array<i32>} : memref<2x8x32xf32, #tpu.memory_space<vmem>>, vector<2x1x32xf32>,
    %95 = vector.shape_cast %68 : vector<2x1xi1> to vector<2x1xi1>
    %96 = vector.broadcast %95 : vector<2x1xi1> to vector<2x32xi1>
    %97 = arith.select %96, %87, %26 : vector<2x32xi1>, vector<2x32xf32>
    %98 = vector.shape_cast %68 : vector<2x1xi1> to vector<2x1xi1>
    %99 = vector.broadcast %98 : vector<2x1xi1> to vector<2x32xi1>
    %100 = arith.select %99, %85, %27 : vector<2x32xi1>, vector<2x32xf32>
    %c8_i32_43 = arith.constant 8 : i32
    %101 = arith.muli %arg0, %c8_i32_43 : i32
    %c1_i32 = arith.constant 1 : i32
    %102 = arith.addi %101, %c1_i32 : i32
    %103 = vector.broadcast %102 : i32 to vector<2x1xi32>
    %104 = arith.cmpi slt, %103, %3 : vector<2x1xi32>
    %105 = vector.extract_strided_slice %12 {offsets = [0, 1, 0], sizes = [2, 1, 128], strides = [1, 1, 1]} : vector<2x8x128xf32> to vector<2x1x128xf32>
    %106 = vector.shape_cast %105 : vector<2x1x128xf32> to vector<2x128xf32>
    %cst_44 = arith.constant dense<0.000000e+00> : vector<2x128xf32>
    %107 = tpu.matmul %60, %22, %cst_44 {dimension_numbers = #tpu.dot_dimension_numbers<[1], [0], [0], [1], [0, 0, 1, 1], [], []>} : vector<2x32xf32>, vector<32x128xf32>, vector<2x128xf32> -> vector<2x128xf32>
    %108 = arith.addf %106, %107 : vector<2x128xf32>
    %109 = arith.negf %108 : vector<2x128xf32>
    %110 = math.exp %109 : vector<2x128xf32>
    %cst_45 = arith.constant 1.000000e+00 : f32
    %111 = vector.broadcast %cst_45 : f32 to vector<2x128xf32>
    %112 = arith.addf %111, %110 : vector<2x128xf32>
    %113 = arith.divf %111, %112 : vector<2x128xf32>
    %114 = vector.extract_strided_slice %113 {offsets = [0, 0], sizes = [2, 32], strides = [1, 1]} : vector<2x128xf32> to vector<2x32xf32>
    %115 = vector.extract_strided_slice %113 {offsets = [0, 32], sizes = [2, 32], strides = [1, 1]} : vector<2x128xf32> to vector<2x32xf32>
    %116 = vector.extract_strided_slice %113 {offsets = [0, 96], sizes = [2, 32], strides = [1, 1]} : vector<2x128xf32> to vector<2x32xf32>
    %117 = vector.extract_strided_slice %108 {offsets = [0, 64], sizes = [2, 32], strides = [1, 1]} : vector<2x128xf32> to vector<2x32xf32>
    %118 = math.tanh %117 : vector<2x32xf32>
    %119 = arith.mulf %115, %63 : vector<2x32xf32>
    %120 = arith.mulf %114, %118 : vector<2x32xf32>
    %121 = arith.addf %119, %120 : vector<2x32xf32>
    %122 = math.tanh %121 : vector<2x32xf32>
    %123 = arith.mulf %116, %122 : vector<2x32xf32>
    %cst_46 = arith.constant 0.000000e+00 : f32
    %124 = vector.shape_cast %104 : vector<2x1xi1> to vector<2x1xi1>
    %125 = vector.broadcast %124 : vector<2x1xi1> to vector<2x32xi1>
    %126 = vector.broadcast %cst_46 : f32 to vector<2x32xf32>
    %127 = arith.select %125, %123, %126 : vector<2x32xi1>, vector<2x32xf32>
    %c0_47 = arith.constant 0 : index
    %c1 = arith.constant 1 : index
    %c0_48 = arith.constant 0 : index
    %128 = vector.load %arg10[%c0_47, %c1, %c0_48] : memref<2x8x32xf32, #tpu.memory_space<vmem>>, vector<2x1x32xf32>
    %129 = vector.shape_cast %128 : vector<2x1x32xf32> to vector<2x32xf32>
    %130 = vector.shape_cast %127 : vector<2x32xf32> to vector<2x1x32xf32>
    tpu.vector_store %arg10[%c0_47, %c1, %c0_48], %130 {strides = array<i32>} : memref<2x8x32xf32, #tpu.memory_space<vmem>>, vector<2x1x32xf32>,
    %131 = vector.shape_cast %104 : vector<2x1xi1> to vector<2x1xi1>
    %132 = vector.broadcast %131 : vector<2x1xi1> to vector<2x32xi1>
    %133 = arith.select %132, %123, %60 : vector<2x32xi1>, vector<2x32xf32>
    %134 = vector.shape_cast %104 : vector<2x1xi1> to vector<2x1xi1>
    %135 = vector.broadcast %134 : vector<2x1xi1> to vector<2x32xi1>
    %136 = arith.select %135, %121, %63 : vector<2x32xi1>, vector<2x32xf32>
    %c0_i32_49 = arith.constant 0 : i32
    %137 = arith.subi %c0_i32_49, %arg0 : i32
    %c8_i32_50 = arith.constant 8 : i32
    %138 = arith.muli %137, %c8_i32_50 : i32
    %c6_i32 = arith.constant 6 : i32
    %139 = arith.addi %138, %c6_i32 : i32
    %140 = vector.broadcast %139 : i32 to vector<2x1xi32>
    %141 = arith.cmpi slt, %140, %3 : vector<2x1xi32>
    %142 = vector.extract_strided_slice %21 {offsets = [0, 6, 0], sizes = [2, 1, 128], strides = [1, 1, 1]} : vector<2x8x128xf32> to vector<2x1x128xf32>
    %143 = vector.shape_cast %142 : vector<2x1x128xf32> to vector<2x128xf32>
    %cst_51 = arith.constant dense<0.000000e+00> : vector<2x128xf32>
    %144 = tpu.matmul %97, %23, %cst_51 {dimension_numbers = #tpu.dot_dimension_numbers<[1], [0], [0], [1], [0, 0, 1, 1], [], []>} : vector<2x32xf32>, vector<32x128xf32>, vector<2x128xf32> -> vector<2x128xf32>
    %145 = arith.addf %143, %144 : vector<2x128xf32>
    %146 = arith.negf %145 : vector<2x128xf32>
    %147 = math.exp %146 : vector<2x128xf32>
    %cst_52 = arith.constant 1.000000e+00 : f32
    %148 = vector.broadcast %cst_52 : f32 to vector<2x128xf32>
    %149 = arith.addf %148, %147 : vector<2x128xf32>
    %150 = arith.divf %148, %149 : vector<2x128xf32>
    %151 = vector.extract_strided_slice %150 {offsets = [0, 0], sizes = [2, 32], strides = [1, 1]} : vector<2x128xf32> to vector<2x32xf32>
    %152 = vector.extract_strided_slice %150 {offsets = [0, 32], sizes = [2, 32], strides = [1, 1]} : vector<2x128xf32> to vector<2x32xf32>
    %153 = vector.extract_strided_slice %150 {offsets = [0, 96], sizes = [2, 32], strides = [1, 1]} : vector<2x128xf32> to vector<2x32xf32>
    %154 = vector.extract_strided_slice %145 {offsets = [0, 64], sizes = [2, 32], strides = [1, 1]} : vector<2x128xf32> to vector<2x32xf32>
    %155 = math.tanh %154 : vector<2x32xf32>
    %156 = arith.mulf %152, %100 : vector<2x32xf32>
    %157 = arith.mulf %151, %155 : vector<2x32xf32>
    %158 = arith.addf %156, %157 : vector<2x32xf32>
    %159 = math.tanh %158 : vector<2x32xf32>
    %160 = arith.mulf %153, %159 : vector<2x32xf32>
    %cst_53 = arith.constant 0.000000e+00 : f32
    %161 = vector.shape_cast %141 : vector<2x1xi1> to vector<2x1xi1>
    %162 = vector.broadcast %161 : vector<2x1xi1> to vector<2x32xi1>
    %163 = vector.broadcast %cst_53 : f32 to vector<2x32xf32>
    %164 = arith.select %162, %160, %163 : vector<2x32xi1>, vector<2x32xf32>
    %c0_54 = arith.constant 0 : index
    %c6 = arith.constant 6 : index
    %c0_55 = arith.constant 0 : index
    %165 = vector.load %arg11[%c0_54, %c6, %c0_55] : memref<2x8x32xf32, #tpu.memory_space<vmem>>, vector<2x1x32xf32>
    %166 = vector.shape_cast %165 : vector<2x1x32xf32> to vector<2x32xf32>
    %167 = vector.shape_cast %164 : vector<2x32xf32> to vector<2x1x32xf32>
    tpu.vector_store %arg11[%c0_54, %c6, %c0_55], %167 {strides = array<i32>} : memref<2x8x32xf32, #tpu.memory_space<vmem>>, vector<2x1x32xf32>,
    %168 = vector.shape_cast %141 : vector<2x1xi1> to vector<2x1xi1>
    %169 = vector.broadcast %168 : vector<2x1xi1> to vector<2x32xi1>
    %170 = arith.select %169, %160, %97 : vector<2x32xi1>, vector<2x32xf32>
    %171 = vector.shape_cast %141 : vector<2x1xi1> to vector<2x1xi1>
    %172 = vector.broadcast %171 : vector<2x1xi1> to vector<2x32xi1>
    %173 = arith.select %172, %158, %100 : vector<2x32xi1>, vector<2x32xf32>
    %c8_i32_56 = arith.constant 8 : i32
    %174 = arith.muli %arg0, %c8_i32_56 : i32
    %c2_i32 = arith.constant 2 : i32
    %175 = arith.addi %174, %c2_i32 : i32
    %176 = vector.broadcast %175 : i32 to vector<2x1xi32>
    %177 = arith.cmpi slt, %176, %3 : vector<2x1xi32>
    %178 = vector.extract_strided_slice %12 {offsets = [0, 2, 0], sizes = [2, 1, 128], strides = [1, 1, 1]} : vector<2x8x128xf32> to vector<2x1x128xf32>
    %179 = vector.shape_cast %178 : vector<2x1x128xf32> to vector<2x128xf32>
    %cst_57 = arith.constant dense<0.000000e+00> : vector<2x128xf32>
    %180 = tpu.matmul %133, %22, %cst_57 {dimension_numbers = #tpu.dot_dimension_numbers<[1], [0], [0], [1], [0, 0, 1, 1], [], []>} : vector<2x32xf32>, vector<32x128xf32>, vector<2x128xf32> -> vector<2x128xf32>
    %181 = arith.addf %179, %180 : vector<2x128xf32>
    %182 = arith.negf %181 : vector<2x128xf32>
    %183 = math.exp %182 : vector<2x128xf32>
    %cst_58 = arith.constant 1.000000e+00 : f32
    %184 = vector.broadcast %cst_58 : f32 to vector<2x128xf32>
    %185 = arith.addf %184, %183 : vector<2x128xf32>
    %186 = arith.divf %184, %185 : vector<2x128xf32>
    %187 = vector.extract_strided_slice %186 {offsets = [0, 0], sizes = [2, 32], strides = [1, 1]} : vector<2x128xf32> to vector<2x32xf32>
    %188 = vector.extract_strided_slice %186 {offsets = [0, 32], sizes = [2, 32], strides = [1, 1]} : vector<2x128xf32> to vector<2x32xf32>
    %189 = vector.extract_strided_slice %186 {offsets = [0, 96], sizes = [2, 32], strides = [1, 1]} : vector<2x128xf32> to vector<2x32xf32>
    %190 = vector.extract_strided_slice %181 {offsets = [0, 64], sizes = [2, 32], strides = [1, 1]} : vector<2x128xf32> to vector<2x32xf32>
    %191 = math.tanh %190 : vector<2x32xf32>
    %192 = arith.mulf %188, %136 : vector<2x32xf32>
    %193 = arith.mulf %187, %191 : vector<2x32xf32>
    %194 = arith.addf %192, %193 : vector<2x32xf32>
    %195 = math.tanh %194 : vector<2x32xf32>
    %196 = arith.mulf %189, %195 : vector<2x32xf32>
    %cst_59 = arith.constant 0.000000e+00 : f32
    %197 = vector.shape_cast %177 : vector<2x1xi1> to vector<2x1xi1>
    %198 = vector.broadcast %197 : vector<2x1xi1> to vector<2x32xi1>
    %199 = vector.broadcast %cst_59 : f32 to vector<2x32xf32>
    %200 = arith.select %198, %196, %199 : vector<2x32xi1>, vector<2x32xf32>
    %c0_60 = arith.constant 0 : index
    %c2 = arith.constant 2 : index
    %c0_61 = arith.constant 0 : index
    %201 = vector.load %arg10[%c0_60, %c2, %c0_61] : memref<2x8x32xf32, #tpu.memory_space<vmem>>, vector<2x1x32xf32>
    %202 = vector.shape_cast %201 : vector<2x1x32xf32> to vector<2x32xf32>
    %203 = vector.shape_cast %200 : vector<2x32xf32> to vector<2x1x32xf32>
    tpu.vector_store %arg10[%c0_60, %c2, %c0_61], %203 {strides = array<i32>} : memref<2x8x32xf32, #tpu.memory_space<vmem>>, vector<2x1x32xf32>,
    %204 = vector.shape_cast %177 : vector<2x1xi1> to vector<2x1xi1>
    %205 = vector.broadcast %204 : vector<2x1xi1> to vector<2x32xi1>
    %206 = arith.select %205, %196, %133 : vector<2x32xi1>, vector<2x32xf32>
    %207 = vector.shape_cast %177 : vector<2x1xi1> to vector<2x1xi1>
    %208 = vector.broadcast %207 : vector<2x1xi1> to vector<2x32xi1>
    %209 = arith.select %208, %194, %136 : vector<2x32xi1>, vector<2x32xf32>
    %c0_i32_62 = arith.constant 0 : i32
    %210 = arith.subi %c0_i32_62, %arg0 : i32
    %c8_i32_63 = arith.constant 8 : i32
    %211 = arith.muli %210, %c8_i32_63 : i32
    %c5_i32 = arith.constant 5 : i32
    %212 = arith.addi %211, %c5_i32 : i32
    %213 = vector.broadcast %212 : i32 to vector<2x1xi32>
    %214 = arith.cmpi slt, %213, %3 : vector<2x1xi32>
    %215 = vector.extract_strided_slice %21 {offsets = [0, 5, 0], sizes = [2, 1, 128], strides = [1, 1, 1]} : vector<2x8x128xf32> to vector<2x1x128xf32>
    %216 = vector.shape_cast %215 : vector<2x1x128xf32> to vector<2x128xf32>
    %cst_64 = arith.constant dense<0.000000e+00> : vector<2x128xf32>
    %217 = tpu.matmul %170, %23, %cst_64 {dimension_numbers = #tpu.dot_dimension_numbers<[1], [0], [0], [1], [0, 0, 1, 1], [], []>} : vector<2x32xf32>, vector<32x128xf32>, vector<2x128xf32> -> vector<2x128xf32>
    %218 = arith.addf %216, %217 : vector<2x128xf32>
    %219 = arith.negf %218 : vector<2x128xf32>
    %220 = math.exp %219 : vector<2x128xf32>
    %cst_65 = arith.constant 1.000000e+00 : f32
    %221 = vector.broadcast %cst_65 : f32 to vector<2x128xf32>
    %222 = arith.addf %221, %220 : vector<2x128xf32>
    %223 = arith.divf %221, %222 : vector<2x128xf32>
    %224 = vector.extract_strided_slice %223 {offsets = [0, 0], sizes = [2, 32], strides = [1, 1]} : vector<2x128xf32> to vector<2x32xf32>
    %225 = vector.extract_strided_slice %223 {offsets = [0, 32], sizes = [2, 32], strides = [1, 1]} : vector<2x128xf32> to vector<2x32xf32>
    %226 = vector.extract_strided_slice %223 {offsets = [0, 96], sizes = [2, 32], strides = [1, 1]} : vector<2x128xf32> to vector<2x32xf32>
    %227 = vector.extract_strided_slice %218 {offsets = [0, 64], sizes = [2, 32], strides = [1, 1]} : vector<2x128xf32> to vector<2x32xf32>
    %228 = math.tanh %227 : vector<2x32xf32>
    %229 = arith.mulf %225, %173 : vector<2x32xf32>
    %230 = arith.mulf %224, %228 : vector<2x32xf32>
    %231 = arith.addf %229, %230 : vector<2x32xf32>
    %232 = math.tanh %231 : vector<2x32xf32>
    %233 = arith.mulf %226, %232 : vector<2x32xf32>
    %cst_66 = arith.constant 0.000000e+00 : f32
    %234 = vector.shape_cast %214 : vector<2x1xi1> to vector<2x1xi1>
    %235 = vector.broadcast %234 : vector<2x1xi1> to vector<2x32xi1>
    %236 = vector.broadcast %cst_66 : f32 to vector<2x32xf32>
    %237 = arith.select %235, %233, %236 : vector<2x32xi1>, vector<2x32xf32>
    %c0_67 = arith.constant 0 : index
    %c5 = arith.constant 5 : index
    %c0_68 = arith.constant 0 : index
    %238 = vector.load %arg11[%c0_67, %c5, %c0_68] : memref<2x8x32xf32, #tpu.memory_space<vmem>>, vector<2x1x32xf32>
    %239 = vector.shape_cast %238 : vector<2x1x32xf32> to vector<2x32xf32>
    %240 = vector.shape_cast %237 : vector<2x32xf32> to vector<2x1x32xf32>
    tpu.vector_store %arg11[%c0_67, %c5, %c0_68], %240 {strides = array<i32>} : memref<2x8x32xf32, #tpu.memory_space<vmem>>, vector<2x1x32xf32>,
    %241 = vector.shape_cast %214 : vector<2x1xi1> to vector<2x1xi1>
    %242 = vector.broadcast %241 : vector<2x1xi1> to vector<2x32xi1>
    %243 = arith.select %242, %233, %170 : vector<2x32xi1>, vector<2x32xf32>
    %244 = vector.shape_cast %214 : vector<2x1xi1> to vector<2x1xi1>
    %245 = vector.broadcast %244 : vector<2x1xi1> to vector<2x32xi1>
    %246 = arith.select %245, %231, %173 : vector<2x32xi1>, vector<2x32xf32>
    %c8_i32_69 = arith.constant 8 : i32
    %247 = arith.muli %arg0, %c8_i32_69 : i32
    %c3_i32 = arith.constant 3 : i32
    %248 = arith.addi %247, %c3_i32 : i32
    %249 = vector.broadcast %248 : i32 to vector<2x1xi32>
    %250 = arith.cmpi slt, %249, %3 : vector<2x1xi32>
    %251 = vector.extract_strided_slice %12 {offsets = [0, 3, 0], sizes = [2, 1, 128], strides = [1, 1, 1]} : vector<2x8x128xf32> to vector<2x1x128xf32>
    %252 = vector.shape_cast %251 : vector<2x1x128xf32> to vector<2x128xf32>
    %cst_70 = arith.constant dense<0.000000e+00> : vector<2x128xf32>
    %253 = tpu.matmul %206, %22, %cst_70 {dimension_numbers = #tpu.dot_dimension_numbers<[1], [0], [0], [1], [0, 0, 1, 1], [], []>} : vector<2x32xf32>, vector<32x128xf32>, vector<2x128xf32> -> vector<2x128xf32>
    %254 = arith.addf %252, %253 : vector<2x128xf32>
    %255 = arith.negf %254 : vector<2x128xf32>
    %256 = math.exp %255 : vector<2x128xf32>
    %cst_71 = arith.constant 1.000000e+00 : f32
    %257 = vector.broadcast %cst_71 : f32 to vector<2x128xf32>
    %258 = arith.addf %257, %256 : vector<2x128xf32>
    %259 = arith.divf %257, %258 : vector<2x128xf32>
    %260 = vector.extract_strided_slice %259 {offsets = [0, 0], sizes = [2, 32], strides = [1, 1]} : vector<2x128xf32> to vector<2x32xf32>
    %261 = vector.extract_strided_slice %259 {offsets = [0, 32], sizes = [2, 32], strides = [1, 1]} : vector<2x128xf32> to vector<2x32xf32>
    %262 = vector.extract_strided_slice %259 {offsets = [0, 96], sizes = [2, 32], strides = [1, 1]} : vector<2x128xf32> to vector<2x32xf32>
    %263 = vector.extract_strided_slice %254 {offsets = [0, 64], sizes = [2, 32], strides = [1, 1]} : vector<2x128xf32> to vector<2x32xf32>
    %264 = math.tanh %263 : vector<2x32xf32>
    %265 = arith.mulf %261, %209 : vector<2x32xf32>
    %266 = arith.mulf %260, %264 : vector<2x32xf32>
    %267 = arith.addf %265, %266 : vector<2x32xf32>
    %268 = math.tanh %267 : vector<2x32xf32>
    %269 = arith.mulf %262, %268 : vector<2x32xf32>
    %cst_72 = arith.constant 0.000000e+00 : f32
    %270 = vector.shape_cast %250 : vector<2x1xi1> to vector<2x1xi1>
    %271 = vector.broadcast %270 : vector<2x1xi1> to vector<2x32xi1>
    %272 = vector.broadcast %cst_72 : f32 to vector<2x32xf32>
    %273 = arith.select %271, %269, %272 : vector<2x32xi1>, vector<2x32xf32>
    %c0_73 = arith.constant 0 : index
    %c3 = arith.constant 3 : index
    %c0_74 = arith.constant 0 : index
    %274 = vector.load %arg10[%c0_73, %c3, %c0_74] : memref<2x8x32xf32, #tpu.memory_space<vmem>>, vector<2x1x32xf32>
    %275 = vector.shape_cast %274 : vector<2x1x32xf32> to vector<2x32xf32>
    %276 = vector.shape_cast %273 : vector<2x32xf32> to vector<2x1x32xf32>
    tpu.vector_store %arg10[%c0_73, %c3, %c0_74], %276 {strides = array<i32>} : memref<2x8x32xf32, #tpu.memory_space<vmem>>, vector<2x1x32xf32>,
    %277 = vector.shape_cast %250 : vector<2x1xi1> to vector<2x1xi1>
    %278 = vector.broadcast %277 : vector<2x1xi1> to vector<2x32xi1>
    %279 = arith.select %278, %269, %206 : vector<2x32xi1>, vector<2x32xf32>
    %280 = vector.shape_cast %250 : vector<2x1xi1> to vector<2x1xi1>
    %281 = vector.broadcast %280 : vector<2x1xi1> to vector<2x32xi1>
    %282 = arith.select %281, %267, %209 : vector<2x32xi1>, vector<2x32xf32>
    %c0_i32_75 = arith.constant 0 : i32
    %283 = arith.subi %c0_i32_75, %arg0 : i32
    %c8_i32_76 = arith.constant 8 : i32
    %284 = arith.muli %283, %c8_i32_76 : i32
    %c4_i32 = arith.constant 4 : i32
    %285 = arith.addi %284, %c4_i32 : i32
    %286 = vector.broadcast %285 : i32 to vector<2x1xi32>
    %287 = arith.cmpi slt, %286, %3 : vector<2x1xi32>
    %288 = vector.extract_strided_slice %21 {offsets = [0, 4, 0], sizes = [2, 1, 128], strides = [1, 1, 1]} : vector<2x8x128xf32> to vector<2x1x128xf32>
    %289 = vector.shape_cast %288 : vector<2x1x128xf32> to vector<2x128xf32>
    %cst_77 = arith.constant dense<0.000000e+00> : vector<2x128xf32>
    %290 = tpu.matmul %243, %23, %cst_77 {dimension_numbers = #tpu.dot_dimension_numbers<[1], [0], [0], [1], [0, 0, 1, 1], [], []>} : vector<2x32xf32>, vector<32x128xf32>, vector<2x128xf32> -> vector<2x128xf32>
    %291 = arith.addf %289, %290 : vector<2x128xf32>
    %292 = arith.negf %291 : vector<2x128xf32>
    %293 = math.exp %292 : vector<2x128xf32>
    %cst_78 = arith.constant 1.000000e+00 : f32
    %294 = vector.broadcast %cst_78 : f32 to vector<2x128xf32>
    %295 = arith.addf %294, %293 : vector<2x128xf32>
    %296 = arith.divf %294, %295 : vector<2x128xf32>
    %297 = vector.extract_strided_slice %296 {offsets = [0, 0], sizes = [2, 32], strides = [1, 1]} : vector<2x128xf32> to vector<2x32xf32>
    %298 = vector.extract_strided_slice %296 {offsets = [0, 32], sizes = [2, 32], strides = [1, 1]} : vector<2x128xf32> to vector<2x32xf32>
    %299 = vector.extract_strided_slice %296 {offsets = [0, 96], sizes = [2, 32], strides = [1, 1]} : vector<2x128xf32> to vector<2x32xf32>
    %300 = vector.extract_strided_slice %291 {offsets = [0, 64], sizes = [2, 32], strides = [1, 1]} : vector<2x128xf32> to vector<2x32xf32>
    %301 = math.tanh %300 : vector<2x32xf32>
    %302 = arith.mulf %298, %246 : vector<2x32xf32>
    %303 = arith.mulf %297, %301 : vector<2x32xf32>
    %304 = arith.addf %302, %303 : vector<2x32xf32>
    %305 = math.tanh %304 : vector<2x32xf32>
    %306 = arith.mulf %299, %305 : vector<2x32xf32>
    %cst_79 = arith.constant 0.000000e+00 : f32
    %307 = vector.shape_cast %287 : vector<2x1xi1> to vector<2x1xi1>
    %308 = vector.broadcast %307 : vector<2x1xi1> to vector<2x32xi1>
    %309 = vector.broadcast %cst_79 : f32 to vector<2x32xf32>
    %310 = arith.select %308, %306, %309 : vector<2x32xi1>, vector<2x32xf32>
    %c0_80 = arith.constant 0 : index
    %c4 = arith.constant 4 : index
    %c0_81 = arith.constant 0 : index
    %311 = vector.load %arg11[%c0_80, %c4, %c0_81] : memref<2x8x32xf32, #tpu.memory_space<vmem>>, vector<2x1x32xf32>
    %312 = vector.shape_cast %311 : vector<2x1x32xf32> to vector<2x32xf32>
    %313 = vector.shape_cast %310 : vector<2x32xf32> to vector<2x1x32xf32>
    tpu.vector_store %arg11[%c0_80, %c4, %c0_81], %313 {strides = array<i32>} : memref<2x8x32xf32, #tpu.memory_space<vmem>>, vector<2x1x32xf32>,
    %314 = vector.shape_cast %287 : vector<2x1xi1> to vector<2x1xi1>
    %315 = vector.broadcast %314 : vector<2x1xi1> to vector<2x32xi1>
    %316 = arith.select %315, %306, %243 : vector<2x32xi1>, vector<2x32xf32>
    %317 = vector.shape_cast %287 : vector<2x1xi1> to vector<2x1xi1>
    %318 = vector.broadcast %317 : vector<2x1xi1> to vector<2x32xi1>
    %319 = arith.select %318, %304, %246 : vector<2x32xi1>, vector<2x32xf32>
    %c8_i32_82 = arith.constant 8 : i32
    %320 = arith.muli %arg0, %c8_i32_82 : i32
    %c4_i32_83 = arith.constant 4 : i32
    %321 = arith.addi %320, %c4_i32_83 : i32
    %322 = vector.broadcast %321 : i32 to vector<2x1xi32>
    %323 = arith.cmpi slt, %322, %3 : vector<2x1xi32>
    %324 = vector.extract_strided_slice %12 {offsets = [0, 4, 0], sizes = [2, 1, 128], strides = [1, 1, 1]} : vector<2x8x128xf32> to vector<2x1x128xf32>
    %325 = vector.shape_cast %324 : vector<2x1x128xf32> to vector<2x128xf32>
    %cst_84 = arith.constant dense<0.000000e+00> : vector<2x128xf32>
    %326 = tpu.matmul %279, %22, %cst_84 {dimension_numbers = #tpu.dot_dimension_numbers<[1], [0], [0], [1], [0, 0, 1, 1], [], []>} : vector<2x32xf32>, vector<32x128xf32>, vector<2x128xf32> -> vector<2x128xf32>
    %327 = arith.addf %325, %326 : vector<2x128xf32>
    %328 = arith.negf %327 : vector<2x128xf32>
    %329 = math.exp %328 : vector<2x128xf32>
    %cst_85 = arith.constant 1.000000e+00 : f32
    %330 = vector.broadcast %cst_85 : f32 to vector<2x128xf32>
    %331 = arith.addf %330, %329 : vector<2x128xf32>
    %332 = arith.divf %330, %331 : vector<2x128xf32>
    %333 = vector.extract_strided_slice %332 {offsets = [0, 0], sizes = [2, 32], strides = [1, 1]} : vector<2x128xf32> to vector<2x32xf32>
    %334 = vector.extract_strided_slice %332 {offsets = [0, 32], sizes = [2, 32], strides = [1, 1]} : vector<2x128xf32> to vector<2x32xf32>
    %335 = vector.extract_strided_slice %332 {offsets = [0, 96], sizes = [2, 32], strides = [1, 1]} : vector<2x128xf32> to vector<2x32xf32>
    %336 = vector.extract_strided_slice %327 {offsets = [0, 64], sizes = [2, 32], strides = [1, 1]} : vector<2x128xf32> to vector<2x32xf32>
    %337 = math.tanh %336 : vector<2x32xf32>
    %338 = arith.mulf %334, %282 : vector<2x32xf32>
    %339 = arith.mulf %333, %337 : vector<2x32xf32>
    %340 = arith.addf %338, %339 : vector<2x32xf32>
    %341 = math.tanh %340 : vector<2x32xf32>
    %342 = arith.mulf %335, %341 : vector<2x32xf32>
    %cst_86 = arith.constant 0.000000e+00 : f32
    %343 = vector.shape_cast %323 : vector<2x1xi1> to vector<2x1xi1>
    %344 = vector.broadcast %343 : vector<2x1xi1> to vector<2x32xi1>
    %345 = vector.broadcast %cst_86 : f32 to vector<2x32xf32>
    %346 = arith.select %344, %342, %345 : vector<2x32xi1>, vector<2x32xf32>
    %c0_87 = arith.constant 0 : index
    %c4_88 = arith.constant 4 : index
    %c0_89 = arith.constant 0 : index
    %347 = vector.load %arg10[%c0_87, %c4_88, %c0_89] : memref<2x8x32xf32, #tpu.memory_space<vmem>>, vector<2x1x32xf32>
    %348 = vector.shape_cast %347 : vector<2x1x32xf32> to vector<2x32xf32>
    %349 = vector.shape_cast %346 : vector<2x32xf32> to vector<2x1x32xf32>
    tpu.vector_store %arg10[%c0_87, %c4_88, %c0_89], %349 {strides = array<i32>} : memref<2x8x32xf32, #tpu.memory_space<vmem>>, vector<2x1x32xf32>,
    %350 = vector.shape_cast %323 : vector<2x1xi1> to vector<2x1xi1>
    %351 = vector.broadcast %350 : vector<2x1xi1> to vector<2x32xi1>
    %352 = arith.select %351, %342, %279 : vector<2x32xi1>, vector<2x32xf32>
    %353 = vector.shape_cast %323 : vector<2x1xi1> to vector<2x1xi1>
    %354 = vector.broadcast %353 : vector<2x1xi1> to vector<2x32xi1>
    %355 = arith.select %354, %340, %282 : vector<2x32xi1>, vector<2x32xf32>
    %c0_i32_90 = arith.constant 0 : i32
    %356 = arith.subi %c0_i32_90, %arg0 : i32
    %c8_i32_91 = arith.constant 8 : i32
    %357 = arith.muli %356, %c8_i32_91 : i32
    %c3_i32_92 = arith.constant 3 : i32
    %358 = arith.addi %357, %c3_i32_92 : i32
    %359 = vector.broadcast %358 : i32 to vector<2x1xi32>
    %360 = arith.cmpi slt, %359, %3 : vector<2x1xi32>
    %361 = vector.extract_strided_slice %21 {offsets = [0, 3, 0], sizes = [2, 1, 128], strides = [1, 1, 1]} : vector<2x8x128xf32> to vector<2x1x128xf32>
    %362 = vector.shape_cast %361 : vector<2x1x128xf32> to vector<2x128xf32>
    %cst_93 = arith.constant dense<0.000000e+00> : vector<2x128xf32>
    %363 = tpu.matmul %316, %23, %cst_93 {dimension_numbers = #tpu.dot_dimension_numbers<[1], [0], [0], [1], [0, 0, 1, 1], [], []>} : vector<2x32xf32>, vector<32x128xf32>, vector<2x128xf32> -> vector<2x128xf32>
    %364 = arith.addf %362, %363 : vector<2x128xf32>
    %365 = arith.negf %364 : vector<2x128xf32>
    %366 = math.exp %365 : vector<2x128xf32>
    %cst_94 = arith.constant 1.000000e+00 : f32
    %367 = vector.broadcast %cst_94 : f32 to vector<2x128xf32>
    %368 = arith.addf %367, %366 : vector<2x128xf32>
    %369 = arith.divf %367, %368 : vector<2x128xf32>
    %370 = vector.extract_strided_slice %369 {offsets = [0, 0], sizes = [2, 32], strides = [1, 1]} : vector<2x128xf32> to vector<2x32xf32>
    %371 = vector.extract_strided_slice %369 {offsets = [0, 32], sizes = [2, 32], strides = [1, 1]} : vector<2x128xf32> to vector<2x32xf32>
    %372 = vector.extract_strided_slice %369 {offsets = [0, 96], sizes = [2, 32], strides = [1, 1]} : vector<2x128xf32> to vector<2x32xf32>
    %373 = vector.extract_strided_slice %364 {offsets = [0, 64], sizes = [2, 32], strides = [1, 1]} : vector<2x128xf32> to vector<2x32xf32>
    %374 = math.tanh %373 : vector<2x32xf32>
    %375 = arith.mulf %371, %319 : vector<2x32xf32>
    %376 = arith.mulf %370, %374 : vector<2x32xf32>
    %377 = arith.addf %375, %376 : vector<2x32xf32>
    %378 = math.tanh %377 : vector<2x32xf32>
    %379 = arith.mulf %372, %378 : vector<2x32xf32>
    %cst_95 = arith.constant 0.000000e+00 : f32
    %380 = vector.shape_cast %360 : vector<2x1xi1> to vector<2x1xi1>
    %381 = vector.broadcast %380 : vector<2x1xi1> to vector<2x32xi1>
    %382 = vector.broadcast %cst_95 : f32 to vector<2x32xf32>
    %383 = arith.select %381, %379, %382 : vector<2x32xi1>, vector<2x32xf32>
    %c0_96 = arith.constant 0 : index
    %c3_97 = arith.constant 3 : index
    %c0_98 = arith.constant 0 : index
    %384 = vector.load %arg11[%c0_96, %c3_97, %c0_98] : memref<2x8x32xf32, #tpu.memory_space<vmem>>, vector<2x1x32xf32>
    %385 = vector.shape_cast %384 : vector<2x1x32xf32> to vector<2x32xf32>
    %386 = vector.shape_cast %383 : vector<2x32xf32> to vector<2x1x32xf32>
    tpu.vector_store %arg11[%c0_96, %c3_97, %c0_98], %386 {strides = array<i32>} : memref<2x8x32xf32, #tpu.memory_space<vmem>>, vector<2x1x32xf32>,
    %387 = vector.shape_cast %360 : vector<2x1xi1> to vector<2x1xi1>
    %388 = vector.broadcast %387 : vector<2x1xi1> to vector<2x32xi1>
    %389 = arith.select %388, %379, %316 : vector<2x32xi1>, vector<2x32xf32>
    %390 = vector.shape_cast %360 : vector<2x1xi1> to vector<2x1xi1>
    %391 = vector.broadcast %390 : vector<2x1xi1> to vector<2x32xi1>
    %392 = arith.select %391, %377, %319 : vector<2x32xi1>, vector<2x32xf32>
    %c8_i32_99 = arith.constant 8 : i32
    %393 = arith.muli %arg0, %c8_i32_99 : i32
    %c5_i32_100 = arith.constant 5 : i32
    %394 = arith.addi %393, %c5_i32_100 : i32
    %395 = vector.broadcast %394 : i32 to vector<2x1xi32>
    %396 = arith.cmpi slt, %395, %3 : vector<2x1xi32>
    %397 = vector.extract_strided_slice %12 {offsets = [0, 5, 0], sizes = [2, 1, 128], strides = [1, 1, 1]} : vector<2x8x128xf32> to vector<2x1x128xf32>
    %398 = vector.shape_cast %397 : vector<2x1x128xf32> to vector<2x128xf32>
    %cst_101 = arith.constant dense<0.000000e+00> : vector<2x128xf32>
    %399 = tpu.matmul %352, %22, %cst_101 {dimension_numbers = #tpu.dot_dimension_numbers<[1], [0], [0], [1], [0, 0, 1, 1], [], []>} : vector<2x32xf32>, vector<32x128xf32>, vector<2x128xf32> -> vector<2x128xf32>
    %400 = arith.addf %398, %399 : vector<2x128xf32>
    %401 = arith.negf %400 : vector<2x128xf32>
    %402 = math.exp %401 : vector<2x128xf32>
    %cst_102 = arith.constant 1.000000e+00 : f32
    %403 = vector.broadcast %cst_102 : f32 to vector<2x128xf32>
    %404 = arith.addf %403, %402 : vector<2x128xf32>
    %405 = arith.divf %403, %404 : vector<2x128xf32>
    %406 = vector.extract_strided_slice %405 {offsets = [0, 0], sizes = [2, 32], strides = [1, 1]} : vector<2x128xf32> to vector<2x32xf32>
    %407 = vector.extract_strided_slice %405 {offsets = [0, 32], sizes = [2, 32], strides = [1, 1]} : vector<2x128xf32> to vector<2x32xf32>
    %408 = vector.extract_strided_slice %405 {offsets = [0, 96], sizes = [2, 32], strides = [1, 1]} : vector<2x128xf32> to vector<2x32xf32>
    %409 = vector.extract_strided_slice %400 {offsets = [0, 64], sizes = [2, 32], strides = [1, 1]} : vector<2x128xf32> to vector<2x32xf32>
    %410 = math.tanh %409 : vector<2x32xf32>
    %411 = arith.mulf %407, %355 : vector<2x32xf32>
    %412 = arith.mulf %406, %410 : vector<2x32xf32>
    %413 = arith.addf %411, %412 : vector<2x32xf32>
    %414 = math.tanh %413 : vector<2x32xf32>
    %415 = arith.mulf %408, %414 : vector<2x32xf32>
    %cst_103 = arith.constant 0.000000e+00 : f32
    %416 = vector.shape_cast %396 : vector<2x1xi1> to vector<2x1xi1>
    %417 = vector.broadcast %416 : vector<2x1xi1> to vector<2x32xi1>
    %418 = vector.broadcast %cst_103 : f32 to vector<2x32xf32>
    %419 = arith.select %417, %415, %418 : vector<2x32xi1>, vector<2x32xf32>
    %c0_104 = arith.constant 0 : index
    %c5_105 = arith.constant 5 : index
    %c0_106 = arith.constant 0 : index
    %420 = vector.load %arg10[%c0_104, %c5_105, %c0_106] : memref<2x8x32xf32, #tpu.memory_space<vmem>>, vector<2x1x32xf32>
    %421 = vector.shape_cast %420 : vector<2x1x32xf32> to vector<2x32xf32>
    %422 = vector.shape_cast %419 : vector<2x32xf32> to vector<2x1x32xf32>
    tpu.vector_store %arg10[%c0_104, %c5_105, %c0_106], %422 {strides = array<i32>} : memref<2x8x32xf32, #tpu.memory_space<vmem>>, vector<2x1x32xf32>,
    %423 = vector.shape_cast %396 : vector<2x1xi1> to vector<2x1xi1>
    %424 = vector.broadcast %423 : vector<2x1xi1> to vector<2x32xi1>
    %425 = arith.select %424, %415, %352 : vector<2x32xi1>, vector<2x32xf32>
    %426 = vector.shape_cast %396 : vector<2x1xi1> to vector<2x1xi1>
    %427 = vector.broadcast %426 : vector<2x1xi1> to vector<2x32xi1>
    %428 = arith.select %427, %413, %355 : vector<2x32xi1>, vector<2x32xf32>
    %c0_i32_107 = arith.constant 0 : i32
    %429 = arith.subi %c0_i32_107, %arg0 : i32
    %c8_i32_108 = arith.constant 8 : i32
    %430 = arith.muli %429, %c8_i32_108 : i32
    %c2_i32_109 = arith.constant 2 : i32
    %431 = arith.addi %430, %c2_i32_109 : i32
    %432 = vector.broadcast %431 : i32 to vector<2x1xi32>
    %433 = arith.cmpi slt, %432, %3 : vector<2x1xi32>
    %434 = vector.extract_strided_slice %21 {offsets = [0, 2, 0], sizes = [2, 1, 128], strides = [1, 1, 1]} : vector<2x8x128xf32> to vector<2x1x128xf32>
    %435 = vector.shape_cast %434 : vector<2x1x128xf32> to vector<2x128xf32>
    %cst_110 = arith.constant dense<0.000000e+00> : vector<2x128xf32>
    %436 = tpu.matmul %389, %23, %cst_110 {dimension_numbers = #tpu.dot_dimension_numbers<[1], [0], [0], [1], [0, 0, 1, 1], [], []>} : vector<2x32xf32>, vector<32x128xf32>, vector<2x128xf32> -> vector<2x128xf32>
    %437 = arith.addf %435, %436 : vector<2x128xf32>
    %438 = arith.negf %437 : vector<2x128xf32>
    %439 = math.exp %438 : vector<2x128xf32>
    %cst_111 = arith.constant 1.000000e+00 : f32
    %440 = vector.broadcast %cst_111 : f32 to vector<2x128xf32>
    %441 = arith.addf %440, %439 : vector<2x128xf32>
    %442 = arith.divf %440, %441 : vector<2x128xf32>
    %443 = vector.extract_strided_slice %442 {offsets = [0, 0], sizes = [2, 32], strides = [1, 1]} : vector<2x128xf32> to vector<2x32xf32>
    %444 = vector.extract_strided_slice %442 {offsets = [0, 32], sizes = [2, 32], strides = [1, 1]} : vector<2x128xf32> to vector<2x32xf32>
    %445 = vector.extract_strided_slice %442 {offsets = [0, 96], sizes = [2, 32], strides = [1, 1]} : vector<2x128xf32> to vector<2x32xf32>
    %446 = vector.extract_strided_slice %437 {offsets = [0, 64], sizes = [2, 32], strides = [1, 1]} : vector<2x128xf32> to vector<2x32xf32>
    %447 = math.tanh %446 : vector<2x32xf32>
    %448 = arith.mulf %444, %392 : vector<2x32xf32>
    %449 = arith.mulf %443, %447 : vector<2x32xf32>
    %450 = arith.addf %448, %449 : vector<2x32xf32>
    %451 = math.tanh %450 : vector<2x32xf32>
    %452 = arith.mulf %445, %451 : vector<2x32xf32>
    %cst_112 = arith.constant 0.000000e+00 : f32
    %453 = vector.shape_cast %433 : vector<2x1xi1> to vector<2x1xi1>
    %454 = vector.broadcast %453 : vector<2x1xi1> to vector<2x32xi1>
    %455 = vector.broadcast %cst_112 : f32 to vector<2x32xf32>
    %456 = arith.select %454, %452, %455 : vector<2x32xi1>, vector<2x32xf32>
    %c0_113 = arith.constant 0 : index
    %c2_114 = arith.constant 2 : index
    %c0_115 = arith.constant 0 : index
    %457 = vector.load %arg11[%c0_113, %c2_114, %c0_115] : memref<2x8x32xf32, #tpu.memory_space<vmem>>, vector<2x1x32xf32>
    %458 = vector.shape_cast %457 : vector<2x1x32xf32> to vector<2x32xf32>
    %459 = vector.shape_cast %456 : vector<2x32xf32> to vector<2x1x32xf32>
    tpu.vector_store %arg11[%c0_113, %c2_114, %c0_115], %459 {strides = array<i32>} : memref<2x8x32xf32, #tpu.memory_space<vmem>>, vector<2x1x32xf32>,
    %460 = vector.shape_cast %433 : vector<2x1xi1> to vector<2x1xi1>
    %461 = vector.broadcast %460 : vector<2x1xi1> to vector<2x32xi1>
    %462 = arith.select %461, %452, %389 : vector<2x32xi1>, vector<2x32xf32>
    %463 = vector.shape_cast %433 : vector<2x1xi1> to vector<2x1xi1>
    %464 = vector.broadcast %463 : vector<2x1xi1> to vector<2x32xi1>
    %465 = arith.select %464, %450, %392 : vector<2x32xi1>, vector<2x32xf32>
    %c8_i32_116 = arith.constant 8 : i32
    %466 = arith.muli %arg0, %c8_i32_116 : i32
    %c6_i32_117 = arith.constant 6 : i32
    %467 = arith.addi %466, %c6_i32_117 : i32
    %468 = vector.broadcast %467 : i32 to vector<2x1xi32>
    %469 = arith.cmpi slt, %468, %3 : vector<2x1xi32>
    %470 = vector.extract_strided_slice %12 {offsets = [0, 6, 0], sizes = [2, 1, 128], strides = [1, 1, 1]} : vector<2x8x128xf32> to vector<2x1x128xf32>
    %471 = vector.shape_cast %470 : vector<2x1x128xf32> to vector<2x128xf32>
    %cst_118 = arith.constant dense<0.000000e+00> : vector<2x128xf32>
    %472 = tpu.matmul %425, %22, %cst_118 {dimension_numbers = #tpu.dot_dimension_numbers<[1], [0], [0], [1], [0, 0, 1, 1], [], []>} : vector<2x32xf32>, vector<32x128xf32>, vector<2x128xf32> -> vector<2x128xf32>
    %473 = arith.addf %471, %472 : vector<2x128xf32>
    %474 = arith.negf %473 : vector<2x128xf32>
    %475 = math.exp %474 : vector<2x128xf32>
    %cst_119 = arith.constant 1.000000e+00 : f32
    %476 = vector.broadcast %cst_119 : f32 to vector<2x128xf32>
    %477 = arith.addf %476, %475 : vector<2x128xf32>
    %478 = arith.divf %476, %477 : vector<2x128xf32>
    %479 = vector.extract_strided_slice %478 {offsets = [0, 0], sizes = [2, 32], strides = [1, 1]} : vector<2x128xf32> to vector<2x32xf32>
    %480 = vector.extract_strided_slice %478 {offsets = [0, 32], sizes = [2, 32], strides = [1, 1]} : vector<2x128xf32> to vector<2x32xf32>
    %481 = vector.extract_strided_slice %478 {offsets = [0, 96], sizes = [2, 32], strides = [1, 1]} : vector<2x128xf32> to vector<2x32xf32>
    %482 = vector.extract_strided_slice %473 {offsets = [0, 64], sizes = [2, 32], strides = [1, 1]} : vector<2x128xf32> to vector<2x32xf32>
    %483 = math.tanh %482 : vector<2x32xf32>
    %484 = arith.mulf %480, %428 : vector<2x32xf32>
    %485 = arith.mulf %479, %483 : vector<2x32xf32>
    %486 = arith.addf %484, %485 : vector<2x32xf32>
    %487 = math.tanh %486 : vector<2x32xf32>
    %488 = arith.mulf %481, %487 : vector<2x32xf32>
    %cst_120 = arith.constant 0.000000e+00 : f32
    %489 = vector.shape_cast %469 : vector<2x1xi1> to vector<2x1xi1>
    %490 = vector.broadcast %489 : vector<2x1xi1> to vector<2x32xi1>
    %491 = vector.broadcast %cst_120 : f32 to vector<2x32xf32>
    %492 = arith.select %490, %488, %491 : vector<2x32xi1>, vector<2x32xf32>
    %c0_121 = arith.constant 0 : index
    %c6_122 = arith.constant 6 : index
    %c0_123 = arith.constant 0 : index
    %493 = vector.load %arg10[%c0_121, %c6_122, %c0_123] : memref<2x8x32xf32, #tpu.memory_space<vmem>>, vector<2x1x32xf32>
    %494 = vector.shape_cast %493 : vector<2x1x32xf32> to vector<2x32xf32>
    %495 = vector.shape_cast %492 : vector<2x32xf32> to vector<2x1x32xf32>
    tpu.vector_store %arg10[%c0_121, %c6_122, %c0_123], %495 {strides = array<i32>} : memref<2x8x32xf32, #tpu.memory_space<vmem>>, vector<2x1x32xf32>,
    %496 = vector.shape_cast %469 : vector<2x1xi1> to vector<2x1xi1>
    %497 = vector.broadcast %496 : vector<2x1xi1> to vector<2x32xi1>
    %498 = arith.select %497, %488, %425 : vector<2x32xi1>, vector<2x32xf32>
    %499 = vector.shape_cast %469 : vector<2x1xi1> to vector<2x1xi1>
    %500 = vector.broadcast %499 : vector<2x1xi1> to vector<2x32xi1>
    %501 = arith.select %500, %486, %428 : vector<2x32xi1>, vector<2x32xf32>
    %c0_i32_124 = arith.constant 0 : i32
    %502 = arith.subi %c0_i32_124, %arg0 : i32
    %c8_i32_125 = arith.constant 8 : i32
    %503 = arith.muli %502, %c8_i32_125 : i32
    %c1_i32_126 = arith.constant 1 : i32
    %504 = arith.addi %503, %c1_i32_126 : i32
    %505 = vector.broadcast %504 : i32 to vector<2x1xi32>
    %506 = arith.cmpi slt, %505, %3 : vector<2x1xi32>
    %507 = vector.extract_strided_slice %21 {offsets = [0, 1, 0], sizes = [2, 1, 128], strides = [1, 1, 1]} : vector<2x8x128xf32> to vector<2x1x128xf32>
    %508 = vector.shape_cast %507 : vector<2x1x128xf32> to vector<2x128xf32>
    %cst_127 = arith.constant dense<0.000000e+00> : vector<2x128xf32>
    %509 = tpu.matmul %462, %23, %cst_127 {dimension_numbers = #tpu.dot_dimension_numbers<[1], [0], [0], [1], [0, 0, 1, 1], [], []>} : vector<2x32xf32>, vector<32x128xf32>, vector<2x128xf32> -> vector<2x128xf32>
    %510 = arith.addf %508, %509 : vector<2x128xf32>
    %511 = arith.negf %510 : vector<2x128xf32>
    %512 = math.exp %511 : vector<2x128xf32>
    %cst_128 = arith.constant 1.000000e+00 : f32
    %513 = vector.broadcast %cst_128 : f32 to vector<2x128xf32>
    %514 = arith.addf %513, %512 : vector<2x128xf32>
    %515 = arith.divf %513, %514 : vector<2x128xf32>
    %516 = vector.extract_strided_slice %515 {offsets = [0, 0], sizes = [2, 32], strides = [1, 1]} : vector<2x128xf32> to vector<2x32xf32>
    %517 = vector.extract_strided_slice %515 {offsets = [0, 32], sizes = [2, 32], strides = [1, 1]} : vector<2x128xf32> to vector<2x32xf32>
    %518 = vector.extract_strided_slice %515 {offsets = [0, 96], sizes = [2, 32], strides = [1, 1]} : vector<2x128xf32> to vector<2x32xf32>
    %519 = vector.extract_strided_slice %510 {offsets = [0, 64], sizes = [2, 32], strides = [1, 1]} : vector<2x128xf32> to vector<2x32xf32>
    %520 = math.tanh %519 : vector<2x32xf32>
    %521 = arith.mulf %517, %465 : vector<2x32xf32>
    %522 = arith.mulf %516, %520 : vector<2x32xf32>
    %523 = arith.addf %521, %522 : vector<2x32xf32>
    %524 = math.tanh %523 : vector<2x32xf32>
    %525 = arith.mulf %518, %524 : vector<2x32xf32>
    %cst_129 = arith.constant 0.000000e+00 : f32
    %526 = vector.shape_cast %506 : vector<2x1xi1> to vector<2x1xi1>
    %527 = vector.broadcast %526 : vector<2x1xi1> to vector<2x32xi1>
    %528 = vector.broadcast %cst_129 : f32 to vector<2x32xf32>
    %529 = arith.select %527, %525, %528 : vector<2x32xi1>, vector<2x32xf32>
    %c0_130 = arith.constant 0 : index
    %c1_131 = arith.constant 1 : index
    %c0_132 = arith.constant 0 : index
    %530 = vector.load %arg11[%c0_130, %c1_131, %c0_132] : memref<2x8x32xf32, #tpu.memory_space<vmem>>, vector<2x1x32xf32>
    %531 = vector.shape_cast %530 : vector<2x1x32xf32> to vector<2x32xf32>
    %532 = vector.shape_cast %529 : vector<2x32xf32> to vector<2x1x32xf32>
    tpu.vector_store %arg11[%c0_130, %c1_131, %c0_132], %532 {strides = array<i32>} : memref<2x8x32xf32, #tpu.memory_space<vmem>>, vector<2x1x32xf32>,
    %533 = vector.shape_cast %506 : vector<2x1xi1> to vector<2x1xi1>
    %534 = vector.broadcast %533 : vector<2x1xi1> to vector<2x32xi1>
    %535 = arith.select %534, %525, %462 : vector<2x32xi1>, vector<2x32xf32>
    %536 = vector.shape_cast %506 : vector<2x1xi1> to vector<2x1xi1>
    %537 = vector.broadcast %536 : vector<2x1xi1> to vector<2x32xi1>
    %538 = arith.select %537, %523, %465 : vector<2x32xi1>, vector<2x32xf32>
    %c8_i32_133 = arith.constant 8 : i32
    %539 = arith.muli %arg0, %c8_i32_133 : i32
    %c7_i32_134 = arith.constant 7 : i32
    %540 = arith.addi %539, %c7_i32_134 : i32
    %541 = vector.broadcast %540 : i32 to vector<2x1xi32>
    %542 = arith.cmpi slt, %541, %3 : vector<2x1xi32>
    %543 = vector.extract_strided_slice %12 {offsets = [0, 7, 0], sizes = [2, 1, 128], strides = [1, 1, 1]} : vector<2x8x128xf32> to vector<2x1x128xf32>
    %544 = vector.shape_cast %543 : vector<2x1x128xf32> to vector<2x128xf32>
    %cst_135 = arith.constant dense<0.000000e+00> : vector<2x128xf32>
    %545 = tpu.matmul %498, %22, %cst_135 {dimension_numbers = #tpu.dot_dimension_numbers<[1], [0], [0], [1], [0, 0, 1, 1], [], []>} : vector<2x32xf32>, vector<32x128xf32>, vector<2x128xf32> -> vector<2x128xf32>
    %546 = arith.addf %544, %545 : vector<2x128xf32>
    %547 = arith.negf %546 : vector<2x128xf32>
    %548 = math.exp %547 : vector<2x128xf32>
    %cst_136 = arith.constant 1.000000e+00 : f32
    %549 = vector.broadcast %cst_136 : f32 to vector<2x128xf32>
    %550 = arith.addf %549, %548 : vector<2x128xf32>
    %551 = arith.divf %549, %550 : vector<2x128xf32>
    %552 = vector.extract_strided_slice %551 {offsets = [0, 0], sizes = [2, 32], strides = [1, 1]} : vector<2x128xf32> to vector<2x32xf32>
    %553 = vector.extract_strided_slice %551 {offsets = [0, 32], sizes = [2, 32], strides = [1, 1]} : vector<2x128xf32> to vector<2x32xf32>
    %554 = vector.extract_strided_slice %551 {offsets = [0, 96], sizes = [2, 32], strides = [1, 1]} : vector<2x128xf32> to vector<2x32xf32>
    %555 = vector.extract_strided_slice %546 {offsets = [0, 64], sizes = [2, 32], strides = [1, 1]} : vector<2x128xf32> to vector<2x32xf32>
    %556 = math.tanh %555 : vector<2x32xf32>
    %557 = arith.mulf %553, %501 : vector<2x32xf32>
    %558 = arith.mulf %552, %556 : vector<2x32xf32>
    %559 = arith.addf %557, %558 : vector<2x32xf32>
    %560 = math.tanh %559 : vector<2x32xf32>
    %561 = arith.mulf %554, %560 : vector<2x32xf32>
    %cst_137 = arith.constant 0.000000e+00 : f32
    %562 = vector.shape_cast %542 : vector<2x1xi1> to vector<2x1xi1>
    %563 = vector.broadcast %562 : vector<2x1xi1> to vector<2x32xi1>
    %564 = vector.broadcast %cst_137 : f32 to vector<2x32xf32>
    %565 = arith.select %563, %561, %564 : vector<2x32xi1>, vector<2x32xf32>
    %c0_138 = arith.constant 0 : index
    %c7_139 = arith.constant 7 : index
    %c0_140 = arith.constant 0 : index
    %566 = vector.load %arg10[%c0_138, %c7_139, %c0_140] : memref<2x8x32xf32, #tpu.memory_space<vmem>>, vector<2x1x32xf32>
    %567 = vector.shape_cast %566 : vector<2x1x32xf32> to vector<2x32xf32>
    %568 = vector.shape_cast %565 : vector<2x32xf32> to vector<2x1x32xf32>
    tpu.vector_store %arg10[%c0_138, %c7_139, %c0_140], %568 {strides = array<i32>} : memref<2x8x32xf32, #tpu.memory_space<vmem>>, vector<2x1x32xf32>,
    %569 = vector.shape_cast %542 : vector<2x1xi1> to vector<2x1xi1>
    %570 = vector.broadcast %569 : vector<2x1xi1> to vector<2x32xi1>
    %571 = arith.select %570, %561, %498 : vector<2x32xi1>, vector<2x32xf32>
    %572 = vector.shape_cast %542 : vector<2x1xi1> to vector<2x1xi1>
    %573 = vector.broadcast %572 : vector<2x1xi1> to vector<2x32xi1>
    %574 = arith.select %573, %559, %501 : vector<2x32xi1>, vector<2x32xf32>
    %c0_i32_141 = arith.constant 0 : i32
    %575 = arith.subi %c0_i32_141, %arg0 : i32
    %c8_i32_142 = arith.constant 8 : i32
    %576 = arith.muli %575, %c8_i32_142 : i32
    %c0_i32_143 = arith.constant 0 : i32
    %577 = arith.addi %576, %c0_i32_143 : i32
    %578 = vector.broadcast %577 : i32 to vector<2x1xi32>
    %579 = arith.cmpi slt, %578, %3 : vector<2x1xi32>
    %580 = vector.extract_strided_slice %21 {offsets = [0, 0, 0], sizes = [2, 1, 128], strides = [1, 1, 1]} : vector<2x8x128xf32> to vector<2x1x128xf32>
    %581 = vector.shape_cast %580 : vector<2x1x128xf32> to vector<2x128xf32>
    %cst_144 = arith.constant dense<0.000000e+00> : vector<2x128xf32>
    %582 = tpu.matmul %535, %23, %cst_144 {dimension_numbers = #tpu.dot_dimension_numbers<[1], [0], [0], [1], [0, 0, 1, 1], [], []>} : vector<2x32xf32>, vector<32x128xf32>, vector<2x128xf32> -> vector<2x128xf32>
    %583 = arith.addf %581, %582 : vector<2x128xf32>
    %584 = arith.negf %583 : vector<2x128xf32>
    %585 = math.exp %584 : vector<2x128xf32>
    %cst_145 = arith.constant 1.000000e+00 : f32
    %586 = vector.broadcast %cst_145 : f32 to vector<2x128xf32>
    %587 = arith.addf %586, %585 : vector<2x128xf32>
    %588 = arith.divf %586, %587 : vector<2x128xf32>
    %589 = vector.extract_strided_slice %588 {offsets = [0, 0], sizes = [2, 32], strides = [1, 1]} : vector<2x128xf32> to vector<2x32xf32>
    %590 = vector.extract_strided_slice %588 {offsets = [0, 32], sizes = [2, 32], strides = [1, 1]} : vector<2x128xf32> to vector<2x32xf32>
    %591 = vector.extract_strided_slice %588 {offsets = [0, 96], sizes = [2, 32], strides = [1, 1]} : vector<2x128xf32> to vector<2x32xf32>
    %592 = vector.extract_strided_slice %583 {offsets = [0, 64], sizes = [2, 32], strides = [1, 1]} : vector<2x128xf32> to vector<2x32xf32>
    %593 = math.tanh %592 : vector<2x32xf32>
    %594 = arith.mulf %590, %538 : vector<2x32xf32>
    %595 = arith.mulf %589, %593 : vector<2x32xf32>
    %596 = arith.addf %594, %595 : vector<2x32xf32>
    %597 = math.tanh %596 : vector<2x32xf32>
    %598 = arith.mulf %591, %597 : vector<2x32xf32>
    %cst_146 = arith.constant 0.000000e+00 : f32
    %599 = vector.shape_cast %579 : vector<2x1xi1> to vector<2x1xi1>
    %600 = vector.broadcast %599 : vector<2x1xi1> to vector<2x32xi1>
    %601 = vector.broadcast %cst_146 : f32 to vector<2x32xf32>
    %602 = arith.select %600, %598, %601 : vector<2x32xi1>, vector<2x32xf32>
    %c0_147 = arith.constant 0 : index
    %c0_148 = arith.constant 0 : index
    %c0_149 = arith.constant 0 : index
    %603 = vector.load %arg11[%c0_147, %c0_148, %c0_149] : memref<2x8x32xf32, #tpu.memory_space<vmem>>, vector<2x1x32xf32>
    %604 = vector.shape_cast %603 : vector<2x1x32xf32> to vector<2x32xf32>
    %605 = vector.shape_cast %602 : vector<2x32xf32> to vector<2x1x32xf32>
    tpu.vector_store %arg11[%c0_147, %c0_148, %c0_149], %605 {strides = array<i32>} : memref<2x8x32xf32, #tpu.memory_space<vmem>>, vector<2x1x32xf32>,
    %606 = vector.shape_cast %579 : vector<2x1xi1> to vector<2x1xi1>
    %607 = vector.broadcast %606 : vector<2x1xi1> to vector<2x32xi1>
    %608 = arith.select %607, %598, %535 : vector<2x32xi1>, vector<2x32xf32>
    %609 = vector.shape_cast %579 : vector<2x1xi1> to vector<2x1xi1>
    %610 = vector.broadcast %609 : vector<2x1xi1> to vector<2x32xi1>
    %611 = arith.select %610, %596, %538 : vector<2x32xi1>, vector<2x32xf32>
    %c0_150 = arith.constant 0 : index
    %c0_151 = arith.constant 0 : index
    %612 = vector.load %arg12[%c0_150, %c0_151] : memref<2x32xf32, #tpu.memory_space<vmem>>, vector<2x32xf32>
    tpu.vector_store %arg12[%c0_150, %c0_151], %571 {strides = array<i32>} : memref<2x32xf32, #tpu.memory_space<vmem>>, vector<2x32xf32>,
    %c0_152 = arith.constant 0 : index
    %c0_153 = arith.constant 0 : index
    %613 = vector.load %arg14[%c0_152, %c0_153] : memref<2x32xf32, #tpu.memory_space<vmem>>, vector<2x32xf32>
    tpu.vector_store %arg14[%c0_152, %c0_153], %574 {strides = array<i32>} : memref<2x32xf32, #tpu.memory_space<vmem>>, vector<2x32xf32>,
    %c0_154 = arith.constant 0 : index
    %c0_155 = arith.constant 0 : index
    %614 = vector.load %arg13[%c0_154, %c0_155] : memref<2x32xf32, #tpu.memory_space<vmem>>, vector<2x32xf32>
    tpu.vector_store %arg13[%c0_154, %c0_155], %608 {strides = array<i32>} : memref<2x32xf32, #tpu.memory_space<vmem>>, vector<2x32xf32>,
    %c0_156 = arith.constant 0 : index
    %c0_157 = arith.constant 0 : index
    %615 = vector.load %arg15[%c0_156, %c0_157] : memref<2x32xf32, #tpu.memory_space<vmem>>, vector<2x32xf32>
    tpu.vector_store %arg15[%c0_156, %c0_157], %611 {strides = array<i32>} : memref<2x32xf32, #tpu.memory_space<vmem>>, vector<2x32xf32>,
    return
  }
  func.func @transform_0(%arg0: i32) -> (i32, i32) {
    %c0_i32 = arith.constant 0 : i32
    %c0_i32_0 = arith.constant 0 : i32
    %c0_i32_1 = arith.constant 0 : i32
    return %c0_i32, %c0_i32_0 : i32, i32
  }
  func.func @transform_1(%arg0: i32) -> (i32, i32, i32) {
    %c0_i32 = arith.constant 0 : i32
    %c0_i32_0 = arith.constant 0 : i32
    %c0_i32_1 = arith.constant 0 : i32
    return %c0_i32, %arg0, %c0_i32_0 : i32, i32, i32
  }
  func.func @transform_2(%arg0: i32) -> (i32, i32, i32) {
    %c0_i32 = arith.constant 0 : i32
    %0 = arith.subi %c0_i32, %arg0 : i32
    %c0_i32_0 = arith.constant 0 : i32
    %c0_i32_1 = arith.constant 0 : i32
    %c0_i32_2 = arith.constant 0 : i32
    return %c0_i32_0, %0, %c0_i32_1 : i32, i32, i32
  }
  func.func @transform_3(%arg0: i32) -> (i32, i32) {
    %c0_i32 = arith.constant 0 : i32
    %c0_i32_0 = arith.constant 0 : i32
    %c0_i32_1 = arith.constant 0 : i32
    return %c0_i32, %c0_i32_0 : i32, i32
  }
  func.func @transform_4(%arg0: i32) -> (i32, i32) {
    %c0_i32 = arith.constant 0 : i32
    %c0_i32_0 = arith.constant 0 : i32
    %c0_i32_1 = arith.constant 0 : i32
    return %c0_i32, %c0_i32_0 : i32, i32
  }
  func.func @transform_5(%arg0: i32) -> (i32, i32) {
    %c0_i32 = arith.constant 0 : i32
    %c0_i32_0 = arith.constant 0 : i32
    %c0_i32_1 = arith.constant 0 : i32
    return %c0_i32, %c0_i32_0 : i32, i32
  }
  func.func @transform_6(%arg0: i32) -> (i32, i32) {
    %c0_i32 = arith.constant 0 : i32
    %c0_i32_0 = arith.constant 0 : i32
    %c0_i32_1 = arith.constant 0 : i32
    return %c0_i32, %c0_i32_0 : i32, i32
  }
  func.func @transform_7(%arg0: i32) -> (i32, i32) {
    %c0_i32 = arith.constant 0 : i32
    %c0_i32_0 = arith.constant 0 : i32
    %c0_i32_1 = arith.constant 0 : i32
    return %c0_i32, %c0_i32_0 : i32, i32
  }
  func.func @transform_8(%arg0: i32) -> (i32, i32) {
    %c0_i32 = arith.constant 0 : i32
    %c0_i32_0 = arith.constant 0 : i32
    %c0_i32_1 = arith.constant 0 : i32
    return %c0_i32, %c0_i32_0 : i32, i32
  }
  func.func @transform_9(%arg0: i32) -> (i32, i32, i32) {
    %c0_i32 = arith.constant 0 : i32
    %c0_i32_0 = arith.constant 0 : i32
    %c0_i32_1 = arith.constant 0 : i32
    return %c0_i32, %arg0, %c0_i32_0 : i32, i32, i32
  }
  func.func @transform_10(%arg0: i32) -> (i32, i32, i32) {
    %c0_i32 = arith.constant 0 : i32
    %0 = arith.subi %c0_i32, %arg0 : i32
    %c0_i32_0 = arith.constant 0 : i32
    %c0_i32_1 = arith.constant 0 : i32
    %c0_i32_2 = arith.constant 0 : i32
    return %c0_i32_0, %0, %c0_i32_1 : i32, i32, i32
  }
  func.func @transform_11(%arg0: i32) -> (i32, i32) {
    %c0_i32 = arith.constant 0 : i32
    %c0_i32_0 = arith.constant 0 : i32
    %c0_i32_1 = arith.constant 0 : i32
    return %c0_i32, %c0_i32_0 : i32, i32
  }
  func.func @transform_12(%arg0: i32) -> (i32, i32) {
    %c0_i32 = arith.constant 0 : i32
    %c0_i32_0 = arith.constant 0 : i32
    %c0_i32_1 = arith.constant 0 : i32
    return %c0_i32, %c0_i32_0 : i32, i32
  }
}

</mosaic_0001>

<bundles_post_ra>
// kernel: rnn_encoder_forward.1
= control target key start
LH: loop header
LB: loop body
LE: loop exit
PB: predicated region body
PF: predicated region fallthrough
CT: control target
= control target key end

     0   :  { %18 = vsyncpa [#allocation5], 0  ;;  %s5252_s0 = inlined_call_operand.vmem [shape: s32[2,1], index: 0, kind: input, shape index: {}]   ;;  %s5253_s1 = inlined_call_operand.vmem [shape: f32[2,8,16], index: 1, kind: input, shape index: {}, may-alias: {1,2}]   ;;  %s5254_s2 = inlined_call_operand.vmem [shape: f32[2,8,16], index: 2, kind: input, shape index: {}, may-alias: {1,2}]   ;;  %s5255_s3 = inlined_call_operand.hbm [shape: f32[16,128], index: 3, kind: input, shape index: {}]   ;;  %s5256_s4 = inlined_call_operand.hbm [shape: f32[32,128], index: 4, kind: input, shape index: {}]   ;;  %s5257_s5 = inlined_call_operand.vmem [shape: f32[1,128], index: 5, kind: input, shape index: {}]   ;;  %s5258_s6 = inlined_call_operand.hbm [shape: f32[16,128], index: 6, kind: input, shape index: {}]   ;;  %s5259_s7 = inlined_call_operand.hbm [shape: f32[32,128], index: 7, kind: input, shape index: {}]   ;;  %s5260_s8 = inlined_call_operand.vmem [shape: f32[1,128], index: 8, kind: input, shape index: {}]   ;;  %s5261_s9 = inlined_call_operand.vmem [shape: f32[2,8,32], index: 9, kind: output, shape index: {0}]   ;;  %s5262_s10 = inlined_call_operand.vmem [shape: f32[2,8,32], index: 10, kind: output, shape index: {1}]   ;;  %s5263_s11 = inlined_call_operand.vmem [shape: f32[2,32], index: 11, kind: output, shape index: {2}]   ;;  %s5264_s12 = inlined_call_operand.vmem [shape: f32[2,32], index: 12, kind: output, shape index: {3}]  }
   0x1   :  { %19 = vsyncpa [#allocation7], 0 }
   0x2   :  { %20 = vsyncpa [#allocation10], 0  ;;  %s4241_s21 = smov [#allocation6]   ;;  %s4242_s23 = smov [#allocation4]  }
   0x3   :  { %s50_s22 = sshll.u32 %s4241_s21, 4  ;;  %s38_s24 = sshll.u32 %s4242_s23, 4  ;;  %s51_s22 = int_to_ptr.vmem [resolvable:$true] %s50_s22  ;;  %s4320_s24 = int_to_ptr.vmem [resolvable:$true] %s38_s24 }
   0x4   :  { %s4147_s27 = scalar_lea.hbm %s5256_s4, 512 }
   0x5   :  { %p4148_p0 = scmp.ne.s32.totalorder %s5256_s4, %s4147_s27  ;;  %p4151_p1 = scmp.lt.u32.totalorder %s4147_s27, %s5256_s4 }
   0x7   :  { %p4153_p2 = pnand %p4151_p1, %p4148_p0 }
   0x9   :  { %4156 = shalt.err (!%p4153_p2)
}
   0xa   :  { %s4157_s14 = scalar_lea.vmem %s51_s22, 512  ;;  %p4162_p4 = scmp.lt.s32.totalorder %s51_s22, %s51_s22 }
   0xb   :  { %p4158_p3 = scmp.ne.s32.totalorder %s51_s22, %s4157_s14  ;;  %p4163_p5 = scmp.lt.s32.totalorder %s4157_s14, %s4157_s14 }
   0xd   :  { %p4164_p6 = por %p4163_p5, %p4162_p4 }
   0xf   :  { %p4165_p7 = pnand %p4164_p6, %p4158_p3 }
  0x11   :  { %4168 = shalt.err (!%p4165_p7)
}
  0x12   :  { %s4243_s15 = smov 128   ;;  %s4244_s16 = smov 8  }
  0x13   :  { %56 = dma.hbm_to_vmem [thread:$0]  %s5256_s4, 512, %s51_s22, [#allocation7], %s4243_s15, %s4243_s15, %s4244_s16  }
  0x14   :  { %s4169_s21 = scalar_lea.hbm %s5255_s3, 256 }
  0x15   :  { %p4170_p8 = scmp.ne.s32.totalorder %s5255_s3, %s4169_s21  ;;  %p4173_p9 = scmp.lt.u32.totalorder %s4169_s21, %s5255_s3 }
  0x17   :  { %p4175_p10 = pnand %p4173_p9, %p4170_p8 }
  0x19   :  { %4178 = shalt.err (!%p4175_p10)
}
  0x1a   :  { %s4179_s28 = scalar_lea.vmem %s4320_s24, 256  ;;  %p4184_p12 = scmp.lt.s32.totalorder %s4320_s24, %s4320_s24 }
  0x1b   :  { %p4180_p11 = scmp.ne.s32.totalorder %s4320_s24, %s4179_s28  ;;  %p4185_p13 = scmp.lt.s32.totalorder %s4179_s28, %s4179_s28 }
  0x1d   :  { %p4186_p0 = por %p4185_p13, %p4184_p12 }
  0x1f   :  { %p4187_p1 = pnand %p4186_p0, %p4180_p11 }
  0x21   :  { %4190 = shalt.err (!%p4187_p1)
}
  0x22   :  { %44 = dma.hbm_to_vmem [thread:$0]  %s5255_s3, 256, %s4320_s24, [#allocation5], %s4243_s15, %s4243_s15, %s4244_s16  }
  0x23   :  { %s4245_s29 = smov [#allocation8]   ;;  %s4246_s13 = smov [#allocation9]  }
  0x24   :  { %s64_s30 = sshll.u32 %s4245_s29, 4  ;;  %s76_s14 = sshll.u32 %s4246_s13, 4  ;;  %s65_s30 = int_to_ptr.vmem [resolvable:$true] %s64_s30  ;;  %s4357_s14 = int_to_ptr.vmem [resolvable:$true] %s76_s14 }
  0x25   :  { %s4191_s19 = scalar_lea.hbm %s5258_s6, 256 }
  0x26   :  { %p4192_p2 = scmp.ne.s32.totalorder %s5258_s6, %s4191_s19  ;;  %p4195_p3 = scmp.lt.u32.totalorder %s4191_s19, %s5258_s6 }
  0x28   :  { %p4197_p4 = pnand %p4195_p3, %p4192_p2 }
  0x2a   :  { %4200 = shalt.err (!%p4197_p4)
}
  0x2b   :  { %s4201_s3 = scalar_lea.vmem %s65_s30, 256  ;;  %p4206_p6 = scmp.lt.s32.totalorder %s65_s30, %s65_s30 }
  0x2c   :  { %p4202_p5 = scmp.ne.s32.totalorder %s65_s30, %s4201_s3  ;;  %p4207_p7 = scmp.lt.s32.totalorder %s4201_s3, %s4201_s3 }
  0x2e   :  { %p4208_p8 = por %p4207_p7, %p4206_p6 }
  0x30   :  { %p4209_p9 = pnand %p4208_p8, %p4202_p5 }
  0x32   :  { %4212 = shalt.err (!%p4209_p9)
}
  0x33   :  { %70 = dma.hbm_to_vmem [thread:$0]  %s5258_s6, 256, %s65_s30, [#allocation7], %s4243_s15, %s4243_s15, %s4244_s16  }
  0x34   :  { %s4213_s4 = scalar_lea.hbm %s5259_s7, 512 }
  0x35   :  { %p4214_p10 = scmp.ne.s32.totalorder %s5259_s7, %s4213_s4  ;;  %p4217_p11 = scmp.lt.u32.totalorder %s4213_s4, %s5259_s7 }
  0x37   :  { %p4219_p12 = pnand %p4217_p11, %p4214_p10 }
  0x39   :  { %4222 = shalt.err (!%p4219_p12)
}
  0x3a   :  { %s4223_s18 = scalar_lea.vmem %s4357_s14, 512  ;;  %p4228_p0 = scmp.lt.s32.totalorder %s4357_s14, %s4357_s14 }
  0x3b   :  { %p4224_p13 = scmp.ne.s32.totalorder %s4357_s14, %s4223_s18  ;;  %p4229_p1 = scmp.lt.s32.totalorder %s4223_s18, %s4223_s18 }
  0x3d   :  { %p4230_p2 = por %p4229_p1, %p4228_p0 }
  0x3f   :  { %p4231_p3 = pnand %p4230_p2, %p4224_p13 }
  0x41   :  { %4234 = shalt.err (!%p4231_p3)
}
  0x42   :  { %82 = dma.hbm_to_vmem [thread:$0]  %s5259_s7, 512, %s4357_s14, [#allocation10], %s4243_s15, %s4243_s15, %s4244_s16  }
  0x43   :  { %4235 = dma.done.wait [#allocation5], 256  }
  0x44   :  { %4236 = vsyncadd [#allocation5], 4294967040 }
  0x45   :  { %4237 = dma.done.wait [#allocation7], 768  }
  0x46   :  { %4238 = vsyncadd [#allocation7], 4294966528 }
  0x47   :  { %4239 = dma.done.wait [#allocation10], 512  }
  0x48   :  { %4240 = vsyncadd [#allocation10], 4294966784  ;;  %vm123_vm0 = vcmask 254976   ;;  %v4247_v0 = vmov 0.0   ;;  %vm133_vm1 = vcmask 130048   ;;  %v131_v1 = vld [vmem:[#allocation4] sm:$0xff] }
  0x49   :  { %124 = vst.msk [vmem:[%s5263_s11] sm:$0x3] %vm123_vm0, %v4247_v0  ;;  %125 = vst.msk [vmem:[%s5264_s12] sm:$0x3] %vm123_vm0, %v4247_v0  ;;  %v132_v2 = vld [vmem:[#allocation4 + $0x8] sm:$0xff]  ;;  %v226_v3 = vld [vmem:[#allocation8] sm:$0xff] }
  0x4a   :  { %126 = vst.msk [vmem:[#allocation2] sm:$0x3] %vm123_vm0, %v4247_v0  ;;  %127 = vst.msk [vmem:[#allocation3] sm:$0x3] %vm123_vm0, %v4247_v0  ;;  %v3771_v4 = vpack.c.bf16 %v132_v2, %v131_v1  ;;  %v227_v5 = vld [vmem:[#allocation8 + $0x8] sm:$0xff]  ;;  %v318_v9 = vld [vmem:[#allocation6] sm:$0xff] }
  0x4b   :  { %v129_v6 = vld [vmem:[%s5253_s1] sm:$0xff]  ;;  %v3775_v7 = vpack.c.bf16 %v227_v5, %v226_v3  ;;  %v323_v12 = vld [vmem:[#allocation9 + $0x8] sm:$0xff]  ;;  %v4248_v15 = vmov 0.0|0.0   ;;  %v324_v20 = vld [vmem:[#allocation9 + $0x10] sm:$0xff]  ;;  %vm4249_vm2 = vmmov 0   ;;  %vm333_vm3 = vcmask 261120  }
  0x4c   :  { %3585 = vmatprep.mubr.msk.f32.mxu0 %vm133_vm1, %v129_v6  ;;  %v224_v8 = vld [vmem:[%s5254_s2] sm:$0xff]  ;;  %3772 = vmatprep.subr.bf16.mxu0 %v3771_v4  ;;  %v130_v13 = vld [vmem:[%s5253_s1 + $0x8] sm:$0xff]  ;;  %vm477_vm4 = vcmask 1041409   ;;  %vm508_vm9 = vcmask 253952  }
  0x4d   :  { %3592 = vmatprep.mubr.msk.f32.mxu1 %vm133_vm1, %v224_v8  ;;  %v319_v10 = vld [vmem:[#allocation6 + $0x8] sm:$0xff]  ;;  %v322_v11 = vld [vmem:[#allocation9] sm:$0xff]  ;;  %3776 = vmatprep.subr.bf16.mxu1 %v3775_v7  ;;  %v321_v19 = vld [vmem:[#allocation6 + $0x18] sm:$0xff] }
  0x4e   :  { %3774 = vmatpush3.bf16.msra.mxu0 %v3771_v4  ;;  %v4419_v14 = vpack.c.bf16 %v319_v10, %v318_v9  ;;  %3778 = vmatpush3.bf16.msra.mxu1 %v3775_v7  ;;  %v225_v16 = vld [vmem:[%s5254_s2 + $0x8] sm:$0xff]  ;;  %v4425_v17 = vpack.c.bf16 %v323_v12, %v322_v11  ;;  %v325_v21 = vld [vmem:[#allocation9 + $0x18] sm:$0xff] }
  0x4f   :  { %3779 = vmatprep.subr.bf16.mxu0 %v4248_v15  ;;  %v320_v18 = vld [vmem:[#allocation6 + $0x10] sm:$0xff]  ;;  %3785 = vmatprep.subr.bf16.mxu1 %v4248_v15  ;;  %v4435_v23 = vpack.c.bf16 %v325_v21, %v324_v20  ;;  %v3425_v30 = vld [vmem:[%s5257_s5] ss:$0 sm:$0xff]  ;;  %s4250_s5 = smov 64   ;;  %v4252_v20 = vmov 0  }
  0x50   :  { %v4431_v22 = vpack.c.bf16 %v321_v19, %v320_v18  ;;  %v4446_v24 = vld [vmem:[%s5263_s11] sm:$0x3]  ;;  %3889 = vset.pattern.permute.xlu0 %v4252_v20  ;;  %3890 = vset.pattern.permute.xlu1 %v4252_v20 }
  0x51   :  { %3586 = vmatmul.mubr.msk.f32.vlgmr.msra.gmra.mrb[0].mxu0 %vm133_vm1, %v130_v13  ;;  %3593 = vmatmul.mubr.msk.f32.vlgmr.msra.gmra.mrb[0].mxu1 %vm133_vm1, %v225_v16  ;;  %v4452_v25 = vld [vmem:[%s5264_s12] sm:$0x3]  ;;  %v4496_v52 = vld [vmem:[#allocation3] sm:$0x3] }
  0x52   :  { %3781 = vmatpush3.bf16.msra.mxu0 %v4419_v14  ;;  %3787 = vmatpush3.bf16.msra.mxu1 %v4425_v17  ;;  %v3428_v33 = vld [vmem:[%s5260_s8] ss:$0 sm:$0xff]  ;;  %s4251_s8 = smov 32   ;;  %v621_v54 = vrot.slane %v4496_v52, 2  ;;  %v620_v55 = vrot.slane %v4496_v52, 1 }
  0x53   :  { %3782 = vmatprep.subr.bf16.mxu0 %v4248_v15  ;;  %3788 = vmatprep.subr.bf16.mxu1 %v4248_v15  ;;  %v4491_v48 = vld [vmem:[#allocation2] sm:$0x3] }
  0x54   :  { %3603 = vmatprep.mubr.msk.f32.mxu0 %vm4249_vm2, %v4247_v0  ;;  %3614 = vmatprep.mubr.msk.f32.mxu1 %vm4249_vm2, %v4247_v0  ;;  %v428_v51 = vrot.slane %v4491_v48, 1 }
  0x56   :  { %3784 = vmatpush3.bf16.msra.mxu0 %v4431_v22  ;;  %3790 = vmatpush3.bf16.msra.mxu1 %v4435_v23 }
  0x57   :  { %3791 = vmatprep.subr.bf16.mxu0 %v4248_v15  ;;  %3797 = vmatprep.subr.bf16.mxu1 %v4248_v15 }
  0x59   :  { %3604 = vmatmul.mubr.msk.f32.vlgmr.msra.gmra.mrb[2].mxu0 %vm333_vm3, %v4446_v24  ;;  %3615 = vmatmul.mubr.msk.f32.vlgmr.msra.gmra.mrb[2].mxu1 %vm333_vm3, %v4452_v25 }
  0x5a   :  { %3793 = vmatpush3.bf16.msra.mxu0 %v4419_v14  ;;  %3799 = vmatpush3.bf16.msra.mxu1 %v4425_v17 }
  0x5b   :  { %3794 = vmatprep.subr.bf16.mxu0 %v4248_v15  ;;  %3800 = vmatprep.subr.bf16.mxu1 %v4248_v15 }
  0x5c   :  { %3636 = vmatprep.mubr.msk.f32.mxu1 %vm4249_vm2, %v4247_v0  ;;  %3625 = vmatprep.mubr.msk.f32.mxu0 %vm4249_vm2, %v4247_v0 }
  0x5e   :  { %3796 = vmatpush3.bf16.msra.mxu0 %v4431_v22  ;;  %3802 = vmatpush3.bf16.msra.mxu1 %v4435_v23 }
  0x5f   :  { %3803 = vmatprep.subr.bf16.mxu0 %v4248_v15  ;;  %3809 = vmatprep.subr.bf16.mxu1 %v4248_v15 }
 0x124   :  { %v3587_v26 = vpop.f32.mrb[0].mxu0  ;;  %v3594_v28 = vpop.f32.mrb[0].mxu1 }
 0x125   :  { %v206_v27 = vpop.f32.mrb[1].mxu0  ;;  %v300_v29 = vpop.f32.mrb[1].mxu1  ;;  %v4475_v32 = vadd.f32 %v3587_v26, %v3425_v30  ;;  %v4483_v42 = vadd.f32 %v3594_v28, %v3428_v33 }
 0x126   :  { %v4481_v41 = vadd.f32 %v3428_v33, %v300_v29  ;;  %v4487_v45 = vadd.f32 %v3425_v30, %v206_v27 }
 0x12c   :  { %v403_v31 = vpop.f32.mrb[2].mxu0  ;;  %v594_v35 = vpop.f32.mrb[2].mxu1 }
 0x12d   :  { %v408_v34 = vrot.slane %v403_v31, 1  ;;  %v3605_v36 = vpop.f32.mrb[3].mxu0  ;;  %v599_v37 = vrot.slane %v594_v35, 1  ;;  %v3616_v38 = vpop.f32.mrb[3].mxu1  ;;  %v600_v40 = vrot.slane %v594_v35, 2  ;;  %v411_v46 = vadd.f32 %v403_v31, %v4487_v45 }
 0x12f   :  { %v412_v39 = vadd.f32 %v408_v34, %v4475_v32  ;;  %v603_v43 = vadd.f32 %v599_v37, %v4481_v41  ;;  %v604_v44 = vadd.f32 %v600_v40, %v4483_v42  ;;  %v3431_v59 = vmul.f32 -1.442695, %v411_v46 }
 0x131   :  { %3891 = vtanh.f32 %v412_v39  ;;  %v3432_v56 = vmul.f32 -1.442695, %v412_v39  ;;  %v3435_v57 = vmul.f32 -1.442695, %v603_v43  ;;  %v3436_v58 = vmul.f32 -1.442695, %v604_v44 }
 0x132   :  { %3893 = vtanh.f32 %v603_v43 }
 0x133   :  { %3895 = vtanh.f32 %v604_v44 }
 0x134   :  { %3897 = vtanh.f32 %v411_v46 }
 0x135   :  { %3899 = vpow2.f32 %v3432_v56 }
 0x136   :  { %3901 = vpow2.f32 %v3435_v57 }
 0x137   :  { %3903 = vpow2.f32 %v3436_v58 }
 0x138   :  { %3905 = vpow2.f32 %v3431_v59 }
 0x13b   :  { %v3892_v47 = vpop.eup %3891 }
 0x13c   :  { %441 = vrot.lane.b32.xlu0 %v3892_v47, %s4250_s5  ;;  %v3894_v49 = vpop.eup %3893 }
 0x13d   :  { %v3896_v50 = vpop.eup %3895 }
 0x13e   :  { %634 = vrot.lane.b32.xlu1 %v3896_v50, %s4250_s5  ;;  %v3898_v53 = vpop.eup %3897 }
 0x13f   :  { %v3900_v60 = vpop.eup %3899 }
 0x140   :  { %632 = vrot.lane.b32.xlu0 %v3894_v49, %s4250_s5  ;;  %v420_v61 = vadd.f32 1.0, %v3900_v60  ;;  %v3902_v62 = vpop.eup %3901 }
 0x141   :  { %v3904_v63 = vpop.eup %3903  ;;  %v611_v1 = vadd.f32 1.0, %v3902_v62 }
 0x142   :  { %439 = vrot.lane.b32.xlu1 %v3898_v53, %s4250_s5  ;;  %3907 = vrcp.f32 %v420_v61  ;;  %v612_v2 = vadd.f32 1.0, %v3904_v63  ;;  %v3906_v3 = vpop.eup %3905  ;;  %v4522_v53 = vld [vmem:[%s5252_s0] sm:$0x3]  ;;  %s4253_s0 = smov 96  }
 0x143   :  { %3909 = vrcp.f32 %v611_v1  ;;  %v419_v4 = vadd.f32 1.0, %v3906_v3  ;;  %vm3429_vm5 = vcmp.gt.s32.totalorder %v4522_v53, 0  ;;  %vm3433_vm6 = vcmp.gt.s32.totalorder %v4522_v53, 7 }
 0x144   :  { %431 = vrot.lane.b32.xlu0 %v428_v51, %s4251_s8  ;;  %3911 = vrcp.f32 %v612_v2  ;;  %v4528_v56 = vsel %vm3429_vm5, 1, %v4252_v20  ;;  %v4534_v58 = vsel %vm3433_vm6, 1, %v4252_v20  ;;  %vm3441_vm10 = vcmp.gt.s32.totalorder %v4522_v53, 6 }
 0x145   :  { %3913 = vrcp.f32 %v419_v4  ;;  %vm3437_vm11 = vcmp.gt.s32.totalorder %v4522_v53, 1  ;;  %vm3445_vm14 = vcmp.gt.s32.totalorder %v4522_v53, 2  ;;  %vm3449_vm15 = vcmp.gt.s32.totalorder %v4522_v53, 5 }
 0x146   :  { %622 = vrot.lane.b32.xlu1 %v620_v55, %s4251_s8  ;;  %vm3453_vm6 = vcmp.gt.s32.totalorder %v4522_v53, 3 }
 0x148   :  { %624 = vrot.lane.b32.xlu0 %v621_v54, %s4251_s8 }
 0x14a   :  { %429 = vrot.lane.b32.xlu1 %v4491_v48, %s4251_s8 }
 0x14c   :  { %v4506_v5 = vpop.eup %3907 }
 0x14d   :  { %v3910_v8 = vpop.eup %3909 }
 0x14e   :  { %v3912_v10 = vpop.eup %3911 }
 0x14f   :  { %v3914_v16 = vpop.eup %3913 }
 0x1ae   :  { %v442_v6 = vpop.permute.xlu0 %441 }
 0x1af   :  { %v446_v7 = vmul.f32 %v4506_v5, %v442_v6 }
 0x1b0   :  { %v635_v11 = vpop.permute.xlu1 %634 }
 0x1b1   :  { %451 = vrot.lane.b32.xlu0 %v446_v7, %s4251_s8  ;;  %v639_v13 = vmul.f32 %v3912_v10, %v635_v11 }
 0x1b2   :  { %v633_v9 = vpop.permute.xlu0 %632 }
 0x1b3   :  { %v638_v12 = vmul.f32 %v3910_v8, %v633_v9 }
 0x1b4   :  { %v440_v18 = vpop.permute.xlu1 %439 }
 0x1b5   :  { %642 = vrot.lane.b32.xlu1 %v638_v12, %s4251_s8  ;;  %644 = vrot.lane.b32.xlu0 %v639_v13, %s4251_s8  ;;  %v445_v19 = vmul.f32 %v3914_v16, %v440_v18 }
 0x1b6   :  { %v432_v21 = vpop.permute.xlu0 %431 }
 0x1b7   :  { %v436_v28 = vmul.f32 %v4506_v5, %v432_v21 }
 0x1b8   :  { %v623_v26 = vpop.permute.xlu1 %622 }
 0x1b9   :  { %449 = vrot.lane.b32.xlu1 %v445_v19, %s4251_s8  ;;  %v628_v33 = vmul.f32 %v3910_v8, %v623_v26 }
 0x1ba   :  { %v625_v27 = vpop.permute.xlu0 %624 }
 0x1bb   :  { %v629_v34 = vmul.f32 %v3912_v10, %v625_v27 }
 0x1bc   :  { %v430_v29 = vpop.permute.xlu1 %429 }
 0x1bd   :  { %v435_v40 = vmul.f32 %v3914_v16, %v430_v29 }
 0x223   :  { %v452_v30 = vpop.permute.xlu0 %451 }
 0x224   :  { %v456_v31 = vadd.f32 %v452_v30, %v436_v28 }
 0x226   :  { %3915 = vtanh.f32 %v456_v31  ;;  %v514_v46 = vrot.slane %v456_v31, 7 }
 0x227   :  { %v643_v35 = vpop.permute.xlu1 %642  ;;  %v645_v37 = vpop.permute.xlu0 %644 }
 0x228   :  { %v648_v36 = vadd.f32 %v643_v35, %v628_v33  ;;  %v649_v38 = vadd.f32 %v645_v37, %v629_v34 }
 0x22a   :  { %3917 = vtanh.f32 %v648_v36  ;;  %v706_v39 = vrot.slane %v648_v36, 7  ;;  %v707_v43 = vrot.slane %v649_v38, 6 }
 0x22b   :  { %3919 = vtanh.f32 %v649_v38  ;;  %v450_v44 = vpop.permute.xlu1 %449 }
 0x22c   :  { %v455_v47 = vadd.f32 %v450_v44, %v435_v40  ;;  %v708_v49 = vsel %vm477_vm4, %v707_v43, %v706_v39 }
 0x22e   :  { %3921 = vtanh.f32 %v455_v47  ;;  %v515_v50 = vsel %vm477_vm4, %v514_v46, %v455_v47 }
 0x230   :  { %v3916_v51 = vpop.eup %3915 }
 0x231   :  { %463 = vrot.lane.b32.xlu0 %v3916_v51, %s4250_s5 }
 0x234   :  { %v3918_v54 = vpop.eup %3917 }
 0x235   :  { %v3920_v55 = vpop.eup %3919  ;;  %654 = vrot.lane.b32.xlu1 %v3918_v54, %s4250_s5 }
 0x236   :  { %656 = vrot.lane.b32.xlu0 %v3920_v55, %s4250_s5 }
 0x238   :  { %v3922_v57 = vpop.eup %3921 }
 0x239   :  { %461 = vrot.lane.b32.xlu1 %v3922_v57, %s4250_s5 }
 0x23a   :  { %471 = vperm.xlu0 %3889, %v4528_v56  }
 0x23d   :  { %664 = vperm.xlu1 %3890, %v4534_v58  }
 0x2a3   :  { %v464_v59 = vpop.permute.xlu0 %463 }
 0x2a4   :  { %v468_v63 = vmul.f32 %v4506_v5, %v464_v59  ;;  %v4254_v5 = vmov 1966171168  }
 0x2a6   :  { %v476_v6 = vrot.slane %v468_v63, 7 }
 0x2a7   :  { %v655_v60 = vpop.permute.xlu1 %654 }
 0x2a8   :  { %v660_v61 = vmul.f32 %v3910_v8, %v655_v60  ;;  %v657_v62 = vpop.permute.xlu0 %656  ;;  %v485_v8 = vunpack.c.l.s4 %v4254_v5 }
 0x2a9   :  { %v661_v1 = vmul.f32 %v3912_v10, %v657_v62  ;;  %v487_v10 = vlaneseq }
 0x2aa   :  { %v669_v2 = vrot.slane %v660_v61, 7  ;;  %v486_v13 = vunpack.c.0.s8 %v485_v8 }
 0x2ab   :  { %v670_v3 = vrot.slane %v661_v1, 6  ;;  %v462_v4 = vpop.permute.xlu1 %461 }
 0x2ac   :  { %v467_v7 = vmul.f32 %v3914_v16, %v462_v4  ;;  %v488_v16 = vshrl.u32 %v487_v10, 7 }
 0x2ad   :  { %v671_v9 = vsel %vm477_vm4, %v670_v3, %v669_v2 }
 0x2ae   :  { %672 = vrot.lane.b32.xlu0 %v671_v9, %s4251_s8  ;;  %v478_v11 = vsel %vm477_vm4, %v476_v6, %v467_v7  ;;  %v4546_v19 = vsub.s32 %v486_v13, %v488_v16 }
 0x2af   :  { %479 = vrot.lane.b32.xlu1 %v478_v11, %s4251_s8 }
 0x2b2   :  { %709 = vrot.lane.b32.xlu0 %v708_v49, %s4253_s0 }
 0x2b3   :  { %516 = vrot.lane.b32.xlu1 %v515_v50, %s4253_s0 }
 0x2b9   :  { %v4544_v12 = vpop.permute.xlu0 %471 }
 0x2ba   :  { %vm473_vm8 = vcmp.eq.s32.totalorder %v4544_v12, 1 }
 0x2bc   :  { %v665_v18 = vpop.permute.xlu1 %664 }
 0x2bd   :  { %vm666_vm7 = vcmp.eq.s32.totalorder %v665_v18, 1 }
 0x320   :  { %v673_v21 = vpop.permute.xlu0 %672 }
 0x321   :  { %v675_v26 = vsel %vm666_vm7, %v673_v21, 0.0  ;;  %v4551_v27 = vsel %vm666_vm7, %v673_v21, %v4452_v25  ;;  %v480_v29 = vpop.permute.xlu1 %479 }
 0x322   :  { %v683_v28 = vrot.slane %v675_v26, %v4546_v19  ;;  %3637 = vmatmul.mubr.msk.f32.vlgmr.msra.gmra.mrb[4].mxu1 %vm333_vm3, %v4551_v27  ;;  %v482_v30 = vsel %vm473_vm8, %v480_v29, 0.0  ;;  %v4562_v31 = vsel %vm473_vm8, %v480_v29, %v4446_v24 }
 0x323   :  { %3811 = vmatpush3.bf16.msra.mxu1 %v4425_v17  ;;  %3658 = vmatprep.mubr.msk.f32.mxu1 %vm4249_vm2, %v4247_v0  ;;  %v490_v34 = vrot.slane %v482_v30, %v4546_v19 }
 0x324   :  { %v684_v25 = vcombine.high %v683_v28, %v683_v28  ;;  %v691_v33 = vrot.slane %v683_v28, %v4546_v19  ;;  %3626 = vmatmul.mubr.msk.f32.vlgmr.msra.gmra.mrb[4].mxu0 %vm333_vm3, %v4562_v31  ;;  %3812 = vmatprep.subr.bf16.mxu1 %v4248_v15  ;;  %v710_v57 = vpop.permute.xlu0 %709 }
 0x325   :  { %3805 = vmatpush3.bf16.msra.mxu0 %v4419_v14  ;;  %3647 = vmatprep.mubr.msk.f32.mxu0 %vm4249_vm2, %v4247_v0  ;;  %v491_v35 = vcombine.high %v490_v34, %v490_v34  ;;  %v498_v36 = vrot.slane %v490_v34, %v4546_v19  ;;  %v4606_v61 = vsel %vm666_vm7, %v710_v57, %v4496_v52  ;;  %v517_v62 = vpop.permute.xlu1 %516  ;;  %vm3457_vm7 = vcmp.gt.s32.totalorder %v4522_v53, 4 }
 0x326   :  { %v698_v24 = vrot.slane %v684_v25, %v4546_v19  ;;  %701 = vst.msk [vmem:[%s5262_s10 + $0x7] sm:$0x1] %vm508_vm9, %v691_v33  ;;  %3806 = vmatprep.subr.bf16.mxu0 %v4248_v15  ;;  %v4613_v1 = vsel %vm473_vm8, %v517_v62, %v4491_v48  ;;  %v998_v2 = vrot.slane %v4606_v61, 2  ;;  %v999_v3 = vrot.slane %v4606_v61, 3 }
 0x327   :  { %3814 = vmatpush3.bf16.msra.mxu1 %v4435_v23  ;;  %v505_v37 = vrot.slane %v491_v35, %v4546_v19  ;;  %509 = vst.msk [vmem:[%s5261_s9] sm:$0x1] %vm508_vm9, %v498_v36  ;;  %v810_v52 = vrot.slane %v4613_v1, 7 }
 0x328   :  { %702 = vst.msk [vmem:[%s5262_s10 + $0xf] sm:$0x1] %vm508_vm9, %v698_v24  ;;  %3821 = vmatprep.subr.bf16.mxu1 %v4248_v15 }
 0x329   :  { %3808 = vmatpush3.bf16.msra.mxu0 %v4431_v22  ;;  %510 = vst.msk [vmem:[%s5261_s9 + $0x8] sm:$0x1] %vm508_vm9, %v505_v37 }
 0x32a   :  { %3815 = vmatprep.subr.bf16.mxu0 %v4248_v15 }
 0x3f5   :  { %v972_v38 = vpop.f32.mrb[4].mxu1 }
 0x3f6   :  { %v977_v39 = vrot.slane %v972_v38, 2  ;;  %v3638_v40 = vpop.f32.mrb[5].mxu1  ;;  %v978_v49 = vrot.slane %v972_v38, 3 }
 0x3f7   :  { %v785_v43 = vpop.f32.mrb[4].mxu0 }
 0x3f8   :  { %v981_v44 = vadd.f32 %v977_v39, %v4481_v41  ;;  %v790_v46 = vrot.slane %v785_v43, 7  ;;  %v3627_v47 = vpop.f32.mrb[5].mxu0  ;;  %v794_v51 = vadd.f32 %v785_v43, %v4475_v32  ;;  %v982_v54 = vadd.f32 %v978_v49, %v4483_v42 }
 0x3fa   :  { %3923 = vtanh.f32 %v981_v44  ;;  %v793_v50 = vadd.f32 %v790_v46, %v4487_v45  ;;  %v3443_v4 = vmul.f32 -1.442695, %v981_v44  ;;  %v3440_v6 = vmul.f32 -1.442695, %v794_v51 }
 0x3fb   :  { %v3444_v7 = vmul.f32 -1.442695, %v982_v54 }
 0x3fc   :  { %3925 = vtanh.f32 %v793_v50  ;;  %v3439_v48 = vmul.f32 -1.442695, %v793_v50 }
 0x3fd   :  { %3927 = vtanh.f32 %v794_v51 }
 0x3fe   :  { %3929 = vtanh.f32 %v982_v54 }
 0x3ff   :  { %3931 = vpow2.f32 %v3443_v4 }
 0x400   :  { %3933 = vpow2.f32 %v3439_v48 }
 0x401   :  { %3935 = vpow2.f32 %v3440_v6 }
 0x402   :  { %3937 = vpow2.f32 %v3444_v7  ;;  %v4635_v7 = vsel %vm3441_vm10, 1, %v4252_v20 }
 0x404   :  { %v3924_v55 = vpop.eup %3923 }
 0x405   :  { %1010 = vrot.lane.b32.xlu0 %v3924_v55, %s4250_s5 }
 0x406   :  { %v3926_v59 = vpop.eup %3925 }
 0x407   :  { %v3928_v60 = vpop.eup %3927  ;;  %821 = vrot.lane.b32.xlu1 %v3926_v59, %s4250_s5 }
 0x408   :  { %v3930_v63 = vpop.eup %3929 }
 0x409   :  { %823 = vrot.lane.b32.xlu0 %v3928_v60, %s4250_s5  ;;  %v3932_v9 = vpop.eup %3931 }
 0x40a   :  { %v989_v11 = vadd.f32 1.0, %v3932_v9  ;;  %v3934_v5 = vpop.eup %3933 }
 0x40b   :  { %1012 = vrot.lane.b32.xlu1 %v3930_v63, %s4250_s5  ;;  %v3936_v8 = vpop.eup %3935  ;;  %v801_v10 = vadd.f32 1.0, %v3934_v5 }
 0x40c   :  { %3939 = vrcp.f32 %v989_v11  ;;  %v3938_v12 = vpop.eup %3937  ;;  %v802_v13 = vadd.f32 1.0, %v3936_v8  ;;  %v4641_v11 = vsel %vm3437_vm11, 1, %v4252_v20 }
 0x40d   :  { %1000 = vrot.lane.b32.xlu0 %v998_v2, %s4251_s8  ;;  %v990_v16 = vadd.f32 1.0, %v3938_v12  ;;  %3941 = vrcp.f32 %v801_v10 }
 0x40e   :  { %3943 = vrcp.f32 %v802_v13 }
 0x40f   :  { %811 = vrot.lane.b32.xlu1 %v810_v52, %s4251_s8  ;;  %3945 = vrcp.f32 %v990_v16 }
 0x411   :  { %813 = vrot.lane.b32.xlu0 %v4613_v1, %s4251_s8 }
 0x413   :  { %1002 = vrot.lane.b32.xlu1 %v999_v3, %s4251_s8 }
 0x416   :  { %v3940_v18 = vpop.eup %3939 }
 0x417   :  { %v3942_v28 = vpop.eup %3941 }
 0x418   :  { %v3944_v30 = vpop.eup %3943 }
 0x419   :  { %v3946_v24 = vpop.eup %3945 }
 0x477   :  { %v1011_v21 = vpop.permute.xlu0 %1010 }
 0x478   :  { %v1016_v26 = vmul.f32 %v3940_v18, %v1011_v21 }
 0x479   :  { %v822_v29 = vpop.permute.xlu1 %821 }
 0x47a   :  { %1020 = vrot.lane.b32.xlu0 %v1016_v26, %s4251_s8  ;;  %v827_v25 = vmul.f32 %v3942_v28, %v822_v29 }
 0x47b   :  { %v824_v33 = vpop.permute.xlu0 %823 }
 0x47c   :  { %v828_v34 = vmul.f32 %v3944_v30, %v824_v33  ;;  %831 = vrot.lane.b32.xlu1 %v827_v25, %s4251_s8 }
 0x47d   :  { %v1013_v35 = vpop.permute.xlu1 %1012 }
 0x47e   :  { %833 = vrot.lane.b32.xlu0 %v828_v34, %s4251_s8  ;;  %v1017_v36 = vmul.f32 %v3946_v24, %v1013_v35 }
 0x47f   :  { %v1001_v37 = vpop.permute.xlu0 %1000 }
 0x480   :  { %1022 = vrot.lane.b32.xlu1 %v1017_v36, %s4251_s8  ;;  %v1006_v40 = vmul.f32 %v3940_v18, %v1001_v37 }
 0x481   :  { %v812_v38 = vpop.permute.xlu1 %811 }
 0x482   :  { %v817_v47 = vmul.f32 %v3942_v28, %v812_v38 }
 0x483   :  { %v814_v39 = vpop.permute.xlu0 %813 }
 0x484   :  { %v818_v49 = vmul.f32 %v3944_v30, %v814_v39 }
 0x485   :  { %v1003_v46 = vpop.permute.xlu1 %1002 }
 0x486   :  { %v1007_v57 = vmul.f32 %v3946_v24, %v1003_v46 }
 0x4ec   :  { %v1021_v43 = vpop.permute.xlu0 %1020 }
 0x4ed   :  { %v1026_v44 = vadd.f32 %v1021_v43, %v1006_v40 }
 0x4ee   :  { %v832_v50 = vpop.permute.xlu1 %831 }
 0x4ef   :  { %3947 = vtanh.f32 %v1026_v44  ;;  %v837_v51 = vadd.f32 %v832_v50, %v817_v47  ;;  %v1084_v52 = vrot.slane %v1026_v44, 6 }
 0x4f0   :  { %v834_v54 = vpop.permute.xlu0 %833 }
 0x4f1   :  { %v838_v55 = vadd.f32 %v834_v54, %v818_v49  ;;  %3949 = vtanh.f32 %v837_v51  ;;  %v894_v59 = vrot.slane %v837_v51, 1 }
 0x4f2   :  { %v1023_v60 = vpop.permute.xlu1 %1022 }
 0x4f3   :  { %3951 = vtanh.f32 %v838_v55  ;;  %v1027_v62 = vadd.f32 %v1023_v60, %v1007_v57  ;;  %v895_v63 = vsel %vm477_vm4, %v838_v55, %v894_v59 }
 0x4f5   :  { %3953 = vtanh.f32 %v1027_v62  ;;  %v1085_v3 = vrot.slane %v1027_v62, 5 }
 0x4f7   :  { %v1086_v4 = vsel %vm477_vm4, %v1085_v3, %v1084_v52 }
 0x4f9   :  { %v3948_v2 = vpop.eup %3947 }
 0x4fa   :  { %1032 = vrot.lane.b32.xlu0 %v3948_v2, %s4250_s5 }
 0x4fb   :  { %v3950_v48 = vpop.eup %3949 }
 0x4fc   :  { %843 = vrot.lane.b32.xlu1 %v3950_v48, %s4250_s5 }
 0x4fd   :  { %v3952_v6 = vpop.eup %3951 }
 0x4fe   :  { %845 = vrot.lane.b32.xlu0 %v3952_v6, %s4250_s5 }
 0x4ff   :  { %v3954_v9 = vpop.eup %3953 }
 0x500   :  { %1034 = vrot.lane.b32.xlu1 %v3954_v9, %s4250_s5 }
 0x502   :  { %1042 = vperm.xlu0 %3889, %v4635_v7  }
 0x504   :  { %853 = vperm.xlu1 %3890, %v4641_v11  }
 0x56c   :  { %v1033_v5 = vpop.permute.xlu0 %1032 }
 0x56d   :  { %v1038_v16 = vmul.f32 %v3940_v18, %v1033_v5 }
 0x56e   :  { %v844_v8 = vpop.permute.xlu1 %843 }
 0x56f   :  { %v849_v10 = vmul.f32 %v3942_v28, %v844_v8  ;;  %v1047_v33 = vrot.slane %v1038_v16, 6 }
 0x570   :  { %v846_v12 = vpop.permute.xlu0 %845 }
 0x571   :  { %v850_v13 = vmul.f32 %v3944_v30, %v846_v12  ;;  %v858_v21 = vrot.slane %v849_v10, 1 }
 0x572   :  { %v1035_v26 = vpop.permute.xlu1 %1034 }
 0x573   :  { %v1039_v29 = vmul.f32 %v3946_v24, %v1035_v26  ;;  %v859_v25 = vsel %vm477_vm4, %v850_v13, %v858_v21 }
 0x574   :  { %860 = vrot.lane.b32.xlu1 %v859_v25, %s4251_s8 }
 0x575   :  { %v1048_v34 = vrot.slane %v1039_v29, 5 }
 0x577   :  { %v1049_v35 = vsel %vm477_vm4, %v1048_v34, %v1047_v33 }
 0x578   :  { %896 = vrot.lane.b32.xlu1 %v895_v63, %s4253_s0  ;;  %1050 = vrot.lane.b32.xlu0 %v1049_v35, %s4251_s8 }
 0x57c   :  { %1087 = vrot.lane.b32.xlu0 %v1086_v4, %s4253_s0 }
 0x581   :  { %v4650_v30 = vpop.permute.xlu0 %1042 }
 0x582   :  { %vm1044_vm13 = vcmp.eq.s32.totalorder %v4650_v30, 1 }
 0x583   :  { %v854_v28 = vpop.permute.xlu1 %853 }
 0x584   :  { %vm855_vm12 = vcmp.eq.s32.totalorder %v854_v28, 1 }
 0x5e6   :  { %v861_v18 = vpop.permute.xlu1 %860 }
 0x5e7   :  { %v863_v24 = vsel %vm855_vm12, %v861_v18, 0.0  ;;  %v4655_v36 = vsel %vm855_vm12, %v861_v18, %v4562_v31 }
 0x5e8   :  { %v871_v37 = vrot.slane %v863_v24, %v4546_v19  ;;  %3648 = vmatmul.mubr.msk.f32.vlgmr.msra.gmra.mrb[6].mxu0 %vm333_vm3, %v4655_v36 }
 0x5e9   :  { %3817 = vmatpush3.bf16.msra.mxu0 %v4419_v14  ;;  %3669 = vmatprep.mubr.msk.f32.mxu0 %vm4249_vm2, %v4247_v0 }
 0x5ea   :  { %v872_v38 = vcombine.high %v871_v37, %v871_v37  ;;  %v879_v39 = vrot.slane %v871_v37, %v4546_v19  ;;  %v1051_v40 = vpop.permute.xlu0 %1050  ;;  %3818 = vmatprep.subr.bf16.mxu0 %v4248_v15  ;;  %v897_v6 = vpop.permute.xlu1 %896 }
 0x5eb   :  { %v1053_v31 = vsel %vm1044_vm13, %v1051_v40, 0.0  ;;  %v4671_v43 = vsel %vm1044_vm13, %v1051_v40, %v4551_v27  ;;  %v4711_v5 = vsel %vm855_vm12, %v897_v6, %v4613_v1 }
 0x5ec   :  { %v886_v44 = vrot.slane %v872_v38, %v4546_v19  ;;  %889 = vst.msk [vmem:[%s5261_s9 + $0x1] sm:$0x1] %vm508_vm9, %v879_v39  ;;  %v1061_v46 = vrot.slane %v1053_v31, %v4546_v19  ;;  %3659 = vmatmul.mubr.msk.f32.vlgmr.msra.gmra.mrb[6].mxu1 %vm333_vm3, %v4671_v43  ;;  %v1189_v12 = vrot.slane %v4711_v5, 6  ;;  %v1190_v16 = vrot.slane %v4711_v5, 7 }
 0x5ed   :  { %3820 = vmatpush3.bf16.msra.mxu0 %v4431_v22  ;;  %3823 = vmatpush3.bf16.msra.mxu1 %v4425_v17 }
 0x5ee   :  { %890 = vst.msk [vmem:[%s5261_s9 + $0x9] sm:$0x1] %vm508_vm9, %v886_v44  ;;  %v1062_v27 = vcombine.high %v1061_v46, %v1061_v46  ;;  %v1069_v47 = vrot.slane %v1061_v46, %v4546_v19  ;;  %3824 = vmatprep.subr.bf16.mxu1 %v4248_v15  ;;  %3680 = vmatprep.mubr.msk.f32.mxu1 %vm4249_vm2, %v4247_v0  ;;  %v1088_v10 = vpop.permute.xlu0 %1087 }
 0x5ef   :  { %3827 = vmatprep.subr.bf16.mxu0 %v4248_v15  ;;  %v4719_v13 = vsel %vm1044_vm13, %v1088_v10, %v4606_v61 }
 0x5f0   :  { %v1076_v49 = vrot.slane %v1062_v27, %v4546_v19  ;;  %1079 = vst.msk [vmem:[%s5262_s10 + $0x6] sm:$0x1] %vm508_vm9, %v1069_v47  ;;  %v1380_v1 = vrot.slane %v4719_v13, 3  ;;  %v1381_v21 = vrot.slane %v4719_v13, 4 }
 0x5f1   :  { %3826 = vmatpush3.bf16.msra.mxu1 %v4435_v23 }
 0x5f2   :  { %1080 = vst.msk [vmem:[%s5262_s10 + $0xe] sm:$0x1] %vm508_vm9, %v1076_v49  ;;  %3833 = vmatprep.subr.bf16.mxu1 %v4248_v15 }
 0x6bb   :  { %v1163_v50 = vpop.f32.mrb[6].mxu0 }
 0x6bc   :  { %v1168_v51 = vrot.slane %v1163_v50, 6  ;;  %v1169_v54 = vrot.slane %v1163_v50, 7  ;;  %v3649_v55 = vpop.f32.mrb[7].mxu0 }
 0x6be   :  { %v1172_v57 = vadd.f32 %v1168_v51, %v4487_v45  ;;  %v1173_v59 = vadd.f32 %v1169_v54, %v4475_v32 }
 0x6bf   :  { %v1354_v60 = vpop.f32.mrb[6].mxu1 }
 0x6c0   :  { %3955 = vtanh.f32 %v1172_v57  ;;  %v1359_v62 = vrot.slane %v1354_v60, 3  ;;  %v3660_v63 = vpop.f32.mrb[7].mxu1  ;;  %v1360_v2 = vrot.slane %v1354_v60, 4  ;;  %v3447_v26 = vmul.f32 -1.442695, %v1172_v57 }
 0x6c1   :  { %3957 = vtanh.f32 %v1173_v59  ;;  %v3448_v29 = vmul.f32 -1.442695, %v1173_v59 }
 0x6c2   :  { %v1363_v52 = vadd.f32 %v1359_v62, %v4481_v41  ;;  %v1364_v3 = vadd.f32 %v1360_v2, %v4483_v42 }
 0x6c4   :  { %3959 = vtanh.f32 %v1363_v52  ;;  %v3451_v25 = vmul.f32 -1.442695, %v1363_v52  ;;  %v3452_v61 = vmul.f32 -1.442695, %v1364_v3 }
 0x6c5   :  { %3961 = vtanh.f32 %v1364_v3 }
 0x6c6   :  { %3963 = vpow2.f32 %v3447_v26 }
 0x6c7   :  { %3965 = vpow2.f32 %v3448_v29 }
 0x6c8   :  { %3967 = vpow2.f32 %v3451_v25 }
 0x6c9   :  { %3969 = vpow2.f32 %v3452_v61 }
 0x6ca   :  { %v3956_v4 = vpop.eup %3955 }
 0x6cb   :  { %v3958_v48 = vpop.eup %3957  ;;  %1201 = vrot.lane.b32.xlu1 %v3956_v4, %s4250_s5 }
 0x6cc   :  { %1203 = vrot.lane.b32.xlu0 %v3958_v48, %s4250_s5 }
 0x6ce   :  { %v3960_v9 = vpop.eup %3959 }
 0x6cf   :  { %v3962_v8 = vpop.eup %3961  ;;  %1392 = vrot.lane.b32.xlu1 %v3960_v9, %s4250_s5 }
 0x6d0   :  { %1394 = vrot.lane.b32.xlu0 %v3962_v8, %s4250_s5  ;;  %v3964_v33 = vpop.eup %3963 }
 0x6d1   :  { %v3966_v34 = vpop.eup %3965  ;;  %v1180_v35 = vadd.f32 1.0, %v3964_v33 }
 0x6d2   :  { %v3968_v28 = vpop.eup %3967  ;;  %v1181_v30 = vadd.f32 1.0, %v3966_v34 }
 0x6d3   :  { %1191 = vrot.lane.b32.xlu1 %v1189_v12, %s4251_s8  ;;  %v3970_v18 = vpop.eup %3969  ;;  %3971 = vrcp.f32 %v1180_v35  ;;  %v1371_v24 = vadd.f32 1.0, %v3968_v28  ;;  %v4741_v28 = vsel %vm3445_vm14, 1, %v4252_v20 }
 0x6d4   :  { %1193 = vrot.lane.b32.xlu0 %v1190_v16, %s4251_s8  ;;  %3973 = vrcp.f32 %v1181_v30  ;;  %v1372_v37 = vadd.f32 1.0, %v3970_v18  ;;  %v4744_v30 = vsel %vm3449_vm15, 1, %v4252_v20 }
 0x6d5   :  { %3975 = vrcp.f32 %v1371_v24 }
 0x6d6   :  { %3977 = vrcp.f32 %v1372_v37 }
 0x6d7   :  { %1382 = vrot.lane.b32.xlu1 %v1380_v1, %s4251_s8 }
 0x6d8   :  { %1384 = vrot.lane.b32.xlu0 %v1381_v21, %s4251_s8 }
 0x6dd   :  { %v3972_v38 = vpop.eup %3971 }
 0x6de   :  { %v3974_v40 = vpop.eup %3973 }
 0x6df   :  { %v3976_v27 = vpop.eup %3975 }
 0x6e0   :  { %v3978_v49 = vpop.eup %3977 }
 0x73d   :  { %v1202_v39 = vpop.permute.xlu1 %1201 }
 0x73e   :  { %v1204_v31 = vpop.permute.xlu0 %1203  ;;  %v1207_v44 = vmul.f32 %v3972_v38, %v1202_v39 }
 0x73f   :  { %v1208_v46 = vmul.f32 %v3974_v40, %v1204_v31 }
 0x740   :  { %1211 = vrot.lane.b32.xlu1 %v1207_v44, %s4251_s8 }
 0x741   :  { %1213 = vrot.lane.b32.xlu0 %v1208_v46, %s4251_s8  ;;  %v1393_v47 = vpop.permute.xlu1 %1392 }
 0x742   :  { %v1395_v50 = vpop.permute.xlu0 %1394  ;;  %v1398_v51 = vmul.f32 %v3976_v27, %v1393_v47 }
 0x743   :  { %v1399_v54 = vmul.f32 %v3978_v49, %v1395_v50 }
 0x744   :  { %1402 = vrot.lane.b32.xlu1 %v1398_v51, %s4251_s8 }
 0x745   :  { %1404 = vrot.lane.b32.xlu0 %v1399_v54, %s4251_s8  ;;  %v1192_v55 = vpop.permute.xlu1 %1191 }
 0x746   :  { %v1194_v57 = vpop.permute.xlu0 %1193  ;;  %v1197_v62 = vmul.f32 %v3972_v38, %v1192_v55 }
 0x747   :  { %v1198_v63 = vmul.f32 %v3974_v40, %v1194_v57 }
 0x749   :  { %v1383_v59 = vpop.permute.xlu1 %1382 }
 0x74a   :  { %v1385_v60 = vpop.permute.xlu0 %1384  ;;  %v1388_v48 = vmul.f32 %v3976_v27, %v1383_v59 }
 0x74b   :  { %v1389_v9 = vmul.f32 %v3978_v49, %v1385_v60 }
 0x7b2   :  { %v1212_v2 = vpop.permute.xlu1 %1211 }
 0x7b3   :  { %v1214_v52 = vpop.permute.xlu0 %1213  ;;  %v1217_v3 = vadd.f32 %v1212_v2, %v1197_v62 }
 0x7b4   :  { %v1218_v4 = vadd.f32 %v1214_v52, %v1198_v63 }
 0x7b5   :  { %3979 = vtanh.f32 %v1217_v3  ;;  %v1275_v6 = vrot.slane %v1217_v3, 2 }
 0x7b6   :  { %3981 = vtanh.f32 %v1218_v4  ;;  %v1276_v8 = vrot.slane %v1218_v4, 1  ;;  %v1403_v10 = vpop.permute.xlu1 %1402 }
 0x7b7   :  { %v1405_v12 = vpop.permute.xlu0 %1404  ;;  %v1408_v16 = vadd.f32 %v1403_v10, %v1388_v48 }
 0x7b8   :  { %v1409_v1 = vadd.f32 %v1405_v12, %v1389_v9  ;;  %v1277_v21 = vsel %vm477_vm4, %v1276_v8, %v1275_v6 }
 0x7b9   :  { %3983 = vtanh.f32 %v1408_v16  ;;  %v1466_v26 = vrot.slane %v1408_v16, 5 }
 0x7ba   :  { %3985 = vtanh.f32 %v1409_v1  ;;  %v1467_v29 = vrot.slane %v1409_v1, 4 }
 0x7bc   :  { %v1468_v25 = vsel %vm477_vm4, %v1467_v29, %v1466_v26 }
 0x7bf   :  { %v3980_v61 = vpop.eup %3979 }
 0x7c0   :  { %v3982_v33 = vpop.eup %3981  ;;  %1223 = vrot.lane.b32.xlu1 %v3980_v61, %s4250_s5 }
 0x7c1   :  { %1225 = vrot.lane.b32.xlu0 %v3982_v33, %s4250_s5 }
 0x7c3   :  { %v3984_v34 = vpop.eup %3983 }
 0x7c4   :  { %v3986_v35 = vpop.eup %3985  ;;  %1414 = vrot.lane.b32.xlu1 %v3984_v34, %s4250_s5 }
 0x7c5   :  { %1416 = vrot.lane.b32.xlu0 %v3986_v35, %s4250_s5 }
 0x7c8   :  { %1233 = vperm.xlu1 %3890, %v4741_v28  }
 0x7c9   :  { %1424 = vperm.xlu0 %3889, %v4744_v30  }
 0x832   :  { %v1224_v18 = vpop.permute.xlu1 %1223 }
 0x833   :  { %v1226_v24 = vpop.permute.xlu0 %1225  ;;  %v1229_v37 = vmul.f32 %v3972_v38, %v1224_v18 }
 0x834   :  { %v1230_v39 = vmul.f32 %v3974_v40, %v1226_v24 }
 0x835   :  { %v1238_v31 = vrot.slane %v1229_v37, 2 }
 0x836   :  { %v1239_v44 = vrot.slane %v1230_v39, 1  ;;  %v1415_v46 = vpop.permute.xlu1 %1414 }
 0x837   :  { %v1417_v47 = vpop.permute.xlu0 %1416  ;;  %v1420_v50 = vmul.f32 %v3976_v27, %v1415_v46 }
 0x838   :  { %v1421_v51 = vmul.f32 %v3978_v49, %v1417_v47  ;;  %v1240_v54 = vsel %vm477_vm4, %v1239_v44, %v1238_v31 }
 0x839   :  { %v1429_v55 = vrot.slane %v1420_v50, 5  ;;  %1241 = vrot.lane.b32.xlu1 %v1240_v54, %s4251_s8 }
 0x83a   :  { %v1430_v57 = vrot.slane %v1421_v51, 4 }
 0x83c   :  { %v1431_v59 = vsel %vm477_vm4, %v1430_v57, %v1429_v55 }
 0x83d   :  { %1278 = vrot.lane.b32.xlu1 %v1277_v21, %s4253_s0  ;;  %1432 = vrot.lane.b32.xlu0 %v1431_v59, %s4251_s8 }
 0x841   :  { %1469 = vrot.lane.b32.xlu0 %v1468_v25, %s4253_s0 }
 0x847   :  { %v1234_v38 = vpop.permute.xlu1 %1233 }
 0x848   :  { %v4754_v40 = vpop.permute.xlu0 %1424  ;;  %vm1235_vm1 = vcmp.eq.s32.totalorder %v1234_v38, 1 }
 0x849   :  { %vm1426_vm5 = vcmp.eq.s32.totalorder %v4754_v40, 1 }
 0x8ab   :  { %v1242_v27 = vpop.permute.xlu1 %1241 }
 0x8ac   :  { %v1244_v49 = vsel %vm1235_vm1, %v1242_v27, 0.0  ;;  %v4759_v60 = vsel %vm1235_vm1, %v1242_v27, %v4655_v36 }
 0x8ad   :  { %v1252_v62 = vrot.slane %v1244_v49, %v4546_v19  ;;  %3670 = vmatmul.mubr.msk.f32.vlgmr.msra.gmra.mrb[8].mxu0 %vm333_vm3, %v4759_v60 }
 0x8ae   :  { %3829 = vmatpush3.bf16.msra.mxu0 %v4419_v14  ;;  %3691 = vmatprep.mubr.msk.f32.mxu0 %vm4249_vm2, %v4247_v0 }
 0x8af   :  { %v1253_v63 = vcombine.high %v1252_v62, %v1252_v62  ;;  %v1260_v2 = vrot.slane %v1252_v62, %v4546_v19  ;;  %v1433_v52 = vpop.permute.xlu0 %1432  ;;  %3830 = vmatprep.subr.bf16.mxu0 %v4248_v15  ;;  %v1279_v24 = vpop.permute.xlu1 %1278 }
 0x8b0   :  { %v1435_v36 = vsel %vm1426_vm5, %v1433_v52, 0.0  ;;  %v4775_v3 = vsel %vm1426_vm5, %v1433_v52, %v4671_v43  ;;  %v4815_v39 = vsel %vm1235_vm1, %v1279_v24, %v4711_v5 }
 0x8b1   :  { %v1267_v4 = vrot.slane %v1253_v63, %v4546_v19  ;;  %1270 = vst.msk [vmem:[%s5261_s9 + $0x2] sm:$0x1] %vm508_vm9, %v1260_v2  ;;  %v1443_v48 = vrot.slane %v1435_v36, %v4546_v19  ;;  %3681 = vmatmul.mubr.msk.f32.vlgmr.msra.gmra.mrb[8].mxu1 %vm333_vm3, %v4775_v3  ;;  %v1571_v46 = vrot.slane %v4815_v39, 5  ;;  %v1572_v50 = vrot.slane %v4815_v39, 6 }
 0x8b2   :  { %3832 = vmatpush3.bf16.msra.mxu0 %v4431_v22  ;;  %3835 = vmatpush3.bf16.msra.mxu1 %v4425_v17 }
 0x8b3   :  { %1271 = vst.msk [vmem:[%s5261_s9 + $0xa] sm:$0x1] %vm508_vm9, %v1267_v4  ;;  %v1444_v43 = vcombine.high %v1443_v48, %v1443_v48  ;;  %v1451_v6 = vrot.slane %v1443_v48, %v4546_v19  ;;  %3836 = vmatprep.subr.bf16.mxu1 %v4248_v15  ;;  %3702 = vmatprep.mubr.msk.f32.mxu1 %vm4249_vm2, %v4247_v0  ;;  %v1470_v44 = vpop.permute.xlu0 %1469 }
 0x8b4   :  { %3839 = vmatprep.subr.bf16.mxu0 %v4248_v15  ;;  %v4823_v47 = vsel %vm1426_vm5, %v1470_v44, %v4719_v13 }
 0x8b5   :  { %v1458_v9 = vrot.slane %v1444_v43, %v4546_v19  ;;  %1461 = vst.msk [vmem:[%s5262_s10 + $0x5] sm:$0x1] %vm508_vm9, %v1451_v6  ;;  %v1762_v5 = vrot.slane %v4823_v47, 4  ;;  %v1763_v51 = vrot.slane %v4823_v47, 5 }
 0x8b6   :  { %3838 = vmatpush3.bf16.msra.mxu1 %v4435_v23 }
 0x8b7   :  { %1462 = vst.msk [vmem:[%s5262_s10 + $0xd] sm:$0x1] %vm508_vm9, %v1458_v9  ;;  %3845 = vmatprep.subr.bf16.mxu1 %v4248_v15 }
 0x980   :  { %v1545_v8 = vpop.f32.mrb[8].mxu0 }
 0x981   :  { %v1550_v10 = vrot.slane %v1545_v8, 5  ;;  %v1551_v12 = vrot.slane %v1545_v8, 6  ;;  %v3671_v16 = vpop.f32.mrb[9].mxu0 }
 0x983   :  { %v1554_v1 = vadd.f32 %v1550_v10, %v4487_v45  ;;  %v1555_v21 = vadd.f32 %v1551_v12, %v4475_v32 }
 0x984   :  { %v1736_v26 = vpop.f32.mrb[8].mxu1 }
 0x985   :  { %3987 = vtanh.f32 %v1554_v1  ;;  %v1741_v29 = vrot.slane %v1736_v26, 4  ;;  %v3682_v25 = vpop.f32.mrb[9].mxu1  ;;  %v1742_v61 = vrot.slane %v1736_v26, 5  ;;  %v3455_v54 = vmul.f32 -1.442695, %v1554_v1 }
 0x986   :  { %3989 = vtanh.f32 %v1555_v21  ;;  %v3456_v55 = vmul.f32 -1.442695, %v1555_v21 }
 0x987   :  { %v1745_v33 = vadd.f32 %v1741_v29, %v4481_v41  ;;  %v1746_v34 = vadd.f32 %v1742_v61, %v4483_v42 }
 0x989   :  { %3991 = vtanh.f32 %v1745_v33  ;;  %v3459_v57 = vmul.f32 -1.442695, %v1745_v33  ;;  %v3460_v13 = vmul.f32 -1.442695, %v1746_v34 }
 0x98a   :  { %3993 = vtanh.f32 %v1746_v34 }
 0x98b   :  { %3995 = vpow2.f32 %v3455_v54 }
 0x98c   :  { %3997 = vpow2.f32 %v3456_v55 }
 0x98d   :  { %3999 = vpow2.f32 %v3459_v57 }
 0x98e   :  { %4001 = vpow2.f32 %v3460_v13 }
 0x98f   :  { %v3988_v35 = vpop.eup %3987 }
 0x990   :  { %v3990_v18 = vpop.eup %3989  ;;  %1583 = vrot.lane.b32.xlu1 %v3988_v35, %s4250_s5 }
 0x991   :  { %1585 = vrot.lane.b32.xlu0 %v3990_v18, %s4250_s5 }
 0x993   :  { %v3992_v37 = vpop.eup %3991 }
 0x994   :  { %v3994_v31 = vpop.eup %3993  ;;  %1774 = vrot.lane.b32.xlu1 %v3992_v37, %s4250_s5 }
 0x995   :  { %1776 = vrot.lane.b32.xlu0 %v3994_v31, %s4250_s5  ;;  %v3996_v59 = vpop.eup %3995 }
 0x996   :  { %v3998_v38 = vpop.eup %3997  ;;  %v1562_v40 = vadd.f32 1.0, %v3996_v59 }
 0x997   :  { %v4000_v27 = vpop.eup %3999  ;;  %v1563_v49 = vadd.f32 1.0, %v3998_v38 }
 0x998   :  { %1573 = vrot.lane.b32.xlu1 %v1571_v46, %s4251_s8  ;;  %v4002_v62 = vpop.eup %4001  ;;  %4003 = vrcp.f32 %v1562_v40  ;;  %v1753_v63 = vadd.f32 1.0, %v4000_v27 }
 0x999   :  { %1575 = vrot.lane.b32.xlu0 %v1572_v50, %s4251_s8  ;;  %4005 = vrcp.f32 %v1563_v49  ;;  %v1754_v2 = vadd.f32 1.0, %v4002_v62  ;;  %v4845_v62 = vsel %vm3453_vm6, 1, %v4252_v20 }
 0x99a   :  { %4007 = vrcp.f32 %v1753_v63  ;;  %v4848_v63 = vsel %vm3457_vm7, 1, %v4252_v20 }
 0x99b   :  { %4009 = vrcp.f32 %v1754_v2 }
 0x99c   :  { %1764 = vrot.lane.b32.xlu1 %v1762_v5, %s4251_s8 }
 0x99d   :  { %1766 = vrot.lane.b32.xlu0 %v1763_v51, %s4251_s8 }
 0x9a2   :  { %v4004_v52 = vpop.eup %4003 }
 0x9a3   :  { %v4006_v4 = vpop.eup %4005 }
 0x9a4   :  { %v4008_v9 = vpop.eup %4007 }
 0x9a5   :  { %v4010_v10 = vpop.eup %4009 }
 0xa02   :  { %v1584_v36 = vpop.permute.xlu1 %1583 }
 0xa03   :  { %v1586_v48 = vpop.permute.xlu0 %1585  ;;  %v1589_v43 = vmul.f32 %v4004_v52, %v1584_v36 }
 0xa04   :  { %v1590_v6 = vmul.f32 %v4006_v4, %v1586_v48 }
 0xa05   :  { %1593 = vrot.lane.b32.xlu1 %v1589_v43, %s4251_s8 }
 0xa06   :  { %1595 = vrot.lane.b32.xlu0 %v1590_v6, %s4251_s8  ;;  %v1775_v8 = vpop.permute.xlu1 %1774 }
 0xa07   :  { %v1777_v12 = vpop.permute.xlu0 %1776  ;;  %v1780_v16 = vmul.f32 %v4008_v9, %v1775_v8 }
 0xa08   :  { %v1781_v1 = vmul.f32 %v4010_v10, %v1777_v12 }
 0xa09   :  { %1784 = vrot.lane.b32.xlu1 %v1780_v16, %s4251_s8 }
 0xa0a   :  { %1786 = vrot.lane.b32.xlu0 %v1781_v1, %s4251_s8  ;;  %v1574_v21 = vpop.permute.xlu1 %1573 }
 0xa0b   :  { %v1576_v26 = vpop.permute.xlu0 %1575  ;;  %v1579_v61 = vmul.f32 %v4004_v52, %v1574_v21 }
 0xa0c   :  { %v1580_v33 = vmul.f32 %v4006_v4, %v1576_v26 }
 0xa0e   :  { %v1765_v29 = vpop.permute.xlu1 %1764 }
 0xa0f   :  { %v1767_v25 = vpop.permute.xlu0 %1766  ;;  %v1770_v37 = vmul.f32 %v4008_v9, %v1765_v29 }
 0xa10   :  { %v1771_v44 = vmul.f32 %v4010_v10, %v1767_v25 }
 0xa77   :  { %v1594_v34 = vpop.permute.xlu1 %1593 }
 0xa78   :  { %v1596_v35 = vpop.permute.xlu0 %1595  ;;  %v1599_v18 = vadd.f32 %v1594_v34, %v1579_v61 }
 0xa79   :  { %v1600_v24 = vadd.f32 %v1596_v35, %v1580_v33 }
 0xa7a   :  { %4011 = vtanh.f32 %v1599_v18  ;;  %v1657_v31 = vrot.slane %v1599_v18, 3 }
 0xa7b   :  { %4013 = vtanh.f32 %v1600_v24  ;;  %v1658_v46 = vrot.slane %v1600_v24, 2  ;;  %v1785_v50 = vpop.permute.xlu1 %1784 }
 0xa7c   :  { %v1787_v5 = vpop.permute.xlu0 %1786  ;;  %v1790_v51 = vadd.f32 %v1785_v50, %v1770_v37 }
 0xa7d   :  { %v1791_v54 = vadd.f32 %v1787_v5, %v1771_v44  ;;  %v1659_v55 = vsel %vm477_vm4, %v1658_v46, %v1657_v31 }
 0xa7e   :  { %4015 = vtanh.f32 %v1790_v51  ;;  %v1848_v57 = vrot.slane %v1790_v51, 4 }
 0xa7f   :  { %4017 = vtanh.f32 %v1791_v54  ;;  %v1849_v13 = vrot.slane %v1791_v54, 3 }
 0xa81   :  { %v1850_v59 = vsel %vm477_vm4, %v1849_v13, %v1848_v57 }
 0xa84   :  { %v4012_v38 = vpop.eup %4011 }
 0xa85   :  { %v4014_v40 = vpop.eup %4013  ;;  %1605 = vrot.lane.b32.xlu1 %v4012_v38, %s4250_s5 }
 0xa86   :  { %1607 = vrot.lane.b32.xlu0 %v4014_v40, %s4250_s5 }
 0xa88   :  { %v4016_v27 = vpop.eup %4015 }
 0xa89   :  { %v4018_v49 = vpop.eup %4017  ;;  %1796 = vrot.lane.b32.xlu1 %v4016_v27, %s4250_s5 }
 0xa8a   :  { %1798 = vrot.lane.b32.xlu0 %v4018_v49, %s4250_s5 }
 0xa8d   :  { %1615 = vperm.xlu1 %3890, %v4845_v62  }
 0xa8e   :  { %1806 = vperm.xlu0 %3889, %v4848_v63  }
 0xaf7   :  { %v1606_v2 = vpop.permute.xlu1 %1605 }
 0xaf8   :  { %v1608_v36 = vpop.permute.xlu0 %1607  ;;  %v1611_v48 = vmul.f32 %v4004_v52, %v1606_v2 }
 0xaf9   :  { %v1612_v43 = vmul.f32 %v4006_v4, %v1608_v36 }
 0xafa   :  { %v1620_v53 = vrot.slane %v1611_v48, 3 }
 0xafb   :  { %v1621_v6 = vrot.slane %v1612_v43, 2  ;;  %v1797_v8 = vpop.permute.xlu1 %1796 }
 0xafc   :  { %v1799_v12 = vpop.permute.xlu0 %1798  ;;  %v1802_v16 = vmul.f32 %v4008_v9, %v1797_v8 }
 0xafd   :  { %v1803_v1 = vmul.f32 %v4010_v10, %v1799_v12  ;;  %v1622_v21 = vsel %vm477_vm4, %v1621_v6, %v1620_v53 }
 0xafe   :  { %v1811_v26 = vrot.slane %v1802_v16, 4  ;;  %1623 = vrot.lane.b32.xlu1 %v1622_v21, %s4251_s8 }
 0xaff   :  { %v1812_v20 = vrot.slane %v1803_v1, 3 }
 0xb01   :  { %v1813_v29 = vsel %vm477_vm4, %v1812_v20, %v1811_v26 }
 0xb02   :  { %1660 = vrot.lane.b32.xlu1 %v1659_v55, %s4253_s0  ;;  %1814 = vrot.lane.b32.xlu0 %v1813_v29, %s4251_s8 }
 0xb06   :  { %1851 = vrot.lane.b32.xlu0 %v1850_v59, %s4253_s0 }
 0xb0c   :  { %v1616_v52 = vpop.permute.xlu1 %1615 }
 0xb0d   :  { %v4858_v4 = vpop.permute.xlu0 %1806  ;;  %vm1617_vm8 = vcmp.eq.s32.totalorder %v1616_v52, 1 }
 0xb0e   :  { %vm1808_vm10 = vcmp.eq.s32.totalorder %v4858_v4, 1 }
 0xb70   :  { %v1624_v9 = vpop.permute.xlu1 %1623 }
 0xb71   :  { %v1626_v10 = vsel %vm1617_vm8, %v1624_v9, 0.0  ;;  %v4863_v25 = vsel %vm1617_vm8, %v1624_v9, %v4759_v60 }
 0xb72   :  { %v1634_v61 = vrot.slane %v1626_v10, %v4546_v19  ;;  %3692 = vmatmul.mubr.msk.f32.vlgmr.msra.gmra.mrb[10].mxu0 %vm333_vm3, %v4863_v25 }
 0xb73   :  { %3841 = vmatpush3.bf16.msra.mxu0 %v4419_v14  ;;  %3713 = vmatprep.mubr.msk.f32.mxu0 %vm4249_vm2, %v4247_v0 }
 0xb74   :  { %v1635_v33 = vcombine.high %v1634_v61, %v1634_v61  ;;  %v1642_v34 = vrot.slane %v1634_v61, %v4546_v19  ;;  %v1815_v35 = vpop.permute.xlu0 %1814  ;;  %3842 = vmatprep.subr.bf16.mxu0 %v4248_v15  ;;  %v1661_v36 = vpop.permute.xlu1 %1660 }
 0xb75   :  { %v1817_v60 = vsel %vm1808_vm10, %v1815_v35, 0.0  ;;  %v4879_v18 = vsel %vm1808_vm10, %v1815_v35, %v4775_v3  ;;  %v4919_v43 = vsel %vm1617_vm8, %v1661_v36, %v4815_v39 }
 0xb76   :  { %v1649_v24 = vrot.slane %v1635_v33, %v4546_v19  ;;  %1652 = vst.msk [vmem:[%s5261_s9 + $0x3] sm:$0x1] %vm508_vm9, %v1642_v34  ;;  %v1825_v37 = vrot.slane %v1817_v60, %v4546_v19  ;;  %3703 = vmatmul.mubr.msk.f32.vlgmr.msra.gmra.mrb[10].mxu1 %vm333_vm3, %v4879_v18  ;;  %v1953_v8 = vrot.slane %v4919_v43, 4  ;;  %v1954_v16 = vrot.slane %v4919_v43, 5 }
 0xb77   :  { %3844 = vmatpush3.bf16.msra.mxu0 %v4431_v22  ;;  %3847 = vmatpush3.bf16.msra.mxu1 %v4425_v17 }
 0xb78   :  { %1653 = vst.msk [vmem:[%s5261_s9 + $0xb] sm:$0x1] %vm508_vm9, %v1649_v24  ;;  %v1826_v3 = vcombine.high %v1825_v37, %v1825_v37  ;;  %v1833_v31 = vrot.slane %v1825_v37, %v4546_v19  ;;  %3848 = vmatprep.subr.bf16.mxu1 %v4248_v15  ;;  %3724 = vmatprep.mubr.msk.f32.mxu1 %vm4249_vm2, %v4247_v0  ;;  %v1852_v6 = vpop.permute.xlu0 %1851 }
 0xb79   :  { %3851 = vmatprep.subr.bf16.mxu0 %v4248_v15  ;;  %v4927_v12 = vsel %vm1808_vm10, %v1852_v6, %v4823_v47 }
 0xb7a   :  { %v1840_v44 = vrot.slane %v1826_v3, %v4546_v19  ;;  %1843 = vst.msk [vmem:[%s5262_s10 + $0x4] sm:$0x1] %vm508_vm9, %v1833_v31  ;;  %v2144_v39 = vrot.slane %v4927_v12, 5  ;;  %v2145_v1 = vrot.slane %v4927_v12, 6 }
 0xb7b   :  { %3850 = vmatpush3.bf16.msra.mxu1 %v4435_v23 }
 0xb7c   :  { %1844 = vst.msk [vmem:[%s5262_s10 + $0xc] sm:$0x1] %vm508_vm9, %v1840_v44  ;;  %3857 = vmatprep.subr.bf16.mxu1 %v4248_v15 }
 0xc45   :  { %v1927_v46 = vpop.f32.mrb[10].mxu0 }
 0xc46   :  { %v1932_v50 = vrot.slane %v1927_v46, 4  ;;  %v1933_v5 = vrot.slane %v1927_v46, 5  ;;  %v3693_v51 = vpop.f32.mrb[11].mxu0 }
 0xc48   :  { %v1936_v54 = vadd.f32 %v1932_v50, %v4487_v45  ;;  %v1937_v55 = vadd.f32 %v1933_v5, %v4475_v32 }
 0xc49   :  { %v2118_v57 = vpop.f32.mrb[10].mxu1 }
 0xc4a   :  { %4019 = vtanh.f32 %v1936_v54  ;;  %v2123_v13 = vrot.slane %v2118_v57, 5  ;;  %v3704_v59 = vpop.f32.mrb[11].mxu1  ;;  %v2124_v38 = vrot.slane %v2118_v57, 6  ;;  %v3463_v21 = vmul.f32 -1.442695, %v1936_v54 }
 0xc4b   :  { %4021 = vtanh.f32 %v1937_v55  ;;  %v3464_v26 = vmul.f32 -1.442695, %v1937_v55 }
 0xc4c   :  { %v2127_v40 = vadd.f32 %v2123_v13, %v4481_v41  ;;  %v2128_v27 = vadd.f32 %v2124_v38, %v4483_v42 }
 0xc4e   :  { %4023 = vtanh.f32 %v2127_v40  ;;  %v3467_v20 = vmul.f32 -1.442695, %v2127_v40  ;;  %v3468_v47 = vmul.f32 -1.442695, %v2128_v27 }
 0xc4f   :  { %4025 = vtanh.f32 %v2128_v27 }
 0xc50   :  { %4027 = vpow2.f32 %v3463_v21 }
 0xc51   :  { %4029 = vpow2.f32 %v3464_v26 }
 0xc52   :  { %4031 = vpow2.f32 %v3467_v20 }
 0xc53   :  { %4033 = vpow2.f32 %v3468_v47 }
 0xc54   :  { %v4020_v49 = vpop.eup %4019 }
 0xc55   :  { %v4022_v2 = vpop.eup %4021  ;;  %1965 = vrot.lane.b32.xlu1 %v4020_v49, %s4250_s5 }
 0xc56   :  { %1967 = vrot.lane.b32.xlu0 %v4022_v2, %s4250_s5 }
 0xc58   :  { %v4024_v48 = vpop.eup %4023 }
 0xc59   :  { %v4026_v53 = vpop.eup %4025  ;;  %2156 = vrot.lane.b32.xlu1 %v4024_v48, %s4250_s5 }
 0xc5a   :  { %2158 = vrot.lane.b32.xlu0 %v4026_v53, %s4250_s5  ;;  %v4028_v29 = vpop.eup %4027 }
 0xc5b   :  { %v4030_v52 = vpop.eup %4029  ;;  %v1944_v4 = vadd.f32 1.0, %v4028_v29 }
 0xc5c   :  { %v4032_v9 = vpop.eup %4031  ;;  %v1945_v10 = vadd.f32 1.0, %v4030_v52 }
 0xc5d   :  { %1955 = vrot.lane.b32.xlu1 %v1953_v8, %s4251_s8  ;;  %v4034_v61 = vpop.eup %4033  ;;  %4035 = vrcp.f32 %v1944_v4  ;;  %v2135_v33 = vadd.f32 1.0, %v4032_v9 }
 0xc5e   :  { %1957 = vrot.lane.b32.xlu0 %v1954_v16, %s4251_s8  ;;  %4037 = vrcp.f32 %v1945_v10  ;;  %v2136_v34 = vadd.f32 1.0, %v4034_v61 }
 0xc5f   :  { %4039 = vrcp.f32 %v2135_v33 }
 0xc60   :  { %4041 = vrcp.f32 %v2136_v34 }
 0xc61   :  { %2146 = vrot.lane.b32.xlu1 %v2144_v39, %s4251_s8 }
 0xc62   :  { %2148 = vrot.lane.b32.xlu0 %v2145_v1, %s4251_s8 }
 0xc67   :  { %v4036_v35 = vpop.eup %4035 }
 0xc68   :  { %v4038_v24 = vpop.eup %4037 }
 0xc69   :  { %v4040_v44 = vpop.eup %4039 }
 0xc6a   :  { %v4042_v50 = vpop.eup %4041 }
 0xcc7   :  { %v1966_v60 = vpop.permute.xlu1 %1965 }
 0xcc8   :  { %v1968_v37 = vpop.permute.xlu0 %1967  ;;  %v1971_v3 = vmul.f32 %v4036_v35, %v1966_v60 }
 0xcc9   :  { %v1972_v31 = vmul.f32 %v4038_v24, %v1968_v37 }
 0xcca   :  { %1975 = vrot.lane.b32.xlu1 %v1971_v3, %s4251_s8 }
 0xccb   :  { %1977 = vrot.lane.b32.xlu0 %v1972_v31, %s4251_s8  ;;  %v2157_v46 = vpop.permute.xlu1 %2156 }
 0xccc   :  { %v2159_v5 = vpop.permute.xlu0 %2158  ;;  %v2162_v51 = vmul.f32 %v4040_v44, %v2157_v46 }
 0xccd   :  { %v2163_v54 = vmul.f32 %v4042_v50, %v2159_v5 }
 0xcce   :  { %2166 = vrot.lane.b32.xlu1 %v2162_v51, %s4251_s8 }
 0xccf   :  { %2168 = vrot.lane.b32.xlu0 %v2163_v54, %s4251_s8  ;;  %v1956_v55 = vpop.permute.xlu1 %1955 }
 0xcd0   :  { %v1958_v57 = vpop.permute.xlu0 %1957  ;;  %v1961_v38 = vmul.f32 %v4036_v35, %v1956_v55 }
 0xcd1   :  { %v1962_v40 = vmul.f32 %v4038_v24, %v1958_v57 }
 0xcd3   :  { %v2147_v13 = vpop.permute.xlu1 %2146 }
 0xcd4   :  { %v2149_v59 = vpop.permute.xlu0 %2148  ;;  %v2152_v48 = vmul.f32 %v4040_v44, %v2147_v13 }
 0xcd5   :  { %v2153_v6 = vmul.f32 %v4042_v50, %v2149_v59 }
 0xd3c   :  { %v1976_v27 = vpop.permute.xlu1 %1975 }
 0xd3d   :  { %v1978_v49 = vpop.permute.xlu0 %1977  ;;  %v1981_v2 = vadd.f32 %v1976_v27, %v1961_v38 }
 0xd3e   :  { %v1982_v36 = vadd.f32 %v1978_v49, %v1962_v40 }
 0xd3f   :  { %4043 = vtanh.f32 %v1981_v2  ;;  %v2039_v53 = vrot.slane %v1981_v2, 4 }
 0xd40   :  { %4045 = vtanh.f32 %v1982_v36  ;;  %v2040_v8 = vrot.slane %v1982_v36, 3  ;;  %v2167_v16 = vpop.permute.xlu1 %2166 }
 0xd41   :  { %v2169_v39 = vpop.permute.xlu0 %2168  ;;  %v2172_v1 = vadd.f32 %v2167_v16, %v2152_v48 }
 0xd42   :  { %v2173_v21 = vadd.f32 %v2169_v39, %v2153_v6  ;;  %v2041_v26 = vsel %vm477_vm4, %v2040_v8, %v2039_v53 }
 0xd43   :  { %4047 = vtanh.f32 %v2172_v1  ;;  %v2230_v20 = vrot.slane %v2172_v1, 3 }
 0xd44   :  { %4049 = vtanh.f32 %v2173_v21  ;;  %v2231_v47 = vrot.slane %v2173_v21, 2 }
 0xd46   :  { %v2232_v29 = vsel %vm477_vm4, %v2231_v47, %v2230_v20 }
 0xd49   :  { %v4044_v52 = vpop.eup %4043 }
 0xd4a   :  { %v4046_v4 = vpop.eup %4045  ;;  %1987 = vrot.lane.b32.xlu1 %v4044_v52, %s4250_s5 }
 0xd4b   :  { %1989 = vrot.lane.b32.xlu0 %v4046_v4, %s4250_s5 }
 0xd4d   :  { %v4048_v9 = vpop.eup %4047 }
 0xd4e   :  { %v4050_v10 = vpop.eup %4049  ;;  %2178 = vrot.lane.b32.xlu1 %v4048_v9, %s4250_s5 }
 0xd4f   :  { %2180 = vrot.lane.b32.xlu0 %v4050_v10, %s4250_s5 }
 0xd52   :  { %1997 = vperm.xlu1 %3890, %v4848_v63  }
 0xd53   :  { %2188 = vperm.xlu0 %3889, %v4845_v62  }
 0xdbc   :  { %v1988_v61 = vpop.permute.xlu1 %1987 }
 0xdbd   :  { %v1990_v33 = vpop.permute.xlu0 %1989  ;;  %v1993_v34 = vmul.f32 %v4036_v35, %v1988_v61 }
 0xdbe   :  { %v1994_v60 = vmul.f32 %v4038_v24, %v1990_v33 }
 0xdbf   :  { %v2002_v37 = vrot.slane %v1993_v34, 4 }
 0xdc0   :  { %v2003_v3 = vrot.slane %v1994_v60, 3  ;;  %v2179_v31 = vpop.permute.xlu1 %2178 }
 0xdc1   :  { %v2181_v46 = vpop.permute.xlu0 %2180  ;;  %v2184_v5 = vmul.f32 %v4040_v44, %v2179_v31 }
 0xdc2   :  { %v2185_v51 = vmul.f32 %v4042_v50, %v2181_v46  ;;  %v2004_v54 = vsel %vm477_vm4, %v2003_v3, %v2002_v37 }
 0xdc3   :  { %v2193_v55 = vrot.slane %v2184_v5, 3  ;;  %2005 = vrot.lane.b32.xlu1 %v2004_v54, %s4251_s8 }
 0xdc4   :  { %v2194_v57 = vrot.slane %v2185_v51, 2 }
 0xdc6   :  { %v2195_v63 = vsel %vm477_vm4, %v2194_v57, %v2193_v55 }
 0xdc7   :  { %2042 = vrot.lane.b32.xlu1 %v2041_v26, %s4253_s0  ;;  %2196 = vrot.lane.b32.xlu0 %v2195_v63, %s4251_s8 }
 0xdcb   :  { %2233 = vrot.lane.b32.xlu0 %v2232_v29, %s4253_s0 }
 0xdd1   :  { %v1998_v62 = vpop.permute.xlu1 %1997 }
 0xdd2   :  { %v4954_v35 = vpop.permute.xlu0 %2188  ;;  %vm1999_vm11 = vcmp.eq.s32.totalorder %v1998_v62, 1 }
 0xdd3   :  { %vm2190_vm12 = vcmp.eq.s32.totalorder %v4954_v35, 1 }
 0xe35   :  { %v2006_v24 = vpop.permute.xlu1 %2005 }
 0xe36   :  { %v2008_v44 = vsel %vm1999_vm11, %v2006_v24, 0.0  ;;  %v4959_v50 = vsel %vm1999_vm11, %v2006_v24, %v4863_v25 }
 0xe37   :  { %v2016_v13 = vrot.slane %v2008_v44, %v4546_v19  ;;  %3714 = vmatmul.mubr.msk.f32.vlgmr.msra.gmra.mrb[12].mxu0 %vm333_vm3, %v4959_v50 }
 0xe38   :  { %3853 = vmatpush3.bf16.msra.mxu0 %v4419_v14  ;;  %3735 = vmatprep.mubr.msk.f32.mxu0 %vm4249_vm2, %v4247_v0 }
 0xe39   :  { %v2017_v59 = vcombine.high %v2016_v13, %v2016_v13  ;;  %v2024_v38 = vrot.slane %v2016_v13, %v4546_v19  ;;  %v2197_v40 = vpop.permute.xlu0 %2196  ;;  %3854 = vmatprep.subr.bf16.mxu0 %v4248_v15  ;;  %v2043_v10 = vpop.permute.xlu1 %2042 }
 0xe3a   :  { %v2199_v25 = vsel %vm2190_vm12, %v2197_v40, 0.0  ;;  %v4975_v27 = vsel %vm2190_vm12, %v2197_v40, %v4879_v18  ;;  %v5015_v33 = vsel %vm1999_vm11, %v2043_v10, %v4919_v43 }
 0xe3b   :  { %v2031_v49 = vrot.slane %v2017_v59, %v4546_v19  ;;  %2034 = vst.msk [vmem:[%s5261_s9 + $0x4] sm:$0x1] %vm508_vm9, %v2024_v38  ;;  %v2207_v2 = vrot.slane %v2199_v25, %v4546_v19  ;;  %3725 = vmatmul.mubr.msk.f32.vlgmr.msra.gmra.mrb[12].mxu1 %vm333_vm3, %v4975_v27  ;;  %v2335_v37 = vrot.slane %v5015_v33, 3  ;;  %v2336_v3 = vrot.slane %v5015_v33, 4 }
 0xe3c   :  { %3856 = vmatpush3.bf16.msra.mxu0 %v4431_v22  ;;  %3859 = vmatpush3.bf16.msra.mxu1 %v4425_v17 }
 0xe3d   :  { %2035 = vst.msk [vmem:[%s5261_s9 + $0xc] sm:$0x1] %vm508_vm9, %v2031_v49  ;;  %v2208_v18 = vcombine.high %v2207_v2, %v2207_v2  ;;  %v2215_v36 = vrot.slane %v2207_v2, %v4546_v19  ;;  %3860 = vmatprep.subr.bf16.mxu1 %v4248_v15  ;;  %3746 = vmatprep.mubr.msk.f32.mxu1 %vm4249_vm2, %v4247_v0  ;;  %v2234_v60 = vpop.permute.xlu0 %2233 }
 0xe3e   :  { %3863 = vmatprep.subr.bf16.mxu0 %v4248_v15  ;;  %v5024_v31 = vsel %vm2190_vm12, %v2234_v60, %v4927_v12 }
 0xe3f   :  { %v2222_v48 = vrot.slane %v2208_v18, %v4546_v19  ;;  %2225 = vst.msk [vmem:[%s5262_s10 + $0x3] sm:$0x1] %vm508_vm9, %v2215_v36  ;;  %v2526_v43 = vrot.slane %v5024_v31, 6  ;;  %v2527_v46 = vrot.slane %v5024_v31, 7 }
 0xe40   :  { %3862 = vmatpush3.bf16.msra.mxu1 %v4435_v23 }
 0xe41   :  { %2226 = vst.msk [vmem:[%s5262_s10 + $0xb] sm:$0x1] %vm508_vm9, %v2222_v48  ;;  %3869 = vmatprep.subr.bf16.mxu1 %v4248_v15 }
 0xf0a   :  { %v2309_v53 = vpop.f32.mrb[12].mxu0 }
 0xf0b   :  { %v2314_v6 = vrot.slane %v2309_v53, 3  ;;  %v2315_v8 = vrot.slane %v2309_v53, 4  ;;  %v3715_v16 = vpop.f32.mrb[13].mxu0 }
 0xf0d   :  { %v2318_v39 = vadd.f32 %v2314_v6, %v4487_v45  ;;  %v2319_v1 = vadd.f32 %v2315_v8, %v4475_v32 }
 0xf0e   :  { %v2500_v21 = vpop.f32.mrb[12].mxu1 }
 0xf0f   :  { %4051 = vtanh.f32 %v2318_v39  ;;  %v2505_v26 = vrot.slane %v2500_v21, 6  ;;  %v3726_v20 = vpop.f32.mrb[13].mxu1  ;;  %v2506_v47 = vrot.slane %v2500_v21, 7  ;;  %v3471_v5 = vmul.f32 -1.442695, %v2318_v39 }
 0xf10   :  { %4053 = vtanh.f32 %v2319_v1  ;;  %v3472_v51 = vmul.f32 -1.442695, %v2319_v1 }
 0xf11   :  { %v2509_v29 = vadd.f32 %v2505_v26, %v4481_v41  ;;  %v2510_v52 = vadd.f32 %v2506_v47, %v4483_v42 }
 0xf13   :  { %4055 = vtanh.f32 %v2509_v29  ;;  %v3475_v54 = vmul.f32 -1.442695, %v2509_v29  ;;  %v3476_v55 = vmul.f32 -1.442695, %v2510_v52 }
 0xf14   :  { %4057 = vtanh.f32 %v2510_v52 }
 0xf15   :  { %4059 = vpow2.f32 %v3471_v5 }
 0xf16   :  { %4061 = vpow2.f32 %v3472_v51 }
 0xf17   :  { %4063 = vpow2.f32 %v3475_v54 }
 0xf18   :  { %4065 = vpow2.f32 %v3476_v55 }
 0xf19   :  { %v4052_v4 = vpop.eup %4051 }
 0xf1a   :  { %v4054_v9 = vpop.eup %4053  ;;  %2347 = vrot.lane.b32.xlu1 %v4052_v4, %s4250_s5 }
 0xf1b   :  { %2349 = vrot.lane.b32.xlu0 %v4054_v9, %s4250_s5 }
 0xf1d   :  { %v4056_v61 = vpop.eup %4055 }
 0xf1e   :  { %v4058_v34 = vpop.eup %4057  ;;  %2538 = vrot.lane.b32.xlu1 %v4056_v61, %s4250_s5 }
 0xf1f   :  { %2540 = vrot.lane.b32.xlu0 %v4058_v34, %s4250_s5  ;;  %v4060_v12 = vpop.eup %4059 }
 0xf20   :  { %v4062_v57 = vpop.eup %4061  ;;  %v2326_v63 = vadd.f32 1.0, %v4060_v12 }
 0xf21   :  { %v4064_v62 = vpop.eup %4063  ;;  %v2327_v35 = vadd.f32 1.0, %v4062_v57 }
 0xf22   :  { %2337 = vrot.lane.b32.xlu1 %v2335_v37, %s4251_s8  ;;  %v4066_v24 = vpop.eup %4065  ;;  %4067 = vrcp.f32 %v2326_v63  ;;  %v2517_v44 = vadd.f32 1.0, %v4064_v62 }
 0xf23   :  { %2339 = vrot.lane.b32.xlu0 %v2336_v3, %s4251_s8  ;;  %4069 = vrcp.f32 %v2327_v35  ;;  %v2518_v13 = vadd.f32 1.0, %v4066_v24 }
 0xf24   :  { %4071 = vrcp.f32 %v2517_v44 }
 0xf25   :  { %4073 = vrcp.f32 %v2518_v13 }
 0xf26   :  { %2528 = vrot.lane.b32.xlu1 %v2526_v43, %s4251_s8 }
 0xf27   :  { %2530 = vrot.lane.b32.xlu0 %v2527_v46, %s4251_s8 }
 0xf2c   :  { %v4068_v59 = vpop.eup %4067 }
 0xf2d   :  { %v4070_v40 = vpop.eup %4069 }
 0xf2e   :  { %v4072_v18 = vpop.eup %4071 }
 0xf2f   :  { %v4074_v48 = vpop.eup %4073 }
 0xf8c   :  { %v2348_v38 = vpop.permute.xlu1 %2347 }
 0xf8d   :  { %v2350_v25 = vpop.permute.xlu0 %2349  ;;  %v2353_v49 = vmul.f32 %v4068_v59, %v2348_v38 }
 0xf8e   :  { %v2354_v2 = vmul.f32 %v4070_v40, %v2350_v25 }
 0xf8f   :  { %2357 = vrot.lane.b32.xlu1 %v2353_v49, %s4251_s8 }
 0xf90   :  { %2359 = vrot.lane.b32.xlu0 %v2354_v2, %s4251_s8  ;;  %v2539_v36 = vpop.permute.xlu1 %2538 }
 0xf91   :  { %v2541_v53 = vpop.permute.xlu0 %2540  ;;  %v2544_v6 = vmul.f32 %v4072_v18, %v2539_v36 }
 0xf92   :  { %v2545_v8 = vmul.f32 %v4074_v48, %v2541_v53 }
 0xf93   :  { %2548 = vrot.lane.b32.xlu1 %v2544_v6, %s4251_s8 }
 0xf94   :  { %2550 = vrot.lane.b32.xlu0 %v2545_v8, %s4251_s8  ;;  %v2338_v16 = vpop.permute.xlu1 %2337 }
 0xf95   :  { %v2340_v39 = vpop.permute.xlu0 %2339  ;;  %v2343_v26 = vmul.f32 %v4068_v59, %v2338_v16 }
 0xf96   :  { %v2344_v20 = vmul.f32 %v4070_v40, %v2340_v39 }
 0xf98   :  { %v2529_v1 = vpop.permute.xlu1 %2528 }
 0xf99   :  { %v2531_v21 = vpop.permute.xlu0 %2530  ;;  %v2534_v9 = vmul.f32 %v4072_v18, %v2529_v1 }
 0xf9a   :  { %v2535_v61 = vmul.f32 %v4074_v48, %v2531_v21 }
0x1001   :  { %v2358_v47 = vpop.permute.xlu1 %2357 }
0x1002   :  { %v2360_v29 = vpop.permute.xlu0 %2359  ;;  %v2363_v52 = vadd.f32 %v2358_v47, %v2343_v26 }
0x1003   :  { %v2364_v4 = vadd.f32 %v2360_v29, %v2344_v20 }
0x1004   :  { %4075 = vtanh.f32 %v2363_v52  ;;  %v2421_v10 = vrot.slane %v2363_v52, 5 }
0x1005   :  { %4077 = vtanh.f32 %v2364_v4  ;;  %v2422_v34 = vrot.slane %v2364_v4, 4  ;;  %v2549_v60 = vpop.permute.xlu1 %2548 }
0x1006   :  { %v2551_v37 = vpop.permute.xlu0 %2550  ;;  %v2554_v3 = vadd.f32 %v2549_v60, %v2534_v9 }
0x1007   :  { %v2555_v43 = vadd.f32 %v2551_v37, %v2535_v61  ;;  %v2423_v46 = vsel %vm477_vm4, %v2422_v34, %v2421_v10 }
0x1008   :  { %4079 = vtanh.f32 %v2554_v3  ;;  %v2612_v5 = vrot.slane %v2554_v3, 2 }
0x1009   :  { %4081 = vtanh.f32 %v2555_v43  ;;  %v2613_v51 = vrot.slane %v2555_v43, 1 }
0x100b   :  { %v2614_v54 = vsel %vm477_vm4, %v2613_v51, %v2612_v5 }
0x100e   :  { %v4076_v55 = vpop.eup %4075 }
0x100f   :  { %v4078_v12 = vpop.eup %4077  ;;  %2369 = vrot.lane.b32.xlu1 %v4076_v55, %s4250_s5 }
0x1010   :  { %2371 = vrot.lane.b32.xlu0 %v4078_v12, %s4250_s5 }
0x1012   :  { %v4080_v57 = vpop.eup %4079 }
0x1013   :  { %v4082_v63 = vpop.eup %4081  ;;  %2560 = vrot.lane.b32.xlu1 %v4080_v57, %s4250_s5 }
0x1014   :  { %2562 = vrot.lane.b32.xlu0 %v4082_v63, %s4250_s5 }
0x1017   :  { %2379 = vperm.xlu1 %3890, %v4744_v30  }
0x1018   :  { %2570 = vperm.xlu0 %3889, %v4741_v28  }
0x1081   :  { %v2370_v62 = vpop.permute.xlu1 %2369 }
0x1082   :  { %v2372_v35 = vpop.permute.xlu0 %2371  ;;  %v2375_v24 = vmul.f32 %v4068_v59, %v2370_v62 }
0x1083   :  { %v2376_v44 = vmul.f32 %v4070_v40, %v2372_v35 }
0x1084   :  { %v2384_v13 = vrot.slane %v2375_v24, 5 }
0x1085   :  { %v2385_v38 = vrot.slane %v2376_v44, 4  ;;  %v2561_v25 = vpop.permute.xlu1 %2560 }
0x1086   :  { %v2563_v49 = vpop.permute.xlu0 %2562  ;;  %v2566_v2 = vmul.f32 %v4072_v18, %v2561_v25 }
0x1087   :  { %v2567_v36 = vmul.f32 %v4074_v48, %v2563_v49  ;;  %v2386_v53 = vsel %vm477_vm4, %v2385_v38, %v2384_v13 }
0x1088   :  { %v2575_v6 = vrot.slane %v2566_v2, 2  ;;  %2387 = vrot.lane.b32.xlu1 %v2386_v53, %s4251_s8 }
0x1089   :  { %v2576_v8 = vrot.slane %v2567_v36, 1 }
0x108b   :  { %v2577_v30 = vsel %vm477_vm4, %v2576_v8, %v2575_v6 }
0x108c   :  { %2424 = vrot.lane.b32.xlu1 %v2423_v46, %s4253_s0  ;;  %2578 = vrot.lane.b32.xlu0 %v2577_v30, %s4251_s8 }
0x1090   :  { %2615 = vrot.lane.b32.xlu0 %v2614_v54, %s4253_s0 }
0x1096   :  { %v2380_v28 = vpop.permute.xlu1 %2379 }
0x1097   :  { %v2571_v59 = vpop.permute.xlu0 %2570  ;;  %vm2381_vm13 = vcmp.eq.s32.totalorder %v2380_v28, 1 }
0x1098   :  { %vm2572_vm14 = vcmp.eq.s32.totalorder %v2571_v59, 1 }
0x10fa   :  { %v2388_v40 = vpop.permute.xlu1 %2387 }
0x10fb   :  { %v2390_v18 = vsel %vm2381_vm13, %v2388_v40, 0.0  ;;  %v5053_v48 = vsel %vm2381_vm13, %v2388_v40, %v4959_v50 }
0x10fc   :  { %v2398_v16 = vrot.slane %v2390_v18, %v4546_v19  ;;  %3736 = vmatmul.mubr.msk.f32.vlgmr.msra.gmra.mrb[14].mxu0 %vm333_vm3, %v5053_v48 }
0x10fd   :  { %3865 = vmatpush3.bf16.msra.mxu0 %v4419_v14  ;;  %3757 = vmatprep.mubr.msk.f32.mxu0 %vm4249_vm2, %v4247_v0 }
0x10fe   :  { %v2399_v39 = vcombine.high %v2398_v16, %v2398_v16  ;;  %v2406_v1 = vrot.slane %v2398_v16, %v4546_v19  ;;  %v2579_v21 = vpop.permute.xlu0 %2578  ;;  %3866 = vmatprep.subr.bf16.mxu0 %v4248_v15  ;;  %v2425_v3 = vpop.permute.xlu1 %2424 }
0x10ff   :  { %v2581_v50 = vsel %vm2572_vm14, %v2579_v21, 0.0  ;;  %v5066_v26 = vsel %vm2572_vm14, %v2579_v21, %v4975_v27  ;;  %v5104_v46 = vsel %vm2381_vm13, %v2425_v3, %v5015_v33 }
0x1100   :  { %v2413_v20 = vrot.slane %v2399_v39, %v4546_v19  ;;  %2416 = vst.msk [vmem:[%s5261_s9 + $0x5] sm:$0x1] %vm508_vm9, %v2406_v1  ;;  %v2589_v14 = vrot.slane %v2581_v50, %v4546_v19  ;;  %3747 = vmatmul.mubr.msk.f32.vlgmr.msra.gmra.mrb[14].mxu1 %vm333_vm3, %v5066_v26  ;;  %v2717_v54 = vrot.slane %v5104_v46, 2  ;;  %v2718_v12 = vrot.slane %v5104_v46, 3 }
0x1101   :  { %3868 = vmatpush3.bf16.msra.mxu0 %v4431_v22  ;;  %3871 = vmatpush3.bf16.msra.mxu1 %v4425_v17 }
0x1102   :  { %2417 = vst.msk [vmem:[%s5261_s9 + $0xd] sm:$0x1] %vm508_vm9, %v2413_v20  ;;  %v2590_v27 = vcombine.high %v2589_v14, %v2589_v14  ;;  %v2597_v47 = vrot.slane %v2589_v14, %v4546_v19  ;;  %3872 = vmatprep.subr.bf16.mxu1 %v4248_v15  ;;  %3768 = vmatprep.mubr.msk.f32.mxu1 %vm4249_vm2, %v4247_v0  ;;  %v2616_v5 = vpop.permute.xlu0 %2615 }
0x1103   :  { %v5110_v55 = vsel %vm2572_vm14, %v2616_v5, %v5024_v31 }
0x1104   :  { %v2604_v29 = vrot.slane %v2590_v27, %v4546_v19  ;;  %2607 = vst.msk [vmem:[%s5262_s10 + $0x2] sm:$0x1] %vm508_vm9, %v2597_v47  ;;  %v2907_v57 = vrot.slane %v5110_v55, 7 }
0x1105   :  { %3874 = vmatpush3.bf16.msra.mxu1 %v4435_v23 }
0x1106   :  { %2608 = vst.msk [vmem:[%s5262_s10 + $0xa] sm:$0x1] %vm508_vm9, %v2604_v29 }
0x11cf   :  { %v2691_v17 = vpop.f32.mrb[14].mxu0 }
0x11d0   :  { %v2696_v22 = vrot.slane %v2691_v17, 2  ;;  %v2697_v15 = vrot.slane %v2691_v17, 3  ;;  %v3737_v52 = vpop.f32.mrb[15].mxu0 }
0x11d2   :  { %v2700_v0 = vadd.f32 %v2696_v22, %v4487_v45  ;;  %v2701_v4 = vadd.f32 %v2697_v15, %v4475_v32 }
0x11d3   :  { %v2882_v9 = vpop.f32.mrb[14].mxu1 }
0x11d4   :  { %4083 = vtanh.f32 %v2700_v0  ;;  %v2887_v10 = vrot.slane %v2882_v9, 7  ;;  %v3748_v61 = vpop.f32.mrb[15].mxu1  ;;  %v2891_v34 = vadd.f32 %v2882_v9, %v4483_v42  ;;  %v3479_v33 = vmul.f32 -1.442695, %v2700_v0 }
0x11d5   :  { %4085 = vtanh.f32 %v2701_v4  ;;  %v3480_v63 = vmul.f32 -1.442695, %v2701_v4 }
0x11d6   :  { %v2890_v23 = vadd.f32 %v2887_v10, %v4481_v41  ;;  %v3484_v62 = vmul.f32 -1.442695, %v2891_v34 }
0x11d8   :  { %4087 = vtanh.f32 %v2890_v23  ;;  %v3483_v31 = vmul.f32 -1.442695, %v2890_v23 }
0x11d9   :  { %4089 = vtanh.f32 %v2891_v34 }
0x11da   :  { %4091 = vpow2.f32 %v3479_v33 }
0x11db   :  { %4093 = vpow2.f32 %v3480_v63 }
0x11dc   :  { %4095 = vpow2.f32 %v3483_v31 }
0x11dd   :  { %4097 = vpow2.f32 %v3484_v62 }
0x11de   :  { %v4084_v60 = vpop.eup %4083 }
0x11df   :  { %v4086_v37 = vpop.eup %4085  ;;  %2729 = vrot.lane.b32.xlu1 %v4084_v60, %s4250_s5 }
0x11e0   :  { %2731 = vrot.lane.b32.xlu0 %v4086_v37, %s4250_s5 }
0x11e2   :  { %v4088_v43 = vpop.eup %4087 }
0x11e3   :  { %2918 = vrot.lane.b32.xlu1 %v4088_v43, %s4250_s5  ;;  %v4090_v51 = vpop.eup %4089 }
0x11e4   :  { %2920 = vrot.lane.b32.xlu0 %v4090_v51, %s4250_s5  ;;  %v4092_v35 = vpop.eup %4091 }
0x11e5   :  { %v4094_v24 = vpop.eup %4093  ;;  %v2708_v44 = vadd.f32 1.0, %v4092_v35 }
0x11e6   :  { %v4096_v13 = vpop.eup %4095  ;;  %v2709_v38 = vadd.f32 1.0, %v4094_v24 }
0x11e7   :  { %2719 = vrot.lane.b32.xlu1 %v2717_v54, %s4251_s8  ;;  %v4098_v25 = vpop.eup %4097  ;;  %4099 = vrcp.f32 %v2708_v44  ;;  %v2898_v49 = vadd.f32 1.0, %v4096_v13 }
0x11e8   :  { %2721 = vrot.lane.b32.xlu0 %v2718_v12, %s4251_s8  ;;  %4101 = vrcp.f32 %v2709_v38  ;;  %v2899_v2 = vadd.f32 1.0, %v4098_v25 }
0x11e9   :  { %4103 = vrcp.f32 %v2898_v49 }
0x11ea   :  { %4105 = vrcp.f32 %v2899_v2 }
0x11eb   :  { %2908 = vrot.lane.b32.xlu1 %v2907_v57, %s4251_s8 }
0x11ec   :  { %2910 = vrot.lane.b32.xlu0 %v5110_v55, %s4251_s8 }
0x11f1   :  { %v4100_v36 = vpop.eup %4099 }
0x11f2   :  { %v4102_v6 = vpop.eup %4101 }
0x11f3   :  { %v4104_v59 = vpop.eup %4103 }
0x11f4   :  { %v4106_v16 = vpop.eup %4105 }
0x1251   :  { %v2730_v53 = vpop.permute.xlu1 %2729 }
0x1252   :  { %v2732_v8 = vpop.permute.xlu0 %2731  ;;  %v2735_v30 = vmul.f32 %v4100_v36, %v2730_v53 }
0x1253   :  { %v2736_v28 = vmul.f32 %v4102_v6, %v2732_v8 }
0x1254   :  { %2739 = vrot.lane.b32.xlu0 %v2735_v30, %s4251_s8 }
0x1255   :  { %2741 = vrot.lane.b32.xlu1 %v2736_v28, %s4251_s8  ;;  %v2919_v40 = vpop.permute.xlu1 %2918 }
0x1256   :  { %v2924_v18 = vmul.f32 %v4104_v59, %v2919_v40  ;;  %v2921_v39 = vpop.permute.xlu0 %2920 }
0x1257   :  { %v2925_v1 = vmul.f32 %v4106_v16, %v2921_v39 }
0x1259   :  { %2928 = vrot.lane.b32.xlu1 %v2924_v18, %s4251_s8  ;;  %2930 = vrot.lane.b32.xlu0 %v2925_v1, %s4251_s8  ;;  %v2720_v50 = vpop.permute.xlu1 %2719 }
0x125a   :  { %v2722_v21 = vpop.permute.xlu0 %2721  ;;  %v2725_v27 = vmul.f32 %v4100_v36, %v2720_v50 }
0x125b   :  { %v2726_v47 = vmul.f32 %v4102_v6, %v2722_v21 }
0x125d   :  { %v2909_v14 = vpop.permute.xlu1 %2908 }
0x125e   :  { %v2911_v20 = vpop.permute.xlu0 %2910  ;;  %v2914_v0 = vmul.f32 %v4104_v59, %v2909_v14 }
0x125f   :  { %v2915_v10 = vmul.f32 %v4106_v16, %v2911_v20 }
0x12c6   :  { %v2740_v29 = vpop.permute.xlu0 %2739 }
0x12c7   :  { %v2742_v17 = vpop.permute.xlu1 %2741  ;;  %v2745_v22 = vadd.f32 %v2740_v29, %v2725_v27 }
0x12c8   :  { %v2746_v15 = vadd.f32 %v2742_v17, %v2726_v47 }
0x12c9   :  { %4107 = vtanh.f32 %v2745_v22  ;;  %v2803_v52 = vrot.slane %v2745_v22, 6 }
0x12ca   :  { %4109 = vtanh.f32 %v2746_v15  ;;  %v2804_v4 = vrot.slane %v2746_v15, 5 }
0x12cb   :  { %v2929_v9 = vpop.permute.xlu1 %2928  ;;  %v2931_v34 = vpop.permute.xlu0 %2930 }
0x12cc   :  { %v2934_v61 = vadd.f32 %v2929_v9, %v2914_v0  ;;  %v2805_v23 = vsel %vm477_vm4, %v2804_v4, %v2803_v52  ;;  %v2935_v37 = vadd.f32 %v2931_v34, %v2915_v10 }
0x12ce   :  { %4111 = vtanh.f32 %v2934_v61  ;;  %v2991_v60 = vrot.slane %v2934_v61, 1 }
0x12cf   :  { %4113 = vtanh.f32 %v2935_v37 }
0x12d0   :  { %v2992_v3 = vsel %vm477_vm4, %v2935_v37, %v2991_v60 }
0x12d3   :  { %v4108_v43 = vpop.eup %4107 }
0x12d4   :  { %v4110_v5 = vpop.eup %4109  ;;  %2751 = vrot.lane.b32.xlu1 %v4108_v43, %s4250_s5 }
0x12d5   :  { %2753 = vrot.lane.b32.xlu0 %v4110_v5, %s4250_s5 }
0x12d8   :  { %v4112_v51 = vpop.eup %4111 }
0x12d9   :  { %2940 = vrot.lane.b32.xlu1 %v4112_v51, %s4250_s5  ;;  %v4114_v54 = vpop.eup %4113 }
0x12da   :  { %2942 = vrot.lane.b32.xlu0 %v4114_v54, %s4250_s5 }
0x12dd   :  { %2761 = vperm.xlu1 %3890, %v4635_v7  }
0x12de   :  { %2950 = vperm.xlu0 %3889, %v4641_v11  }
0x1346   :  { %v2752_v12 = vpop.permute.xlu1 %2751 }
0x1347   :  { %v2754_v57 = vpop.permute.xlu0 %2753  ;;  %v2757_v33 = vmul.f32 %v4100_v36, %v2752_v12 }
0x1348   :  { %v2758_v63 = vmul.f32 %v4102_v6, %v2754_v57 }
0x1349   :  { %v2766_v31 = vrot.slane %v2757_v33, 6 }
0x134a   :  { %v2767_v62 = vrot.slane %v2758_v63, 5 }
0x134b   :  { %v2941_v35 = vpop.permute.xlu1 %2940 }
0x134c   :  { %v2946_v24 = vmul.f32 %v4104_v59, %v2941_v35  ;;  %v2768_v44 = vsel %vm477_vm4, %v2767_v62, %v2766_v31  ;;  %v2943_v13 = vpop.permute.xlu0 %2942 }
0x134d   :  { %2769 = vrot.lane.b32.xlu1 %v2768_v44, %s4251_s8  ;;  %v2947_v38 = vmul.f32 %v4106_v16, %v2943_v13 }
0x134e   :  { %v2955_v25 = vrot.slane %v2946_v24, 1 }
0x1350   :  { %v2956_v49 = vsel %vm477_vm4, %v2947_v38, %v2955_v25 }
0x1351   :  { %2806 = vrot.lane.b32.xlu1 %v2805_v23, %s4253_s0  ;;  %2957 = vrot.lane.b32.xlu0 %v2956_v49, %s4251_s8 }
0x1355   :  { %2993 = vrot.lane.b32.xlu0 %v2992_v3, %s4253_s0 }
0x135c   :  { %v2762_v7 = vpop.permute.xlu1 %2761 }
0x135d   :  { %v2951_v11 = vpop.permute.xlu0 %2950  ;;  %vm2763_vm2 = vcmp.eq.s32.totalorder %v2762_v7, 1 }
0x135e   :  { %vm2952_vm15 = vcmp.eq.s32.totalorder %v2951_v11, 1 }
0x13bf   :  { %v2770_v2 = vpop.permute.xlu1 %2769 }
0x13c0   :  { %v2772_v36 = vsel %vm2763_vm2, %v2770_v2, 0.0  ;;  %v5141_v53 = vsel %vm2763_vm2, %v2770_v2, %v5053_v48 }
0x13c1   :  { %v2780_v6 = vrot.slane %v2772_v36, %v4546_v19  ;;  %3758 = vmatmul.mubr.msk.f32.vlgmr.msra.gmra.mrb[16].mxu0 %vm333_vm3, %v5141_v53 }
0x13c3   :  { %v2781_v8 = vcombine.high %v2780_v6, %v2780_v6  ;;  %v2788_v30 = vrot.slane %v2780_v6, %v4546_v19  ;;  %v2958_v28 = vpop.permute.xlu0 %2957  ;;  %v2807_v4 = vpop.permute.xlu1 %2806 }
0x13c4   :  { %v2960_v59 = vsel %vm2952_vm15, %v2958_v28, 0.0  ;;  %v5150_v40 = vsel %vm2952_vm15, %v2958_v28, %v5066_v26 }
0x13c5   :  { %v2795_v18 = vrot.slane %v2781_v8, %v4546_v19  ;;  %2798 = vst.msk [vmem:[%s5261_s9 + $0x6] sm:$0x1] %vm508_vm9, %v2788_v30  ;;  %v2968_v48 = vrot.slane %v2960_v59, %v4546_v19  ;;  %3769 = vmatmul.mubr.msk.f32.vlgmr.msra.gmra.mrb[16].mxu1 %vm333_vm3, %v5150_v40 }
0x13c7   :  { %2799 = vst.msk [vmem:[%s5261_s9 + $0xe] sm:$0x1] %vm508_vm9, %v2795_v18  ;;  %v2969_v16 = vcombine.high %v2968_v48, %v2968_v48  ;;  %v2976_v26 = vrot.slane %v2968_v48, %v4546_v19 }
0x13c9   :  { %v2983_v39 = vrot.slane %v2969_v16, %v4546_v19  ;;  %2986 = vst.msk [vmem:[%s5262_s10 + $0x1] sm:$0x1] %vm508_vm9, %v2976_v26 }
0x13cb   :  { %2987 = vst.msk [vmem:[%s5262_s10 + $0x9] sm:$0x1] %vm508_vm9, %v2983_v39 }
0x1494   :  { %v3069_v1 = vpop.f32.mrb[16].mxu0 }
0x1495   :  { %v3074_v21 = vrot.slane %v3069_v1, 1  ;;  %v3075_v50 = vrot.slane %v3069_v1, 2  ;;  %v3759_v20 = vpop.f32.mrb[17].mxu0 }
0x1497   :  { %v3078_v14 = vadd.f32 %v3074_v21, %v4487_v45  ;;  %v3079_v27 = vadd.f32 %v3075_v50, %v4475_v32  ;;  %v5182_v32 = vsel %vm2763_vm2, %v2807_v4, %v5104_v46 }
0x1498   :  { %v3259_v47 = vpop.f32.mrb[16].mxu1  ;;  %v3095_v10 = vrot.slane %v5182_v32, 1 }
0x1499   :  { %4115 = vtanh.f32 %v3078_v14  ;;  %v3264_v29 = vrot.slane %v3259_v47, 1  ;;  %v3770_v17 = vpop.f32.mrb[17].mxu1  ;;  %v3267_v22 = vadd.f32 %v3259_v47, %v4481_v41  ;;  %v3096_v41 = vrot.slane %v5182_v32, 2 }
0x149a   :  { %4117 = vtanh.f32 %v3079_v27  ;;  %v3487_v23 = vmul.f32 -1.442695, %v3078_v14  ;;  %v3488_v34 = vmul.f32 -1.442695, %v3079_v27 }
0x149b   :  { %v3268_v15 = vadd.f32 %v3264_v29, %v4483_v42  ;;  %4119 = vtanh.f32 %v3267_v22  ;;  %v2994_v42 = vpop.permute.xlu0 %2993  ;;  %v3491_v60 = vmul.f32 -1.442695, %v3267_v22 }
0x149c   :  { %v5191_v61 = vsel %vm2952_vm15, %v2994_v42, %v5110_v55 }
0x149d   :  { %4121 = vtanh.f32 %v3268_v15  ;;  %v3284_v46 = vrot.slane %v5191_v61, 1  ;;  %v3492_v37 = vmul.f32 -1.442695, %v3268_v15 }
0x149e   :  { %4123 = vpow2.f32 %v3487_v23 }
0x149f   :  { %4125 = vpow2.f32 %v3488_v34 }
0x14a0   :  { %4127 = vpow2.f32 %v3491_v60 }
0x14a1   :  { %4129 = vpow2.f32 %v3492_v37 }
0x14a3   :  { %v4116_v52 = vpop.eup %4115 }
0x14a4   :  { %v4118_v0 = vpop.eup %4117  ;;  %3107 = vrot.lane.b32.xlu1 %v4116_v52, %s4250_s5 }
0x14a5   :  { %3109 = vrot.lane.b32.xlu0 %v4118_v0, %s4250_s5  ;;  %v4120_v45 = vpop.eup %4119 }
0x14a7   :  { %v4122_v9 = vpop.eup %4121 }
0x14a8   :  { %3297 = vrot.lane.b32.xlu1 %v4122_v9, %s4250_s5  ;;  %v4124_v3 = vpop.eup %4123 }
0x14a9   :  { %3295 = vrot.lane.b32.xlu0 %v4120_v45, %s4250_s5  ;;  %v4126_v55 = vpop.eup %4125  ;;  %v3086_v43 = vadd.f32 1.0, %v4124_v3 }
0x14aa   :  { %v3087_v5 = vadd.f32 1.0, %v4126_v55  ;;  %v4128_v51 = vpop.eup %4127 }
0x14ab   :  { %v4130_v54 = vpop.eup %4129  ;;  %4131 = vrcp.f32 %v3086_v43  ;;  %v3275_v12 = vadd.f32 1.0, %v4128_v51 }
0x14ac   :  { %3097 = vrot.lane.b32.xlu1 %v3095_v10, %s4251_s8  ;;  %4133 = vrcp.f32 %v3087_v5  ;;  %v3276_v57 = vadd.f32 1.0, %v4130_v54 }
0x14ad   :  { %3099 = vrot.lane.b32.xlu0 %v3096_v41, %s4251_s8  ;;  %4135 = vrcp.f32 %v3275_v12 }
0x14ae   :  { %4137 = vrcp.f32 %v3276_v57 }
0x14b0   :  { %3287 = vrot.lane.b32.xlu1 %v3284_v46, %s4251_s8 }
0x14b1   :  { %3285 = vrot.lane.b32.xlu0 %v5191_v61, %s4251_s8 }
0x14b5   :  { %v4132_v33 = vpop.eup %4131 }
0x14b6   :  { %v4134_v31 = vpop.eup %4133 }
0x14b7   :  { %v4136_v44 = vpop.eup %4135 }
0x14b8   :  { %v4138_v25 = vpop.eup %4137 }
0x1516   :  { %v3108_v63 = vpop.permute.xlu1 %3107 }
0x1517   :  { %v3110_v62 = vpop.permute.xlu0 %3109  ;;  %v3113_v35 = vmul.f32 %v4132_v33, %v3108_v63 }
0x1518   :  { %v3114_v24 = vmul.f32 %v4134_v31, %v3110_v62 }
0x1519   :  { %3117 = vrot.lane.b32.xlu0 %v3113_v35, %s4251_s8 }
0x151a   :  { %3119 = vrot.lane.b32.xlu1 %v3114_v24, %s4251_s8  ;;  %v3298_v49 = vpop.permute.xlu1 %3297 }
0x151b   :  { %v3296_v13 = vpop.permute.xlu0 %3295  ;;  %v3302_v7 = vmul.f32 %v4138_v25, %v3298_v49 }
0x151c   :  { %v3301_v38 = vmul.f32 %v4136_v44, %v3296_v13 }
0x151e   :  { %3305 = vrot.lane.b32.xlu0 %v3301_v38, %s4251_s8  ;;  %3307 = vrot.lane.b32.xlu1 %v3302_v7, %s4251_s8  ;;  %v3098_v2 = vpop.permute.xlu1 %3097 }
0x151f   :  { %v3100_v11 = vpop.permute.xlu0 %3099  ;;  %v3103_v8 = vmul.f32 %v4132_v33, %v3098_v2 }
0x1520   :  { %v3104_v30 = vmul.f32 %v4134_v31, %v3100_v11 }
0x1522   :  { %v3288_v6 = vpop.permute.xlu1 %3287 }
0x1523   :  { %v3286_v36 = vpop.permute.xlu0 %3285  ;;  %v3292_v21 = vmul.f32 %v4138_v25, %v3288_v6 }
0x1524   :  { %v3291_v26 = vmul.f32 %v4136_v44, %v3286_v36 }
0x158b   :  { %v3118_v28 = vpop.permute.xlu0 %3117 }
0x158c   :  { %v3120_v59 = vpop.permute.xlu1 %3119  ;;  %v3123_v18 = vadd.f32 %v3118_v28, %v3103_v8 }
0x158d   :  { %v3124_v48 = vadd.f32 %v3120_v59, %v3104_v30 }
0x158e   :  { %4139 = vtanh.f32 %v3123_v18  ;;  %v3181_v16 = vrot.slane %v3123_v18, 7 }
0x158f   :  { %4141 = vtanh.f32 %v3124_v48  ;;  %v3182_v39 = vrot.slane %v3124_v48, 6 }
0x1590   :  { %v3306_v1 = vpop.permute.xlu0 %3305  ;;  %v3308_v14 = vpop.permute.xlu1 %3307 }
0x1591   :  { %v3311_v50 = vadd.f32 %v3306_v1, %v3291_v26  ;;  %v3183_v20 = vsel %vm477_vm4, %v3182_v39, %v3181_v16  ;;  %v3312_v27 = vadd.f32 %v3308_v14, %v3292_v21 }
0x1593   :  { %4143 = vtanh.f32 %v3311_v50  ;;  %v3368_v47 = vrot.slane %v3312_v27, 7 }
0x1594   :  { %4145 = vtanh.f32 %v3312_v27 }
0x1595   :  { %v3369_v29 = vsel %vm477_vm4, %v3368_v47, %v3311_v50 }
0x1598   :  { %v4140_v17 = vpop.eup %4139 }
0x1599   :  { %v4142_v22 = vpop.eup %4141  ;;  %3129 = vrot.lane.b32.xlu1 %v4140_v17, %s4250_s5 }
0x159a   :  { %3131 = vrot.lane.b32.xlu0 %v4142_v22, %s4250_s5 }
0x159d   :  { %v4144_v15 = vpop.eup %4143 }
0x159e   :  { %3317 = vrot.lane.b32.xlu0 %v4144_v15, %s4250_s5  ;;  %v4146_v52 = vpop.eup %4145 }
0x159f   :  { %3319 = vrot.lane.b32.xlu1 %v4146_v52, %s4250_s5 }
0x15a2   :  { %3327 = vperm.xlu0 %3889, %v4528_v56  }
0x15a3   :  { %3139 = vperm.xlu1 %3890, %v4534_v58  }
0x160b   :  { %v3130_v0 = vpop.permute.xlu1 %3129 }
0x160c   :  { %v3132_v4 = vpop.permute.xlu0 %3131  ;;  %v3135_v45 = vmul.f32 %v4132_v33, %v3130_v0 }
0x160d   :  { %v3136_v9 = vmul.f32 %v4134_v31, %v3132_v4 }
0x160e   :  { %v3144_v41 = vrot.slane %v3135_v45, 7 }
0x160f   :  { %v3145_v42 = vrot.slane %v3136_v9, 6 }
0x1610   :  { %v3318_v46 = vpop.permute.xlu0 %3317 }
0x1611   :  { %v3146_v10 = vsel %vm477_vm4, %v3145_v42, %v3144_v41  ;;  %v3320_v23 = vpop.permute.xlu1 %3319  ;;  %v3323_v60 = vmul.f32 %v4136_v44, %v3318_v46 }
0x1612   :  { %3147 = vrot.lane.b32.xlu1 %v3146_v10, %s4251_s8  ;;  %v3324_v34 = vmul.f32 %v4138_v25, %v3320_v23 }
0x1614   :  { %v3332_v37 = vrot.slane %v3324_v34, 7 }
0x1616   :  { %3184 = vrot.lane.b32.xlu1 %v3183_v20, %s4253_s0  ;;  %v3333_v56 = vsel %vm477_vm4, %v3332_v37, %v3323_v60 }
0x1617   :  { %3334 = vrot.lane.b32.xlu0 %v3333_v56, %s4251_s8 }
0x161b   :  { %3370 = vrot.lane.b32.xlu0 %v3369_v29, %s4253_s0 }
0x1621   :  { %v3328_v5 = vpop.permute.xlu0 %3327 }
0x1622   :  { %v3140_v58 = vpop.permute.xlu1 %3139  ;;  %vm3329_vm4 = vcmp.eq.s32.totalorder %v3328_v5, 1 }
0x1623   :  { %vm3141_vm3 = vcmp.eq.s32.totalorder %v3140_v58, 1 }
0x1684   :  { %v3148_v3 = vpop.permute.xlu1 %3147 }
0x1685   :  { %v3150_v55 = vsel %vm3141_vm3, %v3148_v3, 0.0  ;;  %v3178_v43 = vsel %vm3141_vm3, %v3148_v3, %v5141_v53 }
0x1686   :  { %v3158_v51 = vrot.slane %v3150_v55, %v4546_v19  ;;  %3375 = vst.msk [vmem:[%s5263_s11] sm:$0x3] %vm123_vm0, %v3178_v43 }
0x1688   :  { %v3159_v54 = vcombine.high %v3158_v51, %v3158_v51  ;;  %v3166_v12 = vrot.slane %v3158_v51, %v4546_v19  ;;  %v3185_v57 = vpop.permute.xlu1 %3184 }
0x1689   :  { %v3187_v33 = vsel %vm3141_vm3, %v3185_v57, %v5182_v32  ;;  %v3335_v53 = vpop.permute.xlu0 %3334 }
0x168a   :  { %v3173_v63 = vrot.slane %v3159_v54, %v4546_v19  ;;  %3176 = vst.msk [vmem:[%s5261_s9 + $0x7] sm:$0x1] %vm508_vm9, %v3166_v12  ;;  %v3337_v31 = vsel %vm3329_vm4, %v3335_v53, 0.0  ;;  %v3365_v62 = vsel %vm3329_vm4, %v3335_v53, %v5150_v40 }
0x168b   :  { %3376 = vst.msk [vmem:[#allocation2] sm:$0x3] %vm123_vm0, %v3187_v33  ;;  %v3345_v32 = vrot.slane %v3337_v31, %v4546_v19  ;;  %3377 = vst.msk [vmem:[%s5264_s12] sm:$0x3] %vm123_vm0, %v3365_v62 }
0x168c   :  { %3177 = vst.msk [vmem:[%s5261_s9 + $0xf] sm:$0x1] %vm508_vm9, %v3173_v63 }
0x168d   :  { %v3346_v35 = vcombine.high %v3345_v32, %v3345_v32  ;;  %v3353_v24 = vrot.slane %v3345_v32, %v4546_v19  ;;  %v3371_v44 = vpop.permute.xlu0 %3370 }
0x168e   :  { %v3373_v13 = vsel %vm3329_vm4, %v3371_v44, %v5191_v61 }
0x168f   :  { %v3360_v40 = vrot.slane %v3346_v35, %v4546_v19  ;;  %3363 = vst.msk [vmem:[%s5262_s10] sm:$0x1] %vm508_vm9, %v3353_v24 }
0x1690   :  { %3378 = vst.msk [vmem:[#allocation3] sm:$0x3] %vm123_vm0, %v3373_v13 }
0x1691   :  { %3364 = vst.msk [vmem:[%s5262_s10 + $0x8] sm:$0x1] %vm508_vm9, %v3360_v40 }
0x1692   :  { %3406 = vsyncpa [#allocation5], 1 }
0x1693   :  { %3407 = vsyncpa [#allocation7], 1 }
0x1694   :  { %3408 = vsyncpa [#allocation10], 1 }

</bundles_post_ra>
